<compile_context>
chip_gen: v7x
topology: tpu7x:2x2x1
jax: 0.10.0
libtpu: 0.0.40
codegen_flags: <defaults>
</compile_context>

<pallas_src>
import functools
import math

import jax
import jax.numpy as jnp
import numpy as np
from jax import lax
from jax.experimental import pallas as pl
from jax.experimental.pallas import tpu as pltpu


# ----------------------------------------------------------------------------
# Fused Pallas kernel (NB batch elements per grid step)
# ----------------------------------------------------------------------------

def _smoother_kernel(x_ref, wqkv_ref, bqkv_ref, wo_ref, bo_ref,
                     w0_ref, b0_ref, w1_ref, b1_ref, o_ref,
                     *, H, T, NB, scale):
    # x_ref:  (NB, T, D)  activations            wqkv: (D, 3D) bf16  bqkv: (1,3D) f32
    # wo:     (D, D) bf16   bo: (1, D) f32
    # w0:     (3D, d_hid) bf16 (tap-major packed)   b0: (1, d_hid) f32
    # w1:     (3*d_hid, D) bf16 (tap-major packed)  b1: (1, D) f32
    D = x_ref.shape[-1]
    hd = D // H
    M = NB * T

    # ---- activations: (NB, T, D) -> (M, D); time on sublanes, channels on lanes
    x = x_ref[...].reshape(M, D).astype(jnp.float32)
    xb = x.astype(jnp.bfloat16)

    # ---- fused QKV projection: one lane-dense (M, D) @ (D, 3D) MXU matmul ----
    qkv = jnp.dot(xb, wqkv_ref[...],
                  preferred_element_type=jnp.float32) + bqkv_ref[...]
    qkvb = qkv.astype(jnp.bfloat16)          # stays in vregs (no VMEM round trip)

    # ---- attention: per-head value slices, NB-batched dot_general; each head's
    #      context is folded straight into the Wo projection (no ctx buffer). ----
    acc = None
    for h in range(H):
        q = qkvb[:, h * hd:(h + 1) * hd].reshape(NB, T, hd)
        k = qkvb[:, D + h * hd:D + (h + 1) * hd].reshape(NB, T, hd)
        v = qkvb[:, 2 * D + h * hd:2 * D + (h + 1) * hd].reshape(NB, T, hd)
        s = lax.dot_general(q, k, (((2,), (2,)), ((0,), (0,))),
                            preferred_element_type=jnp.float32) * scale   # (NB,T,T)
        s = s - jnp.max(s, axis=-1, keepdims=True)
        p = jnp.exp(s)
        p = p * pl.reciprocal(jnp.sum(p, axis=-1, keepdims=True), approx=True)
        ctx = lax.dot_general(p.astype(jnp.bfloat16), v,
                              (((2,), (1,)), ((0,), (0,))),
                              preferred_element_type=jnp.float32)          # (NB,T,hd)
        contrib = jnp.dot(ctx.reshape(M, hd).astype(jnp.bfloat16),
                          wo_ref[h * hd:(h + 1) * hd, :],
                          preferred_element_type=jnp.float32)              # (M, D)
        acc = contrib if acc is None else acc + contrib

    src = x + acc + bo_ref[...]                       # residual 1, f32, in vregs

    # ---- conv FFN, packed-K form: out[t] = [x[t-1] | x[t] | x[t+1]] @ W_packed
    #      (one matmul per conv; shifted taps via XLU roll + boundary mask). ----
    ridx = lax.broadcasted_iota(jnp.int32, (M, 1), 0)
    is_first = functools.reduce(
        jnp.logical_or, [ridx == nb * T for nb in range(NB)])
    is_last = functools.reduce(
        jnp.logical_or, [ridx == nb * T + (T - 1) for nb in range(NB)])

    def conv3(val_f32, wp_ref, b_ref):
        prev = jnp.where(is_first, 0.0, pltpu.roll(val_f32, 1, axis=0))      # x[t-1]
        nxt = jnp.where(is_last, 0.0, pltpu.roll(val_f32, M - 1, axis=0))    # x[t+1]
        packed = jnp.concatenate(
            [prev.astype(jnp.bfloat16), val_f32.astype(jnp.bfloat16),
             nxt.astype(jnp.bfloat16)], axis=-1)                             # (M, 3*Cin)
        return jnp.dot(packed, wp_ref[...],
                       preferred_element_type=jnp.float32) + b_ref[...]

    h0 = jnp.maximum(conv3(src, w0_ref, b0_ref), 0.0)        # (M, d_hid)
    y = conv3(h0, w1_ref, b1_ref)                            # (M, D)

    # ---- residual 2 (lane-dense D-wide stores) ----
    o_ref[...] = (src + y).reshape(NB, T, D).astype(o_ref.dtype)


# ----------------------------------------------------------------------------
# Wrapper (layout plumbing + BlockSpecs)
# ----------------------------------------------------------------------------

def _full_spec(a):
    """Full-array block, grid-invariant (same block for every grid step)."""
    return pl.BlockSpec(a.shape, lambda b: (0,) * a.ndim)


def prepare_params(p):
    """Fold transposes / tap-packing / bf16 casts once (amortized across calls)."""
    def pack_conv(w):           # (Cout, Cin, 3) -> (3*Cin, Cout), tap-major rows
        cout, cin, k = w.shape
        return jnp.transpose(w, (2, 1, 0)).reshape(k * cin, cout).astype(jnp.bfloat16)

    return dict(
        wqkv=p['w_in'].T.astype(jnp.bfloat16),                 # (D, 3D)
        bqkv=p['b_in'].reshape(1, -1).astype(jnp.float32),     # (1, 3D)
        wo=p['w_out'].T.astype(jnp.bfloat16),                  # (D, D)
        bo=p['b_out'].reshape(1, -1).astype(jnp.float32),      # (1, D)
        w0p=pack_conv(p['w0']),                                # (3*D, d_hid)
        b0=p['b0'].reshape(1, -1).astype(jnp.float32),         # (1, d_hid)
        w1p=pack_conv(p['w1']),                                # (3*d_hid, D)
        b1=p['b1'].reshape(1, -1).astype(jnp.float32),         # (1, D)
    )


def _default_batch_block(B):
    """Batch elements folded into one grid step.

    v5e/v6e: single TensorCore -> the grid is a serial loop, so fold the whole
    batch (M = B*T rows: better MXU sublane fill, no per-step overhead).
    v7x: 2 TensorCores -> keep >= 2 'parallel' grid steps so both get work.
    """
    try:
        kind = jax.devices()[0].device_kind.lower()
    except Exception:
        kind = ""
    if "v7" in kind and B % 2 == 0:
        return B // 2
    return B


def smoother_pallas(src, prep, *, nhead, batch_block=None):
    """Smoother forward.  src: (T, B, D) seq-first (PyTorch MHA layout)."""
    T, B, D = src.shape
    d_hid = prep['w0p'].shape[1]
    NB = batch_block if batch_block is not None else _default_batch_block(B)
    assert B % NB == 0 and D % nhead == 0
    hd = D // nhead

    # TODO(synk): keep activations in (B, T, D) upstream to drop these two HBM
    # transposes at production sizes (trivial at the test shapes used here).
    x = jnp.transpose(src, (1, 0, 2))                     # (B, T, D)

    kernel = functools.partial(_smoother_kernel, H=nhead, T=T, NB=NB,
                               scale=1.0 / math.sqrt(hd))
    xspec = pl.BlockSpec((NB, T, D), lambda b: (b, 0, 0))

    flops = int(2 * B * T * (D * 3 * D + D * D + 3 * D * d_hid + 3 * d_hid * D)
                + 4 * B * nhead * T * T * hd)
    bytes_accessed = int(2 * B * T * D * 4
                         + 2 * (3 * D * D + D * D + 3 * D * d_hid + 3 * d_hid * D)
                         + 4 * (3 * D + 2 * D + d_hid))
    cost = pl.CostEstimate(flops=flops,
                           transcendentals=int(B * nhead * T * T),
                           bytes_accessed=bytes_accessed)

    out = pl.pallas_call(
        kernel,
        out_shape=jax.ShapeDtypeStruct((B, T, D), src.dtype),
        grid=(B // NB,),
        in_specs=[xspec,
                  _full_spec(prep['wqkv']), _full_spec(prep['bqkv']),
                  _full_spec(prep['wo']), _full_spec(prep['bo']),
                  _full_spec(prep['w0p']), _full_spec(prep['b0']),
                  _full_spec(prep['w1p']), _full_spec(prep['b1'])],
        out_specs=xspec,
        compiler_params=pltpu.CompilerParams(
            dimension_semantics=("parallel",)),
        cost_estimate=cost,
    )(x, prep['wqkv'], prep['bqkv'], prep['wo'], prep['bo'],
      prep['w0p'], prep['b0'], prep['w1p'], prep['b1'])
    return jnp.transpose(out, (1, 0, 2))                  # back to (T, B, D)


# ----------------------------------------------------------------------------
# Plain-JAX (f32) reference for the correctness check
# ----------------------------------------------------------------------------

def _ref_conv1d(x, w, b):
    # x: (B, Cin, T), w: (Cout, Cin, K=3), padding=1 (matches torch Conv1d)
    y = lax.conv_general_dilated(x, w, window_strides=(1,), padding=((1, 1),),
                                 dimension_numbers=('NCH', 'OIH', 'NCH'))
    return y + b[None, :, None]


def ref_smoother(src, p, *, nhead):
    T, B, D = src.shape
    hd = D // nhead
    x = jnp.transpose(src, (1, 0, 2))                      # (B, T, D)
    qkv = x @ p['w_in'].T + p['b_in']
    q, k, v = jnp.split(qkv, 3, axis=-1)
    q = q.reshape(B, T, nhead, hd)
    k = k.reshape(B, T, nhead, hd)
    v = v.reshape(B, T, nhead, hd)
    s = jnp.einsum('bthd,bshd->bhts', q, k) / math.sqrt(hd)
    a = jax.nn.softmax(s, axis=-1)
    o = jnp.einsum('bhts,bshd->bthd', a, v).reshape(B, T, D)
    x = x + o @ p['w_out'].T + p['b_out']                  # residual 1
    xc = jnp.transpose(x, (0, 2, 1))                       # (B, D, T)
    h = jnp.maximum(_ref_conv1d(xc, p['w0'], p['b0']), 0.0)
    y = _ref_conv1d(h, p['w1'], p['b1'])
    x = x + jnp.transpose(y, (0, 2, 1))                    # residual 2
    return jnp.transpose(x, (1, 0, 2))                     # (T, B, D)


# ----------------------------------------------------------------------------
# Deterministic synthetic parameters (weight_norm already folded)
# ----------------------------------------------------------------------------

def make_params(key, d_model, d_hid):
    ks = jax.random.split(key, 8)

    def nrm(k, shape, s):
        return (s * jax.random.normal(k, shape)).astype(jnp.float32)

    return dict(
        w_in=nrm(ks[0], (3 * d_model, d_model), 0.1),
        b_in=nrm(ks[1], (3 * d_model,), 0.1),
        w_out=nrm(ks[2], (d_model, d_model), 0.1),
        b_out=nrm(ks[3], (d_model,), 0.1),
        w0=nrm(ks[4], (d_hid, d_model, 3), 0.05),   # Conv1d(d_model, d_hid, 3)
        b0=nrm(ks[5], (d_hid,), 0.05),
        w1=nrm(ks[6], (d_model, d_hid, 3), 0.05),   # Conv1d(d_hid, d_model, 3)
        b1=nrm(ks[7], (d_model,), 0.05),
    )


# ----------------------------------------------------------------------------

if __name__ == "__main__":
    T, B, D, H, d_hid = 32, 2, 128, 8, 256       # small; D, d_hid multiples of 128
    key = jax.random.PRNGKey(0)
    kx, kp = jax.random.split(key)
    src = jax.random.normal(kx, (T, B, D), dtype=jnp.float32)
    params = make_params(kp, D, d_hid)
    prep = prepare_params(params)

    out = smoother_pallas(src, prep, nhead=H)
    out = jax.block_until_ready(out)
    assert out.shape == (T, B, D), out.shape

    ref = ref_smoother(src, params, nhead=H)
    out_np, ref_np = np.asarray(out), np.asarray(ref)
    diff = out_np - ref_np
    rel = np.linalg.norm(diff) / np.linalg.norm(ref_np)
    # Tolerances are deliberate: bf16 MXU operands + approx reciprocal softmax
    # vs an all-f32 reference; the relative-error bound is the real check.
    if not (np.allclose(out_np, ref_np, atol=1e-1, rtol=1e-1) and rel < 3e-2):
        raise AssertionError(
            f"Pallas output mismatch: max abs {np.abs(diff).max():.3e}, rel {rel:.3e}")
    print("KERNEL_OK")
</pallas_src>

<mosaic_0001>
module attributes {stable_mosaic.version = 11 : i64} {
  func.func @_smoother_kernel(%arg0: i32, %arg1: memref<2x32x128xf32, #tpu.memory_space<vmem>>, %arg2: memref<128x384xbf16, #tpu.memory_space<vmem>>, %arg3: memref<1x384xf32, #tpu.memory_space<vmem>>, %arg4: memref<128x128xbf16, #tpu.memory_space<vmem>>, %arg5: memref<1x128xf32, #tpu.memory_space<vmem>>, %arg6: memref<384x256xbf16, #tpu.memory_space<vmem>>, %arg7: memref<1x256xf32, #tpu.memory_space<vmem>>, %arg8: memref<768x128xbf16, #tpu.memory_space<vmem>>, %arg9: memref<1x128xf32, #tpu.memory_space<vmem>>, %arg10: memref<2x32x128xf32, #tpu.memory_space<vmem>>) attributes {dimension_semantics = [#tpu.dimension_semantics<parallel>], iteration_bounds = array<i64: 1>, scalar_prefetch = 0 : i64, scratch_operands = 0 : i64, tpu.core_type = #tpu.core_type<tc>, window_params = [{transform_indices = @transform_0, window_bounds = array<i64: 2, 32, 128>}, {pipeline_mode = #tpu.pipeline_mode<synchronous>, transform_indices = @transform_1, window_bounds = array<i64: 128, 384>}, {pipeline_mode = #tpu.pipeline_mode<synchronous>, transform_indices = @transform_2, window_bounds = array<i64: 1, 384>}, {pipeline_mode = #tpu.pipeline_mode<synchronous>, transform_indices = @transform_3, window_bounds = array<i64: 128, 128>}, {pipeline_mode = #tpu.pipeline_mode<synchronous>, transform_indices = @transform_4, window_bounds = array<i64: 1, 128>}, {pipeline_mode = #tpu.pipeline_mode<synchronous>, transform_indices = @transform_5, window_bounds = array<i64: 384, 256>}, {pipeline_mode = #tpu.pipeline_mode<synchronous>, transform_indices = @transform_6, window_bounds = array<i64: 1, 256>}, {pipeline_mode = #tpu.pipeline_mode<synchronous>, transform_indices = @transform_7, window_bounds = array<i64: 768, 128>}, {pipeline_mode = #tpu.pipeline_mode<synchronous>, transform_indices = @transform_8, window_bounds = array<i64: 1, 128>}, {transform_indices = @transform_9, window_bounds = array<i64: 2, 32, 128>}]} {
    %c0 = arith.constant 0 : index
    %c0_0 = arith.constant 0 : index
    %c0_1 = arith.constant 0 : index
    %0 = vector.load %arg1[%c0, %c0_0, %c0_1] : memref<2x32x128xf32, #tpu.memory_space<vmem>>, vector<2x32x128xf32>
    %1 = vector.shape_cast %0 : vector<2x32x128xf32> to vector<64x128xf32>
    %2 = arith.truncf %1 : vector<64x128xf32> to vector<64x128xbf16>
    %c0_2 = arith.constant 0 : index
    %c0_3 = arith.constant 0 : index
    %3 = vector.load %arg2[%c0_2, %c0_3] : memref<128x384xbf16, #tpu.memory_space<vmem>>, vector<128x384xbf16>
    %cst = arith.constant dense<0.000000e+00> : vector<64x384xf32>
    %4 = tpu.matmul %2, %3, %cst {dimension_numbers = #tpu.dot_dimension_numbers<[1], [0], [0], [1], [0, 0, 1, 1], [], []>} : vector<64x128xbf16>, vector<128x384xbf16>, vector<64x384xf32> -> vector<64x384xf32>
    %c0_4 = arith.constant 0 : index
    %c0_5 = arith.constant 0 : index
    %5 = vector.load %arg3[%c0_4, %c0_5] : memref<1x384xf32, #tpu.memory_space<vmem>>, vector<1x384xf32>
    %6 = vector.broadcast %5 : vector<1x384xf32> to vector<64x384xf32>
    %7 = arith.addf %4, %6 : vector<64x384xf32>
    %8 = arith.truncf %7 : vector<64x384xf32> to vector<64x384xbf16>
    %9 = vector.extract_strided_slice %8 {offsets = [0, 0], sizes = [64, 16], strides = [1, 1]} : vector<64x384xbf16> to vector<64x16xbf16>
    %10 = vector.shape_cast %9 : vector<64x16xbf16> to vector<2x32x16xbf16>
    %11 = vector.extract_strided_slice %8 {offsets = [0, 128], sizes = [64, 16], strides = [1, 1]} : vector<64x384xbf16> to vector<64x16xbf16>
    %12 = vector.shape_cast %11 : vector<64x16xbf16> to vector<2x32x16xbf16>
    %13 = vector.extract_strided_slice %8 {offsets = [0, 256], sizes = [64, 16], strides = [1, 1]} : vector<64x384xbf16> to vector<64x16xbf16>
    %14 = vector.shape_cast %13 : vector<64x16xbf16> to vector<2x32x16xbf16>
    %cst_6 = arith.constant dense<0.000000e+00> : vector<2x32x32xf32>
    %15 = tpu.matmul %10, %12, %cst_6 {dimension_numbers = #tpu.dot_dimension_numbers<[2], [2], [1], [1], [0, 0, 0, 1, 1, 1], [0], [0]>} : vector<2x32x16xbf16>, vector<2x32x16xbf16>, vector<2x32x32xf32> -> vector<2x32x32xf32>
    %cst_7 = arith.constant 2.500000e-01 : f32
    %16 = vector.broadcast %cst_7 : f32 to vector<2x32x32xf32>
    %17 = arith.mulf %15, %16 : vector<2x32x32xf32>
    %cst_8 = arith.constant dense<0xFF800000> : vector<2x32xf32>
    %18 = vector.multi_reduction <maximumf>, %17, %cst_8 [2] : vector<2x32x32xf32> to vector<2x32xf32>
    %19 = vector.shape_cast %18 : vector<2x32xf32> to vector<2x32x1xf32>
    %20 = vector.broadcast %19 : vector<2x32x1xf32> to vector<2x32x32xf32>
    %21 = arith.subf %17, %20 : vector<2x32x32xf32>
    %22 = math.exp %21 : vector<2x32x32xf32>
    %cst_9 = arith.constant dense<0.000000e+00> : vector<2x32xf32>
    %23 = vector.multi_reduction <add>, %22, %cst_9 [2] : vector<2x32x32xf32> to vector<2x32xf32>
    %24 = vector.shape_cast %23 : vector<2x32xf32> to vector<2x32x1xf32>
    %25 = tpu.reciprocal %24 {approx = true} : vector<2x32x1xf32> -> vector<2x32x1xf32>
    %26 = vector.broadcast %25 : vector<2x32x1xf32> to vector<2x32x32xf32>
    %27 = arith.mulf %22, %26 : vector<2x32x32xf32>
    %28 = arith.truncf %27 : vector<2x32x32xf32> to vector<2x32x32xbf16>
    %cst_10 = arith.constant dense<0.000000e+00> : vector<2x32x16xf32>
    %29 = tpu.matmul %28, %14, %cst_10 {dimension_numbers = #tpu.dot_dimension_numbers<[2], [1], [1], [2], [0, 0, 0, 1, 1, 2], [0], [0]>} : vector<2x32x32xbf16>, vector<2x32x16xbf16>, vector<2x32x16xf32> -> vector<2x32x16xf32>
    %30 = vector.shape_cast %29 : vector<2x32x16xf32> to vector<64x16xf32>
    %31 = arith.truncf %30 : vector<64x16xf32> to vector<64x16xbf16>
    %c0_11 = arith.constant 0 : index
    %c0_12 = arith.constant 0 : index
    %32 = vector.load %arg4[%c0_11, %c0_12] : memref<128x128xbf16, #tpu.memory_space<vmem>>, vector<16x128xbf16>
    %cst_13 = arith.constant dense<0.000000e+00> : vector<64x128xf32>
    %33 = tpu.matmul %31, %32, %cst_13 {dimension_numbers = #tpu.dot_dimension_numbers<[1], [0], [0], [1], [0, 0, 1, 1], [], []>} : vector<64x16xbf16>, vector<16x128xbf16>, vector<64x128xf32> -> vector<64x128xf32>
    %34 = vector.extract_strided_slice %8 {offsets = [0, 16], sizes = [64, 16], strides = [1, 1]} : vector<64x384xbf16> to vector<64x16xbf16>
    %35 = vector.shape_cast %34 : vector<64x16xbf16> to vector<2x32x16xbf16>
    %36 = vector.extract_strided_slice %8 {offsets = [0, 144], sizes = [64, 16], strides = [1, 1]} : vector<64x384xbf16> to vector<64x16xbf16>
    %37 = vector.shape_cast %36 : vector<64x16xbf16> to vector<2x32x16xbf16>
    %38 = vector.extract_strided_slice %8 {offsets = [0, 272], sizes = [64, 16], strides = [1, 1]} : vector<64x384xbf16> to vector<64x16xbf16>
    %39 = vector.shape_cast %38 : vector<64x16xbf16> to vector<2x32x16xbf16>
    %cst_14 = arith.constant dense<0.000000e+00> : vector<2x32x32xf32>
    %40 = tpu.matmul %35, %37, %cst_14 {dimension_numbers = #tpu.dot_dimension_numbers<[2], [2], [1], [1], [0, 0, 0, 1, 1, 1], [0], [0]>} : vector<2x32x16xbf16>, vector<2x32x16xbf16>, vector<2x32x32xf32> -> vector<2x32x32xf32>
    %cst_15 = arith.constant 2.500000e-01 : f32
    %41 = vector.broadcast %cst_15 : f32 to vector<2x32x32xf32>
    %42 = arith.mulf %40, %41 : vector<2x32x32xf32>
    %cst_16 = arith.constant dense<0xFF800000> : vector<2x32xf32>
    %43 = vector.multi_reduction <maximumf>, %42, %cst_16 [2] : vector<2x32x32xf32> to vector<2x32xf32>
    %44 = vector.shape_cast %43 : vector<2x32xf32> to vector<2x32x1xf32>
    %45 = vector.broadcast %44 : vector<2x32x1xf32> to vector<2x32x32xf32>
    %46 = arith.subf %42, %45 : vector<2x32x32xf32>
    %47 = math.exp %46 : vector<2x32x32xf32>
    %cst_17 = arith.constant dense<0.000000e+00> : vector<2x32xf32>
    %48 = vector.multi_reduction <add>, %47, %cst_17 [2] : vector<2x32x32xf32> to vector<2x32xf32>
    %49 = vector.shape_cast %48 : vector<2x32xf32> to vector<2x32x1xf32>
    %50 = tpu.reciprocal %49 {approx = true} : vector<2x32x1xf32> -> vector<2x32x1xf32>
    %51 = vector.broadcast %50 : vector<2x32x1xf32> to vector<2x32x32xf32>
    %52 = arith.mulf %47, %51 : vector<2x32x32xf32>
    %53 = arith.truncf %52 : vector<2x32x32xf32> to vector<2x32x32xbf16>
    %cst_18 = arith.constant dense<0.000000e+00> : vector<2x32x16xf32>
    %54 = tpu.matmul %53, %39, %cst_18 {dimension_numbers = #tpu.dot_dimension_numbers<[2], [1], [1], [2], [0, 0, 0, 1, 1, 2], [0], [0]>} : vector<2x32x32xbf16>, vector<2x32x16xbf16>, vector<2x32x16xf32> -> vector<2x32x16xf32>
    %55 = vector.shape_cast %54 : vector<2x32x16xf32> to vector<64x16xf32>
    %56 = arith.truncf %55 : vector<64x16xf32> to vector<64x16xbf16>
    %c16 = arith.constant 16 : index
    %c0_19 = arith.constant 0 : index
    %57 = vector.load %arg4[%c16, %c0_19] : memref<128x128xbf16, #tpu.memory_space<vmem>>, vector<16x128xbf16>
    %cst_20 = arith.constant dense<0.000000e+00> : vector<64x128xf32>
    %58 = tpu.matmul %56, %57, %cst_20 {dimension_numbers = #tpu.dot_dimension_numbers<[1], [0], [0], [1], [0, 0, 1, 1], [], []>} : vector<64x16xbf16>, vector<16x128xbf16>, vector<64x128xf32> -> vector<64x128xf32>
    %59 = arith.addf %33, %58 : vector<64x128xf32>
    %60 = vector.extract_strided_slice %8 {offsets = [0, 32], sizes = [64, 16], strides = [1, 1]} : vector<64x384xbf16> to vector<64x16xbf16>
    %61 = vector.shape_cast %60 : vector<64x16xbf16> to vector<2x32x16xbf16>
    %62 = vector.extract_strided_slice %8 {offsets = [0, 160], sizes = [64, 16], strides = [1, 1]} : vector<64x384xbf16> to vector<64x16xbf16>
    %63 = vector.shape_cast %62 : vector<64x16xbf16> to vector<2x32x16xbf16>
    %64 = vector.extract_strided_slice %8 {offsets = [0, 288], sizes = [64, 16], strides = [1, 1]} : vector<64x384xbf16> to vector<64x16xbf16>
    %65 = vector.shape_cast %64 : vector<64x16xbf16> to vector<2x32x16xbf16>
    %cst_21 = arith.constant dense<0.000000e+00> : vector<2x32x32xf32>
    %66 = tpu.matmul %61, %63, %cst_21 {dimension_numbers = #tpu.dot_dimension_numbers<[2], [2], [1], [1], [0, 0, 0, 1, 1, 1], [0], [0]>} : vector<2x32x16xbf16>, vector<2x32x16xbf16>, vector<2x32x32xf32> -> vector<2x32x32xf32>
    %cst_22 = arith.constant 2.500000e-01 : f32
    %67 = vector.broadcast %cst_22 : f32 to vector<2x32x32xf32>
    %68 = arith.mulf %66, %67 : vector<2x32x32xf32>
    %cst_23 = arith.constant dense<0xFF800000> : vector<2x32xf32>
    %69 = vector.multi_reduction <maximumf>, %68, %cst_23 [2] : vector<2x32x32xf32> to vector<2x32xf32>
    %70 = vector.shape_cast %69 : vector<2x32xf32> to vector<2x32x1xf32>
    %71 = vector.broadcast %70 : vector<2x32x1xf32> to vector<2x32x32xf32>
    %72 = arith.subf %68, %71 : vector<2x32x32xf32>
    %73 = math.exp %72 : vector<2x32x32xf32>
    %cst_24 = arith.constant dense<0.000000e+00> : vector<2x32xf32>
    %74 = vector.multi_reduction <add>, %73, %cst_24 [2] : vector<2x32x32xf32> to vector<2x32xf32>
    %75 = vector.shape_cast %74 : vector<2x32xf32> to vector<2x32x1xf32>
    %76 = tpu.reciprocal %75 {approx = true} : vector<2x32x1xf32> -> vector<2x32x1xf32>
    %77 = vector.broadcast %76 : vector<2x32x1xf32> to vector<2x32x32xf32>
    %78 = arith.mulf %73, %77 : vector<2x32x32xf32>
    %79 = arith.truncf %78 : vector<2x32x32xf32> to vector<2x32x32xbf16>
    %cst_25 = arith.constant dense<0.000000e+00> : vector<2x32x16xf32>
    %80 = tpu.matmul %79, %65, %cst_25 {dimension_numbers = #tpu.dot_dimension_numbers<[2], [1], [1], [2], [0, 0, 0, 1, 1, 2], [0], [0]>} : vector<2x32x32xbf16>, vector<2x32x16xbf16>, vector<2x32x16xf32> -> vector<2x32x16xf32>
    %81 = vector.shape_cast %80 : vector<2x32x16xf32> to vector<64x16xf32>
    %82 = arith.truncf %81 : vector<64x16xf32> to vector<64x16xbf16>
    %c32 = arith.constant 32 : index
    %c0_26 = arith.constant 0 : index
    %83 = vector.load %arg4[%c32, %c0_26] : memref<128x128xbf16, #tpu.memory_space<vmem>>, vector<16x128xbf16>
    %cst_27 = arith.constant dense<0.000000e+00> : vector<64x128xf32>
    %84 = tpu.matmul %82, %83, %cst_27 {dimension_numbers = #tpu.dot_dimension_numbers<[1], [0], [0], [1], [0, 0, 1, 1], [], []>} : vector<64x16xbf16>, vector<16x128xbf16>, vector<64x128xf32> -> vector<64x128xf32>
    %85 = arith.addf %59, %84 : vector<64x128xf32>
    %86 = vector.extract_strided_slice %8 {offsets = [0, 48], sizes = [64, 16], strides = [1, 1]} : vector<64x384xbf16> to vector<64x16xbf16>
    %87 = vector.shape_cast %86 : vector<64x16xbf16> to vector<2x32x16xbf16>
    %88 = vector.extract_strided_slice %8 {offsets = [0, 176], sizes = [64, 16], strides = [1, 1]} : vector<64x384xbf16> to vector<64x16xbf16>
    %89 = vector.shape_cast %88 : vector<64x16xbf16> to vector<2x32x16xbf16>
    %90 = vector.extract_strided_slice %8 {offsets = [0, 304], sizes = [64, 16], strides = [1, 1]} : vector<64x384xbf16> to vector<64x16xbf16>
    %91 = vector.shape_cast %90 : vector<64x16xbf16> to vector<2x32x16xbf16>
    %cst_28 = arith.constant dense<0.000000e+00> : vector<2x32x32xf32>
    %92 = tpu.matmul %87, %89, %cst_28 {dimension_numbers = #tpu.dot_dimension_numbers<[2], [2], [1], [1], [0, 0, 0, 1, 1, 1], [0], [0]>} : vector<2x32x16xbf16>, vector<2x32x16xbf16>, vector<2x32x32xf32> -> vector<2x32x32xf32>
    %cst_29 = arith.constant 2.500000e-01 : f32
    %93 = vector.broadcast %cst_29 : f32 to vector<2x32x32xf32>
    %94 = arith.mulf %92, %93 : vector<2x32x32xf32>
    %cst_30 = arith.constant dense<0xFF800000> : vector<2x32xf32>
    %95 = vector.multi_reduction <maximumf>, %94, %cst_30 [2] : vector<2x32x32xf32> to vector<2x32xf32>
    %96 = vector.shape_cast %95 : vector<2x32xf32> to vector<2x32x1xf32>
    %97 = vector.broadcast %96 : vector<2x32x1xf32> to vector<2x32x32xf32>
    %98 = arith.subf %94, %97 : vector<2x32x32xf32>
    %99 = math.exp %98 : vector<2x32x32xf32>
    %cst_31 = arith.constant dense<0.000000e+00> : vector<2x32xf32>
    %100 = vector.multi_reduction <add>, %99, %cst_31 [2] : vector<2x32x32xf32> to vector<2x32xf32>
    %101 = vector.shape_cast %100 : vector<2x32xf32> to vector<2x32x1xf32>
    %102 = tpu.reciprocal %101 {approx = true} : vector<2x32x1xf32> -> vector<2x32x1xf32>
    %103 = vector.broadcast %102 : vector<2x32x1xf32> to vector<2x32x32xf32>
    %104 = arith.mulf %99, %103 : vector<2x32x32xf32>
    %105 = arith.truncf %104 : vector<2x32x32xf32> to vector<2x32x32xbf16>
    %cst_32 = arith.constant dense<0.000000e+00> : vector<2x32x16xf32>
    %106 = tpu.matmul %105, %91, %cst_32 {dimension_numbers = #tpu.dot_dimension_numbers<[2], [1], [1], [2], [0, 0, 0, 1, 1, 2], [0], [0]>} : vector<2x32x32xbf16>, vector<2x32x16xbf16>, vector<2x32x16xf32> -> vector<2x32x16xf32>
    %107 = vector.shape_cast %106 : vector<2x32x16xf32> to vector<64x16xf32>
    %108 = arith.truncf %107 : vector<64x16xf32> to vector<64x16xbf16>
    %c48 = arith.constant 48 : index
    %c0_33 = arith.constant 0 : index
    %109 = vector.load %arg4[%c48, %c0_33] : memref<128x128xbf16, #tpu.memory_space<vmem>>, vector<16x128xbf16>
    %cst_34 = arith.constant dense<0.000000e+00> : vector<64x128xf32>
    %110 = tpu.matmul %108, %109, %cst_34 {dimension_numbers = #tpu.dot_dimension_numbers<[1], [0], [0], [1], [0, 0, 1, 1], [], []>} : vector<64x16xbf16>, vector<16x128xbf16>, vector<64x128xf32> -> vector<64x128xf32>
    %111 = arith.addf %85, %110 : vector<64x128xf32>
    %112 = vector.extract_strided_slice %8 {offsets = [0, 64], sizes = [64, 16], strides = [1, 1]} : vector<64x384xbf16> to vector<64x16xbf16>
    %113 = vector.shape_cast %112 : vector<64x16xbf16> to vector<2x32x16xbf16>
    %114 = vector.extract_strided_slice %8 {offsets = [0, 192], sizes = [64, 16], strides = [1, 1]} : vector<64x384xbf16> to vector<64x16xbf16>
    %115 = vector.shape_cast %114 : vector<64x16xbf16> to vector<2x32x16xbf16>
    %116 = vector.extract_strided_slice %8 {offsets = [0, 320], sizes = [64, 16], strides = [1, 1]} : vector<64x384xbf16> to vector<64x16xbf16>
    %117 = vector.shape_cast %116 : vector<64x16xbf16> to vector<2x32x16xbf16>
    %cst_35 = arith.constant dense<0.000000e+00> : vector<2x32x32xf32>
    %118 = tpu.matmul %113, %115, %cst_35 {dimension_numbers = #tpu.dot_dimension_numbers<[2], [2], [1], [1], [0, 0, 0, 1, 1, 1], [0], [0]>} : vector<2x32x16xbf16>, vector<2x32x16xbf16>, vector<2x32x32xf32> -> vector<2x32x32xf32>
    %cst_36 = arith.constant 2.500000e-01 : f32
    %119 = vector.broadcast %cst_36 : f32 to vector<2x32x32xf32>
    %120 = arith.mulf %118, %119 : vector<2x32x32xf32>
    %cst_37 = arith.constant dense<0xFF800000> : vector<2x32xf32>
    %121 = vector.multi_reduction <maximumf>, %120, %cst_37 [2] : vector<2x32x32xf32> to vector<2x32xf32>
    %122 = vector.shape_cast %121 : vector<2x32xf32> to vector<2x32x1xf32>
    %123 = vector.broadcast %122 : vector<2x32x1xf32> to vector<2x32x32xf32>
    %124 = arith.subf %120, %123 : vector<2x32x32xf32>
    %125 = math.exp %124 : vector<2x32x32xf32>
    %cst_38 = arith.constant dense<0.000000e+00> : vector<2x32xf32>
    %126 = vector.multi_reduction <add>, %125, %cst_38 [2] : vector<2x32x32xf32> to vector<2x32xf32>
    %127 = vector.shape_cast %126 : vector<2x32xf32> to vector<2x32x1xf32>
    %128 = tpu.reciprocal %127 {approx = true} : vector<2x32x1xf32> -> vector<2x32x1xf32>
    %129 = vector.broadcast %128 : vector<2x32x1xf32> to vector<2x32x32xf32>
    %130 = arith.mulf %125, %129 : vector<2x32x32xf32>
    %131 = arith.truncf %130 : vector<2x32x32xf32> to vector<2x32x32xbf16>
    %cst_39 = arith.constant dense<0.000000e+00> : vector<2x32x16xf32>
    %132 = tpu.matmul %131, %117, %cst_39 {dimension_numbers = #tpu.dot_dimension_numbers<[2], [1], [1], [2], [0, 0, 0, 1, 1, 2], [0], [0]>} : vector<2x32x32xbf16>, vector<2x32x16xbf16>, vector<2x32x16xf32> -> vector<2x32x16xf32>
    %133 = vector.shape_cast %132 : vector<2x32x16xf32> to vector<64x16xf32>
    %134 = arith.truncf %133 : vector<64x16xf32> to vector<64x16xbf16>
    %c64 = arith.constant 64 : index
    %c0_40 = arith.constant 0 : index
    %135 = vector.load %arg4[%c64, %c0_40] : memref<128x128xbf16, #tpu.memory_space<vmem>>, vector<16x128xbf16>
    %cst_41 = arith.constant dense<0.000000e+00> : vector<64x128xf32>
    %136 = tpu.matmul %134, %135, %cst_41 {dimension_numbers = #tpu.dot_dimension_numbers<[1], [0], [0], [1], [0, 0, 1, 1], [], []>} : vector<64x16xbf16>, vector<16x128xbf16>, vector<64x128xf32> -> vector<64x128xf32>
    %137 = arith.addf %111, %136 : vector<64x128xf32>
    %138 = vector.extract_strided_slice %8 {offsets = [0, 80], sizes = [64, 16], strides = [1, 1]} : vector<64x384xbf16> to vector<64x16xbf16>
    %139 = vector.shape_cast %138 : vector<64x16xbf16> to vector<2x32x16xbf16>
    %140 = vector.extract_strided_slice %8 {offsets = [0, 208], sizes = [64, 16], strides = [1, 1]} : vector<64x384xbf16> to vector<64x16xbf16>
    %141 = vector.shape_cast %140 : vector<64x16xbf16> to vector<2x32x16xbf16>
    %142 = vector.extract_strided_slice %8 {offsets = [0, 336], sizes = [64, 16], strides = [1, 1]} : vector<64x384xbf16> to vector<64x16xbf16>
    %143 = vector.shape_cast %142 : vector<64x16xbf16> to vector<2x32x16xbf16>
    %cst_42 = arith.constant dense<0.000000e+00> : vector<2x32x32xf32>
    %144 = tpu.matmul %139, %141, %cst_42 {dimension_numbers = #tpu.dot_dimension_numbers<[2], [2], [1], [1], [0, 0, 0, 1, 1, 1], [0], [0]>} : vector<2x32x16xbf16>, vector<2x32x16xbf16>, vector<2x32x32xf32> -> vector<2x32x32xf32>
    %cst_43 = arith.constant 2.500000e-01 : f32
    %145 = vector.broadcast %cst_43 : f32 to vector<2x32x32xf32>
    %146 = arith.mulf %144, %145 : vector<2x32x32xf32>
    %cst_44 = arith.constant dense<0xFF800000> : vector<2x32xf32>
    %147 = vector.multi_reduction <maximumf>, %146, %cst_44 [2] : vector<2x32x32xf32> to vector<2x32xf32>
    %148 = vector.shape_cast %147 : vector<2x32xf32> to vector<2x32x1xf32>
    %149 = vector.broadcast %148 : vector<2x32x1xf32> to vector<2x32x32xf32>
    %150 = arith.subf %146, %149 : vector<2x32x32xf32>
    %151 = math.exp %150 : vector<2x32x32xf32>
    %cst_45 = arith.constant dense<0.000000e+00> : vector<2x32xf32>
    %152 = vector.multi_reduction <add>, %151, %cst_45 [2] : vector<2x32x32xf32> to vector<2x32xf32>
    %153 = vector.shape_cast %152 : vector<2x32xf32> to vector<2x32x1xf32>
    %154 = tpu.reciprocal %153 {approx = true} : vector<2x32x1xf32> -> vector<2x32x1xf32>
    %155 = vector.broadcast %154 : vector<2x32x1xf32> to vector<2x32x32xf32>
    %156 = arith.mulf %151, %155 : vector<2x32x32xf32>
    %157 = arith.truncf %156 : vector<2x32x32xf32> to vector<2x32x32xbf16>
    %cst_46 = arith.constant dense<0.000000e+00> : vector<2x32x16xf32>
    %158 = tpu.matmul %157, %143, %cst_46 {dimension_numbers = #tpu.dot_dimension_numbers<[2], [1], [1], [2], [0, 0, 0, 1, 1, 2], [0], [0]>} : vector<2x32x32xbf16>, vector<2x32x16xbf16>, vector<2x32x16xf32> -> vector<2x32x16xf32>
    %159 = vector.shape_cast %158 : vector<2x32x16xf32> to vector<64x16xf32>
    %160 = arith.truncf %159 : vector<64x16xf32> to vector<64x16xbf16>
    %c80 = arith.constant 80 : index
    %c0_47 = arith.constant 0 : index
    %161 = vector.load %arg4[%c80, %c0_47] : memref<128x128xbf16, #tpu.memory_space<vmem>>, vector<16x128xbf16>
    %cst_48 = arith.constant dense<0.000000e+00> : vector<64x128xf32>
    %162 = tpu.matmul %160, %161, %cst_48 {dimension_numbers = #tpu.dot_dimension_numbers<[1], [0], [0], [1], [0, 0, 1, 1], [], []>} : vector<64x16xbf16>, vector<16x128xbf16>, vector<64x128xf32> -> vector<64x128xf32>
    %163 = arith.addf %137, %162 : vector<64x128xf32>
    %164 = vector.extract_strided_slice %8 {offsets = [0, 96], sizes = [64, 16], strides = [1, 1]} : vector<64x384xbf16> to vector<64x16xbf16>
    %165 = vector.shape_cast %164 : vector<64x16xbf16> to vector<2x32x16xbf16>
    %166 = vector.extract_strided_slice %8 {offsets = [0, 224], sizes = [64, 16], strides = [1, 1]} : vector<64x384xbf16> to vector<64x16xbf16>
    %167 = vector.shape_cast %166 : vector<64x16xbf16> to vector<2x32x16xbf16>
    %168 = vector.extract_strided_slice %8 {offsets = [0, 352], sizes = [64, 16], strides = [1, 1]} : vector<64x384xbf16> to vector<64x16xbf16>
    %169 = vector.shape_cast %168 : vector<64x16xbf16> to vector<2x32x16xbf16>
    %cst_49 = arith.constant dense<0.000000e+00> : vector<2x32x32xf32>
    %170 = tpu.matmul %165, %167, %cst_49 {dimension_numbers = #tpu.dot_dimension_numbers<[2], [2], [1], [1], [0, 0, 0, 1, 1, 1], [0], [0]>} : vector<2x32x16xbf16>, vector<2x32x16xbf16>, vector<2x32x32xf32> -> vector<2x32x32xf32>
    %cst_50 = arith.constant 2.500000e-01 : f32
    %171 = vector.broadcast %cst_50 : f32 to vector<2x32x32xf32>
    %172 = arith.mulf %170, %171 : vector<2x32x32xf32>
    %cst_51 = arith.constant dense<0xFF800000> : vector<2x32xf32>
    %173 = vector.multi_reduction <maximumf>, %172, %cst_51 [2] : vector<2x32x32xf32> to vector<2x32xf32>
    %174 = vector.shape_cast %173 : vector<2x32xf32> to vector<2x32x1xf32>
    %175 = vector.broadcast %174 : vector<2x32x1xf32> to vector<2x32x32xf32>
    %176 = arith.subf %172, %175 : vector<2x32x32xf32>
    %177 = math.exp %176 : vector<2x32x32xf32>
    %cst_52 = arith.constant dense<0.000000e+00> : vector<2x32xf32>
    %178 = vector.multi_reduction <add>, %177, %cst_52 [2] : vector<2x32x32xf32> to vector<2x32xf32>
    %179 = vector.shape_cast %178 : vector<2x32xf32> to vector<2x32x1xf32>
    %180 = tpu.reciprocal %179 {approx = true} : vector<2x32x1xf32> -> vector<2x32x1xf32>
    %181 = vector.broadcast %180 : vector<2x32x1xf32> to vector<2x32x32xf32>
    %182 = arith.mulf %177, %181 : vector<2x32x32xf32>
    %183 = arith.truncf %182 : vector<2x32x32xf32> to vector<2x32x32xbf16>
    %cst_53 = arith.constant dense<0.000000e+00> : vector<2x32x16xf32>
    %184 = tpu.matmul %183, %169, %cst_53 {dimension_numbers = #tpu.dot_dimension_numbers<[2], [1], [1], [2], [0, 0, 0, 1, 1, 2], [0], [0]>} : vector<2x32x32xbf16>, vector<2x32x16xbf16>, vector<2x32x16xf32> -> vector<2x32x16xf32>
    %185 = vector.shape_cast %184 : vector<2x32x16xf32> to vector<64x16xf32>
    %186 = arith.truncf %185 : vector<64x16xf32> to vector<64x16xbf16>
    %c96 = arith.constant 96 : index
    %c0_54 = arith.constant 0 : index
    %187 = vector.load %arg4[%c96, %c0_54] : memref<128x128xbf16, #tpu.memory_space<vmem>>, vector<16x128xbf16>
    %cst_55 = arith.constant dense<0.000000e+00> : vector<64x128xf32>
    %188 = tpu.matmul %186, %187, %cst_55 {dimension_numbers = #tpu.dot_dimension_numbers<[1], [0], [0], [1], [0, 0, 1, 1], [], []>} : vector<64x16xbf16>, vector<16x128xbf16>, vector<64x128xf32> -> vector<64x128xf32>
    %189 = arith.addf %163, %188 : vector<64x128xf32>
    %190 = vector.extract_strided_slice %8 {offsets = [0, 112], sizes = [64, 16], strides = [1, 1]} : vector<64x384xbf16> to vector<64x16xbf16>
    %191 = vector.shape_cast %190 : vector<64x16xbf16> to vector<2x32x16xbf16>
    %192 = vector.extract_strided_slice %8 {offsets = [0, 240], sizes = [64, 16], strides = [1, 1]} : vector<64x384xbf16> to vector<64x16xbf16>
    %193 = vector.shape_cast %192 : vector<64x16xbf16> to vector<2x32x16xbf16>
    %194 = vector.extract_strided_slice %8 {offsets = [0, 368], sizes = [64, 16], strides = [1, 1]} : vector<64x384xbf16> to vector<64x16xbf16>
    %195 = vector.shape_cast %194 : vector<64x16xbf16> to vector<2x32x16xbf16>
    %cst_56 = arith.constant dense<0.000000e+00> : vector<2x32x32xf32>
    %196 = tpu.matmul %191, %193, %cst_56 {dimension_numbers = #tpu.dot_dimension_numbers<[2], [2], [1], [1], [0, 0, 0, 1, 1, 1], [0], [0]>} : vector<2x32x16xbf16>, vector<2x32x16xbf16>, vector<2x32x32xf32> -> vector<2x32x32xf32>
    %cst_57 = arith.constant 2.500000e-01 : f32
    %197 = vector.broadcast %cst_57 : f32 to vector<2x32x32xf32>
    %198 = arith.mulf %196, %197 : vector<2x32x32xf32>
    %cst_58 = arith.constant dense<0xFF800000> : vector<2x32xf32>
    %199 = vector.multi_reduction <maximumf>, %198, %cst_58 [2] : vector<2x32x32xf32> to vector<2x32xf32>
    %200 = vector.shape_cast %199 : vector<2x32xf32> to vector<2x32x1xf32>
    %201 = vector.broadcast %200 : vector<2x32x1xf32> to vector<2x32x32xf32>
    %202 = arith.subf %198, %201 : vector<2x32x32xf32>
    %203 = math.exp %202 : vector<2x32x32xf32>
    %cst_59 = arith.constant dense<0.000000e+00> : vector<2x32xf32>
    %204 = vector.multi_reduction <add>, %203, %cst_59 [2] : vector<2x32x32xf32> to vector<2x32xf32>
    %205 = vector.shape_cast %204 : vector<2x32xf32> to vector<2x32x1xf32>
    %206 = tpu.reciprocal %205 {approx = true} : vector<2x32x1xf32> -> vector<2x32x1xf32>
    %207 = vector.broadcast %206 : vector<2x32x1xf32> to vector<2x32x32xf32>
    %208 = arith.mulf %203, %207 : vector<2x32x32xf32>
    %209 = arith.truncf %208 : vector<2x32x32xf32> to vector<2x32x32xbf16>
    %cst_60 = arith.constant dense<0.000000e+00> : vector<2x32x16xf32>
    %210 = tpu.matmul %209, %195, %cst_60 {dimension_numbers = #tpu.dot_dimension_numbers<[2], [1], [1], [2], [0, 0, 0, 1, 1, 2], [0], [0]>} : vector<2x32x32xbf16>, vector<2x32x16xbf16>, vector<2x32x16xf32> -> vector<2x32x16xf32>
    %211 = vector.shape_cast %210 : vector<2x32x16xf32> to vector<64x16xf32>
    %212 = arith.truncf %211 : vector<64x16xf32> to vector<64x16xbf16>
    %c112 = arith.constant 112 : index
    %c0_61 = arith.constant 0 : index
    %213 = vector.load %arg4[%c112, %c0_61] : memref<128x128xbf16, #tpu.memory_space<vmem>>, vector<16x128xbf16>
    %cst_62 = arith.constant dense<0.000000e+00> : vector<64x128xf32>
    %214 = tpu.matmul %212, %213, %cst_62 {dimension_numbers = #tpu.dot_dimension_numbers<[1], [0], [0], [1], [0, 0, 1, 1], [], []>} : vector<64x16xbf16>, vector<16x128xbf16>, vector<64x128xf32> -> vector<64x128xf32>
    %215 = arith.addf %189, %214 : vector<64x128xf32>
    %216 = arith.addf %1, %215 : vector<64x128xf32>
    %c0_63 = arith.constant 0 : index
    %c0_64 = arith.constant 0 : index
    %217 = vector.load %arg5[%c0_63, %c0_64] : memref<1x128xf32, #tpu.memory_space<vmem>>, vector<1x128xf32>
    %218 = vector.broadcast %217 : vector<1x128xf32> to vector<64x128xf32>
    %219 = arith.addf %216, %218 : vector<64x128xf32>
    %220 = tpu.iota {dimensions = array<i32: 0>} : vector<64x1xi32>
    %c0_i32 = arith.constant 0 : i32
    %221 = vector.broadcast %c0_i32 : i32 to vector<64x1xi32>
    %222 = arith.cmpi eq, %220, %221 : vector<64x1xi32>
    %c32_i32 = arith.constant 32 : i32
    %223 = vector.broadcast %c32_i32 : i32 to vector<64x1xi32>
    %224 = arith.cmpi eq, %220, %223 : vector<64x1xi32>
    %225 = arith.ori %222, %224 : vector<64x1xi1>
    %c31_i32 = arith.constant 31 : i32
    %226 = vector.broadcast %c31_i32 : i32 to vector<64x1xi32>
    %227 = arith.cmpi eq, %220, %226 : vector<64x1xi32>
    %c63_i32 = arith.constant 63 : i32
    %228 = vector.broadcast %c63_i32 : i32 to vector<64x1xi32>
    %229 = arith.cmpi eq, %220, %228 : vector<64x1xi32>
    %230 = arith.ori %227, %229 : vector<64x1xi1>
    %c1_i32 = arith.constant 1 : i32
    %231 = tpu.dynamic_rotate %219 by %c1_i32 dim 0 : vector<64x128xf32>, i32 -> vector<64x128xf32>
    %cst_65 = arith.constant 0.000000e+00 : f32
    %232 = vector.shape_cast %225 : vector<64x1xi1> to vector<64x1xi1>
    %233 = vector.broadcast %232 : vector<64x1xi1> to vector<64x128xi1>
    %234 = vector.broadcast %cst_65 : f32 to vector<64x128xf32>
    %235 = arith.select %233, %234, %231 : vector<64x128xi1>, vector<64x128xf32>
    %c63_i32_66 = arith.constant 63 : i32
    %236 = tpu.dynamic_rotate %219 by %c63_i32_66 dim 0 : vector<64x128xf32>, i32 -> vector<64x128xf32>
    %cst_67 = arith.constant 0.000000e+00 : f32
    %237 = vector.shape_cast %230 : vector<64x1xi1> to vector<64x1xi1>
    %238 = vector.broadcast %237 : vector<64x1xi1> to vector<64x128xi1>
    %239 = vector.broadcast %cst_67 : f32 to vector<64x128xf32>
    %240 = arith.select %238, %239, %236 : vector<64x128xi1>, vector<64x128xf32>
    %241 = arith.truncf %235 : vector<64x128xf32> to vector<64x128xbf16>
    %242 = arith.truncf %219 : vector<64x128xf32> to vector<64x128xbf16>
    %243 = arith.truncf %240 : vector<64x128xf32> to vector<64x128xbf16>
    %244 = tpu.concatenate %241, %242, %243 in 1 : vector<64x128xbf16>, vector<64x128xbf16>, vector<64x128xbf16> -> vector<64x384xbf16>
    %c0_68 = arith.constant 0 : index
    %c0_69 = arith.constant 0 : index
    %245 = vector.load %arg6[%c0_68, %c0_69] : memref<384x256xbf16, #tpu.memory_space<vmem>>, vector<384x256xbf16>
    %cst_70 = arith.constant dense<0.000000e+00> : vector<64x256xf32>
    %246 = tpu.matmul %244, %245, %cst_70 {dimension_numbers = #tpu.dot_dimension_numbers<[1], [0], [0], [1], [0, 0, 1, 1], [], []>} : vector<64x384xbf16>, vector<384x256xbf16>, vector<64x256xf32> -> vector<64x256xf32>
    %c0_71 = arith.constant 0 : index
    %c0_72 = arith.constant 0 : index
    %247 = vector.load %arg7[%c0_71, %c0_72] : memref<1x256xf32, #tpu.memory_space<vmem>>, vector<1x256xf32>
    %248 = vector.broadcast %247 : vector<1x256xf32> to vector<64x256xf32>
    %249 = arith.addf %246, %248 : vector<64x256xf32>
    %cst_73 = arith.constant 0.000000e+00 : f32
    %250 = vector.broadcast %cst_73 : f32 to vector<64x256xf32>
    %251 = arith.maximumf %249, %250 : vector<64x256xf32>
    %c1_i32_74 = arith.constant 1 : i32
    %252 = tpu.dynamic_rotate %251 by %c1_i32_74 dim 0 : vector<64x256xf32>, i32 -> vector<64x256xf32>
    %cst_75 = arith.constant 0.000000e+00 : f32
    %253 = vector.shape_cast %225 : vector<64x1xi1> to vector<64x1xi1>
    %254 = vector.broadcast %253 : vector<64x1xi1> to vector<64x256xi1>
    %255 = vector.broadcast %cst_75 : f32 to vector<64x256xf32>
    %256 = arith.select %254, %255, %252 : vector<64x256xi1>, vector<64x256xf32>
    %c63_i32_76 = arith.constant 63 : i32
    %257 = tpu.dynamic_rotate %251 by %c63_i32_76 dim 0 : vector<64x256xf32>, i32 -> vector<64x256xf32>
    %cst_77 = arith.constant 0.000000e+00 : f32
    %258 = vector.shape_cast %230 : vector<64x1xi1> to vector<64x1xi1>
    %259 = vector.broadcast %258 : vector<64x1xi1> to vector<64x256xi1>
    %260 = vector.broadcast %cst_77 : f32 to vector<64x256xf32>
    %261 = arith.select %259, %260, %257 : vector<64x256xi1>, vector<64x256xf32>
    %262 = arith.truncf %256 : vector<64x256xf32> to vector<64x256xbf16>
    %263 = arith.truncf %251 : vector<64x256xf32> to vector<64x256xbf16>
    %264 = arith.truncf %261 : vector<64x256xf32> to vector<64x256xbf16>
    %265 = tpu.concatenate %262, %263, %264 in 1 : vector<64x256xbf16>, vector<64x256xbf16>, vector<64x256xbf16> -> vector<64x768xbf16>
    %c0_78 = arith.constant 0 : index
    %c0_79 = arith.constant 0 : index
    %266 = vector.load %arg8[%c0_78, %c0_79] : memref<768x128xbf16, #tpu.memory_space<vmem>>, vector<768x128xbf16>
    %cst_80 = arith.constant dense<0.000000e+00> : vector<64x128xf32>
    %267 = tpu.matmul %265, %266, %cst_80 {dimension_numbers = #tpu.dot_dimension_numbers<[1], [0], [0], [1], [0, 0, 1, 1], [], []>} : vector<64x768xbf16>, vector<768x128xbf16>, vector<64x128xf32> -> vector<64x128xf32>
    %c0_81 = arith.constant 0 : index
    %c0_82 = arith.constant 0 : index
    %268 = vector.load %arg9[%c0_81, %c0_82] : memref<1x128xf32, #tpu.memory_space<vmem>>, vector<1x128xf32>
    %269 = vector.broadcast %268 : vector<1x128xf32> to vector<64x128xf32>
    %270 = arith.addf %267, %269 : vector<64x128xf32>
    %271 = arith.addf %219, %270 : vector<64x128xf32>
    %272 = vector.shape_cast %271 : vector<64x128xf32> to vector<2x32x128xf32>
    %c0_83 = arith.constant 0 : index
    %c0_84 = arith.constant 0 : index
    %c0_85 = arith.constant 0 : index
    %273 = vector.load %arg10[%c0_83, %c0_84, %c0_85] : memref<2x32x128xf32, #tpu.memory_space<vmem>>, vector<2x32x128xf32>
    tpu.vector_store %arg10[%c0_83, %c0_84, %c0_85], %272 {strides = array<i32>} : memref<2x32x128xf32, #tpu.memory_space<vmem>>, vector<2x32x128xf32>,
    return
  }
  func.func @transform_0(%arg0: i32) -> (i32, i32, i32) {
    %c0_i32 = arith.constant 0 : i32
    %c0_i32_0 = arith.constant 0 : i32
    %c0_i32_1 = arith.constant 0 : i32
    return %arg0, %c0_i32, %c0_i32_0 : i32, i32, i32
  }
  func.func @transform_1(%arg0: i32) -> (i32, i32) {
    %c0_i32 = arith.constant 0 : i32
    %c0_i32_0 = arith.constant 0 : i32
    %c0_i32_1 = arith.constant 0 : i32
    return %c0_i32, %c0_i32_0 : i32, i32
  }
  func.func @transform_2(%arg0: i32) -> (i32, i32) {
    %c0_i32 = arith.constant 0 : i32
    %c0_i32_0 = arith.constant 0 : i32
    %c0_i32_1 = arith.constant 0 : i32
    return %c0_i32, %c0_i32_0 : i32, i32
  }
  func.func @transform_3(%arg0: i32) -> (i32, i32) {
    %c0_i32 = arith.constant 0 : i32
    %c0_i32_0 = arith.constant 0 : i32
    %c0_i32_1 = arith.constant 0 : i32
    return %c0_i32, %c0_i32_0 : i32, i32
  }
  func.func @transform_4(%arg0: i32) -> (i32, i32) {
    %c0_i32 = arith.constant 0 : i32
    %c0_i32_0 = arith.constant 0 : i32
    %c0_i32_1 = arith.constant 0 : i32
    return %c0_i32, %c0_i32_0 : i32, i32
  }
  func.func @transform_5(%arg0: i32) -> (i32, i32) {
    %c0_i32 = arith.constant 0 : i32
    %c0_i32_0 = arith.constant 0 : i32
    %c0_i32_1 = arith.constant 0 : i32
    return %c0_i32, %c0_i32_0 : i32, i32
  }
  func.func @transform_6(%arg0: i32) -> (i32, i32) {
    %c0_i32 = arith.constant 0 : i32
    %c0_i32_0 = arith.constant 0 : i32
    %c0_i32_1 = arith.constant 0 : i32
    return %c0_i32, %c0_i32_0 : i32, i32
  }
  func.func @transform_7(%arg0: i32) -> (i32, i32) {
    %c0_i32 = arith.constant 0 : i32
    %c0_i32_0 = arith.constant 0 : i32
    %c0_i32_1 = arith.constant 0 : i32
    return %c0_i32, %c0_i32_0 : i32, i32
  }
  func.func @transform_8(%arg0: i32) -> (i32, i32) {
    %c0_i32 = arith.constant 0 : i32
    %c0_i32_0 = arith.constant 0 : i32
    %c0_i32_1 = arith.constant 0 : i32
    return %c0_i32, %c0_i32_0 : i32, i32
  }
  func.func @transform_9(%arg0: i32) -> (i32, i32, i32) {
    %c0_i32 = arith.constant 0 : i32
    %c0_i32_0 = arith.constant 0 : i32
    %c0_i32_1 = arith.constant 0 : i32
    return %arg0, %c0_i32, %c0_i32_0 : i32, i32, i32
  }
}

</mosaic_0001>

<bundles_post_ra>
// kernel: tpu_custom_call.1
= control target key start
LH: loop header
LB: loop body
LE: loop exit
PB: predicated region body
PF: predicated region fallthrough
CT: control target
= control target key end

     0   :  { %14 = vsyncpa [#allocation3], 0  ;;  %s8430_s0 = inlined_call_operand.hbm [shape: f32[2,32,128], index: 0, kind: input, shape index: {}]   ;;  %s8431_s1 = inlined_call_operand.hbm [shape: bf16[128,384], index: 1, kind: input, shape index: {}]   ;;  %s8432_s2 = inlined_call_operand.vmem [shape: f32[1,384], index: 2, kind: input, shape index: {}]   ;;  %s8433_s3 = inlined_call_operand.hbm [shape: bf16[128,128], index: 3, kind: input, shape index: {}]   ;;  %s8434_s4 = inlined_call_operand.vmem [shape: f32[1,128], index: 4, kind: input, shape index: {}]   ;;  %s8435_s5 = inlined_call_operand.hbm [shape: bf16[384,256], index: 5, kind: input, shape index: {}]   ;;  %s8436_s6 = inlined_call_operand.vmem [shape: f32[1,256], index: 6, kind: input, shape index: {}]   ;;  %s8437_s7 = inlined_call_operand.hbm [shape: bf16[768,128], index: 7, kind: input, shape index: {}]   ;;  %s8438_s8 = inlined_call_operand.vmem [shape: f32[1,128], index: 8, kind: input, shape index: {}]   ;;  %s8439_s9 = inlined_call_operand.hbm [shape: f32[2,32,128], index: 9, kind: output, shape index: {}]  }
   0x1   :  { %15 = vsyncpa [#allocation6], 0 }
   0x2   :  { %16 = vsyncpa [#allocation9], 0 }
   0x3   :  { %17 = vsyncpa [#allocation4], 0  ;;  %s7086_s30 = smov [#allocation5]   ;;  %s6946_s13 = scalar_lea.hbm %s8431_s1, 3072 }
   0x4   :  { %s35_s10 = sshll.u32 %s7086_s30, 4  ;;  %p6947_p0 = scmp.ne.s32.totalorder %s8431_s1, %s6946_s13  ;;  %s36_s10 = int_to_ptr.vmem [resolvable:$true] %s35_s10 }
   0x5   :  { %p6950_p1 = scmp.lt.u32.totalorder %s6946_s13, %s8431_s1 }
   0x7   :  { %p6952_p2 = pnand %p6950_p1, %p6947_p0 }
   0x9   :  { %6955 = shalt.err (!%p6952_p2)
}
   0xa   :  { %s6956_s18 = scalar_lea.vmem %s36_s10, 3072  ;;  %p6961_p4 = scmp.lt.s32.totalorder %s36_s10, %s36_s10 }
   0xb   :  { %p6957_p3 = scmp.ne.s32.totalorder %s36_s10, %s6956_s18  ;;  %p6962_p5 = scmp.lt.s32.totalorder %s6956_s18, %s6956_s18 }
   0xd   :  { %p6963_p6 = por %p6962_p5, %p6961_p4 }
   0xf   :  { %p6964_p7 = pnand %p6963_p6, %p6957_p3 }
  0x11   :  { %6967 = shalt.err (!%p6964_p7)
}
  0x12   :  { %s7087_s19 = smov 192   ;;  %s7088_s20 = smov 12  }
  0x13   :  { %41 = dma.hbm_to_vmem [thread:$0]  %s8431_s1, 3072, %s36_s10, [#allocation6], %s7087_s19, %s7087_s19, %s7088_s20  }
  0x14   :  { %s7089_s23 = smov [#allocation8]   ;;  %s7090_s25 = smov [#allocation2]  }
  0x15   :  { %s63_s24 = sshll.u32 %s7089_s23, 4  ;;  %s23_s26 = sshll.u32 %s7090_s25, 4  ;;  %s64_s24 = int_to_ptr.vmem [resolvable:$true] %s63_s24  ;;  %s24_s26 = int_to_ptr.vmem [resolvable:$true] %s23_s26 }
  0x16   :  { %s6968_s29 = scalar_lea.hbm %s8435_s5, 6144 }
  0x17   :  { %p6969_p8 = scmp.ne.s32.totalorder %s8435_s5, %s6968_s29  ;;  %p6972_p9 = scmp.lt.u32.totalorder %s6968_s29, %s8435_s5 }
  0x19   :  { %p6974_p10 = pnand %p6972_p9, %p6969_p8 }
  0x1b   :  { %6977 = shalt.err (!%p6974_p10)
}
  0x1c   :  { %s6978_s1 = scalar_lea.vmem %s64_s24, 6144  ;;  %p6983_p12 = scmp.lt.s32.totalorder %s64_s24, %s64_s24 }
  0x1d   :  { %p6979_p11 = scmp.ne.s32.totalorder %s64_s24, %s6978_s1  ;;  %p6984_p13 = scmp.lt.s32.totalorder %s6978_s1, %s6978_s1 }
  0x1f   :  { %p6985_p0 = por %p6984_p13, %p6983_p12 }
  0x21   :  { %p6986_p1 = pnand %p6985_p0, %p6979_p11 }
  0x23   :  { %6989 = shalt.err (!%p6986_p1)
}
  0x24   :  { %s7091_s10 = smov 128   ;;  %s7092_s14 = smov 8  }
  0x25   :  { %69 = dma.hbm_to_vmem [thread:$0]  %s8435_s5, 6144, %s64_s24, [#allocation9], %s7091_s10, %s7091_s10, %s7092_s14  }
  0x26   :  { %s6990_s19 = scalar_lea.hbm %s8430_s0, 1024 }
  0x27   :  { %p6991_p2 = scmp.ne.s32.totalorder %s8430_s0, %s6990_s19  ;;  %p6994_p3 = scmp.lt.u32.totalorder %s6990_s19, %s8430_s0 }
  0x29   :  { %p6996_p4 = pnand %p6994_p3, %p6991_p2 }
  0x2b   :  { %6999 = shalt.err (!%p6996_p4)
}
  0x2c   :  { %s7000_s25 = scalar_lea.vmem %s24_s26, 1024  ;;  %p7005_p6 = scmp.lt.s32.totalorder %s24_s26, %s24_s26 }
  0x2d   :  { %p7001_p5 = scmp.ne.s32.totalorder %s24_s26, %s7000_s25  ;;  %p7006_p7 = scmp.lt.s32.totalorder %s7000_s25, %s7000_s25 }
  0x2f   :  { %p7007_p8 = por %p7006_p7, %p7005_p6 }
  0x31   :  { %p7008_p9 = pnand %p7007_p8, %p7001_p5 }
  0x33   :  { %7011 = shalt.err (!%p7008_p9)
}
  0x34   :  { %29 = dma.hbm_to_vmem [thread:$0]  %s8430_s0, 1024, %s24_s26, [#allocation3], %s7091_s10, %s7091_s10, %s7092_s14  }
  0x35   :  { %s7093_s27 = smov [#allocation7]   ;;  %s7012_s11 = scalar_lea.hbm %s8433_s3, 1024 }
  0x36   :  { %s49_s28 = sshll.u32 %s7093_s27, 4  ;;  %p7013_p10 = scmp.ne.s32.totalorder %s8433_s3, %s7012_s11  ;;  %s50_s28 = int_to_ptr.vmem [resolvable:$true] %s49_s28 }
  0x37   :  { %p7016_p11 = scmp.lt.u32.totalorder %s7012_s11, %s8433_s3 }
  0x39   :  { %p7018_p12 = pnand %p7016_p11, %p7013_p10 }
  0x3b   :  { %7021 = shalt.err (!%p7018_p12)
}
  0x3c   :  { %s7022_s16 = scalar_lea.vmem %s50_s28, 1024  ;;  %p7027_p0 = scmp.lt.s32.totalorder %s50_s28, %s50_s28 }
  0x3d   :  { %p7023_p13 = scmp.ne.s32.totalorder %s50_s28, %s7022_s16  ;;  %p7028_p1 = scmp.lt.s32.totalorder %s7022_s16, %s7022_s16 }
  0x3f   :  { %p7029_p2 = por %p7028_p1, %p7027_p0 }
  0x41   :  { %p7030_p3 = pnand %p7029_p2, %p7023_p13 }
  0x43   :  { %7033 = shalt.err (!%p7030_p3)
}
  0x44   :  { %s7094_s0 = smov 64   ;;  %s7095_s26 = smov 4  }
  0x45   :  { %55 = dma.hbm_to_vmem [thread:$0]  %s8433_s3, 1024, %s50_s28, [#allocation6], %s7094_s0, %s7094_s0, %s7095_s26  }
  0x46   :  { %s7096_s19 = smov [#allocation10]   ;;  %s7034_s23 = scalar_lea.hbm %s8437_s7, 6144 }
  0x47   :  { %s77_s20 = sshll.u32 %s7096_s19, 4  ;;  %p7035_p4 = scmp.ne.s32.totalorder %s8437_s7, %s7034_s23  ;;  %s78_s20 = int_to_ptr.vmem [resolvable:$true] %s77_s20 }
  0x48   :  { %p7038_p5 = scmp.lt.u32.totalorder %s7034_s23, %s8437_s7 }
  0x4a   :  { %p7040_p6 = pnand %p7038_p5, %p7035_p4 }
  0x4c   :  { %7043 = shalt.err (!%p7040_p6)
}
  0x4d   :  { %s7044_s29 = scalar_lea.vmem %s78_s20, 6144  ;;  %p7049_p8 = scmp.lt.s32.totalorder %s78_s20, %s78_s20 }
  0x4e   :  { %p7045_p7 = scmp.ne.s32.totalorder %s78_s20, %s7044_s29  ;;  %p7050_p9 = scmp.lt.s32.totalorder %s7044_s29, %s7044_s29 }
  0x50   :  { %p7051_p10 = por %p7050_p9, %p7049_p8 }
  0x52   :  { %p7052_p11 = pnand %p7051_p10, %p7045_p7 }
  0x54   :  { %7055 = shalt.err (!%p7052_p11)
}
  0x55   :  { %83 = dma.hbm_to_vmem [thread:$0]  %s8437_s7, 6144, %s78_s20, [#allocation9], %s7094_s0, %s7094_s0, %s7095_s26  }
  0x56   :  { %7078 = dma.done.wait [#allocation3], 1024  }
  0x57   :  { %7079 = vsyncadd [#allocation3], 4294966272 }
  0x58   :  { %7080 = dma.done.wait [#allocation6], 4096  }
  0x59   :  { %7081 = vsyncadd [#allocation6], 4294963200 }
  0x5a   :  { %7082 = dma.done.wait [#allocation9], 12288  }
  0x5b   :  { %7083 = vsyncadd [#allocation9], 4294955008  ;;  %v7097_v0 = vmov 0   ;;  %v6522_v1 = vld [vmem:[#allocation5 + $0x4] ss:$12 sps:$4 sm:$0xff]   ;;  %v103_v10 = vld [vmem:[#allocation2 + $0x8] sm:$0xff]  ;;  %v148_v37 = vlaneseq }
  0x5c   :  { %323 = vmatprep.mubr.bf16.mxu0 %v7097_v0  ;;  %v6524_v2 = vld [vmem:[#allocation5] ss:$12 sps:$4 sm:$0xff]   ;;  %291 = vmatprep.subr.bf16.mxu0 %v6522_v1  ;;  %v6525_v3 = vld [vmem:[#allocation5 + $0x1c] ss:$12 sps:$4 sm:$0xff]   ;;  %v6527_v4 = vld [vmem:[#allocation5 + $0x18] ss:$12 sps:$4 sm:$0xff]  }
  0x5d   :  { %292 = vmatpush1.bf16.msra.mxu0 %v6524_v2  ;;  %v6528_v5 = vld [vmem:[#allocation5 + $0x34] ss:$12 sps:$4 sm:$0xff]   ;;  %v6530_v6 = vld [vmem:[#allocation5 + $0x30] ss:$12 sps:$4 sm:$0xff]   ;;  %v6531_v7 = vld [vmem:[#allocation5 + $0x4c] ss:$12 sps:$4 sm:$0xff]  }
  0x5e   :  { %293 = vmatprep.subr.bf16.mxu0 %v6525_v3  ;;  %v102_v8 = vld [vmem:[#allocation2] sm:$0xff]  ;;  %v6533_v9 = vld [vmem:[#allocation5 + $0x48] ss:$12 sps:$4 sm:$0xff]   ;;  %v6542_v20 = vld [vmem:[#allocation5 + $0x90] ss:$12 sps:$4 sm:$0xff]   ;;  %v7230_v38 = vshrl.u32 %v148_v37, 7 }
  0x5f   :  { %v6534_v11 = vld [vmem:[#allocation5 + $0x64] ss:$12 sps:$4 sm:$0xff]   ;;  %v110_v12 = vpack.c.bf16 %v103_v10, %v102_v8  ;;  %v6536_v13 = vld [vmem:[#allocation5 + $0x60] ss:$12 sps:$4 sm:$0xff]   ;;  %v6546_v14 = vld [vmem:[#allocation5 + $0x8] ss:$12 sps:$4 sm:$0xff]  }
  0x60   :  { %v6547_v15 = vld [vmem:[#allocation5 + $0x20] ss:$12 sps:$4 sm:$0xff]   ;;  %v6537_v16 = vld [vmem:[#allocation5 + $0x7c] ss:$12 sps:$4 sm:$0xff]   ;;  %6022 = vmatprep.subr.bf16.mxu1 %v6546_v14  ;;  %v6548_v17 = vld [vmem:[#allocation5 + $0x38] ss:$12 sps:$4 sm:$0xff]  }
  0x61   :  { %294 = vmatpush1.bf16.msra.mxu0 %v6527_v4  ;;  %6038 = vmatprep.mubr.bf16.mxu1 %v110_v12  ;;  %v6539_v18 = vld [vmem:[#allocation5 + $0x78] ss:$12 sps:$4 sm:$0xff]   ;;  %v6540_v19 = vld [vmem:[#allocation5 + $0x94] ss:$12 sps:$4 sm:$0xff]   ;;  %v6549_v21 = vld [vmem:[#allocation5 + $0x50] ss:$12 sps:$4 sm:$0xff]  }
  0x62   :  { %295 = vmatprep.subr.bf16.mxu0 %v6528_v5  ;;  %6023 = vmatpush3.bf16.msra.mxu1 %v6546_v14  ;;  %v6543_v22 = vld [vmem:[#allocation5 + $0xac] ss:$12 sps:$4 sm:$0xff]   ;;  %v6550_v23 = vld [vmem:[#allocation5 + $0x68] ss:$12 sps:$4 sm:$0xff]   ;;  %v6553_v29 = vld [vmem:[#allocation5 + $0xb0] ss:$12 sps:$4 sm:$0xff]  }
  0x63   :  { %6024 = vmatprep.subr.bf16.mxu1 %v6547_v15  ;;  %v6545_v24 = vld [vmem:[#allocation5 + $0xa8] ss:$12 sps:$4 sm:$0xff]   ;;  %v6551_v25 = vld [vmem:[#allocation5 + $0x80] ss:$12 sps:$4 sm:$0xff]   ;;  %v6552_v26 = vld [vmem:[#allocation5 + $0x98] ss:$12 sps:$4 sm:$0xff]  }
  0x64   :  { %v104_v27 = vld [vmem:[#allocation2 + $0x10] sm:$0xff]  ;;  %v105_v28 = vld [vmem:[#allocation2 + $0x18] sm:$0xff]  ;;  %v106_v31 = vld [vmem:[#allocation2 + $0x20] sm:$0xff]  ;;  %v150_v39 = vsub.s32 0, %v7230_v38  ;;  %v154_v41 = vsub.s32 1, %v7230_v38  ;;  %vm441_vm0 = vcmask 130048  }
  0x65   :  { %296 = vmatpush1.bf16.msra.mxu0 %v6530_v6  ;;  %v111_v30 = vpack.c.bf16 %v105_v28, %v104_v27  ;;  %v107_v32 = vld [vmem:[#allocation2 + $0x28] sm:$0xff]  ;;  %v108_v34 = vld [vmem:[#allocation2 + $0x30] sm:$0xff]  ;;  %v109_v35 = vld [vmem:[#allocation2 + $0x38] sm:$0xff]  ;;  %v158_v56 = vsub.s32 2, %v7230_v38  ;;  %vm572_vm1 = vcmask 261120   ;;  %s7099_s11 = smov 96  }
  0x66   :  { %297 = vmatprep.subr.bf16.mxu0 %v6531_v7  ;;  %6025 = vmatpush3.bf16.msra.mxu1 %v6547_v15  ;;  %v112_v33 = vpack.c.bf16 %v107_v32, %v106_v31  ;;  %v113_v36 = vpack.c.bf16 %v109_v35, %v108_v34  ;;  %v146_v40 = vld [vmem:[%s8432_s2] sm:$0x7]  ;;  %s7098_s2 = smov 112   ;;  %s7100_s12 = smov 80   ;;  %vm4155_vm2 = vcmp.lt.s32.totalorder %v7230_v38, 1  ;;  %vm5718_vm3 = vcmp.ne.s32.totalorder %v7230_v38, 0 }
  0x67   :  { %6026 = vmatprep.subr.bf16.mxu1 %v6548_v17  ;;  %v7239_v42 = vrot.slane %v146_v40, %v150_v39  ;;  %v7243_v44 = vrot.slane %v146_v40, %v154_v41  ;;  %v159_v1 = vrot.slane %v146_v40, %v158_v56  ;;  %s7101_s13 = smov 48   ;;  %s7102_s1 = smov 32   ;;  %vm7104_vm4 = vmmov 1  }
  0x68   :  { %s7103_s15 = smov 16   ;;  %vm7978_vm5 = vmpackc.low %vm7104_vm4, %vm5718_vm3  ;;  %vm4196_vm8 = vcmp.lt.s32.totalorder %v7230_v38, 7 }
  0x69   :  { %298 = vmatpush1.bf16.msra.mxu0 %v6533_v9 }
  0x6a   :  { %299 = vmatprep.subr.bf16.mxu0 %v6534_v11  ;;  %6027 = vmatpush3.bf16.msra.mxu1 %v6548_v17 }
  0x6b   :  { %6028 = vmatprep.subr.bf16.mxu1 %v6549_v21 }
  0x6d   :  { %300 = vmatpush1.bf16.msra.mxu0 %v6536_v13 }
  0x6e   :  { %301 = vmatprep.subr.bf16.mxu0 %v6537_v16  ;;  %6029 = vmatpush3.bf16.msra.mxu1 %v6549_v21 }
  0x6f   :  { %6030 = vmatprep.subr.bf16.mxu1 %v6550_v23 }
  0x71   :  { %302 = vmatpush1.bf16.msra.mxu0 %v6539_v18 }
  0x72   :  { %303 = vmatprep.subr.bf16.mxu0 %v6540_v19  ;;  %6031 = vmatpush3.bf16.msra.mxu1 %v6550_v23 }
  0x73   :  { %6032 = vmatprep.subr.bf16.mxu1 %v6551_v25 }
  0x75   :  { %304 = vmatpush1.bf16.msra.mxu0 %v6542_v20 }
  0x76   :  { %305 = vmatprep.subr.bf16.mxu0 %v6543_v22  ;;  %6033 = vmatpush3.bf16.msra.mxu1 %v6551_v25 }
  0x77   :  { %6034 = vmatprep.subr.bf16.mxu1 %v6552_v26 }
  0x79   :  { %306 = vmatpush1.bf16.msra.mxu0 %v6545_v24 }
  0x7a   :  { %6035 = vmatpush3.bf16.msra.mxu1 %v6552_v26 }
  0x7b   :  { %6036 = vmatprep.subr.bf16.mxu1 %v6553_v29 }
  0x7c   :  { %324 = vmatmul.mubr.bf16.vlgmr.msra.gmra.mrb[0].mxu0 %v110_v12 }
  0x7d   :  { %333 = vmatprep.mubr.bf16.mxu0 %v7097_v0 }
  0x7e   :  { %6037 = vmatpush3.bf16.msra.mxu1 %v6553_v29 }
  0x81   :  { %6039 = vmatmul.mubr.bf16.vlgmr.msra.gmra.mrb[0].mxu1 %v111_v30 }
  0x82   :  { %6042 = vmatprep.mubr.bf16.mxu1 %v112_v33 }
  0x84   :  { %334 = vmatmul.mubr.bf16.gmra.mrb[4].mxu0 %v111_v30 }
  0x85   :  { %343 = vmatprep.mubr.bf16.mxu0 %v7097_v0 }
  0x89   :  { %6043 = vmatmul.mubr.bf16.gmra.mrb[4].mxu1 %v113_v36 }
  0x8c   :  { %344 = vmatmul.mubr.bf16.gmra.mrb[8].mxu0 %v112_v33 }
  0x8d   :  { %353 = vmatprep.mubr.bf16.mxu0 %v7097_v0 }
  0x94   :  { %354 = vmatmul.mubr.bf16.gmra.mrb[12].mxu0 %v113_v36 }
 0x14f   :  { %v325_v43 = vpop.f32.mrb[0].mxu0 }
 0x150   :  { %v327_v45 = vpop.f32.mrb[1].mxu0  ;;  %v326_v47 = vadd.f32 %v325_v43, %v7239_v42 }
 0x151   :  { %v329_v46 = vpop.f32.mrb[2].mxu0  ;;  %v328_v50 = vadd.f32 %v327_v45, %v7243_v44 }
 0x152   :  { %v330_v48 = vadd.f32 %v329_v46, %v7239_v42  ;;  %v331_v49 = vpop.f32.mrb[3].mxu0 }
 0x153   :  { %v332_v51 = vadd.f32 %v331_v49, %v7243_v44 }
 0x154   :  { %v7249_v52 = vpack.c.bf16 %v330_v48, %v326_v47  ;;  %v6040_v4 = vpop.f32.mrb[0].mxu1 }
 0x155   :  { %v7251_v53 = vpack.c.bf16 %v332_v51, %v328_v50  ;;  %v407_v5 = vadd.f32 %v6040_v4, %v159_v1  ;;  %v398_v6 = vpop.f32.mrb[1].mxu1 }
 0x156   :  { %6050 = vmatprep.mubr.msk.bf16.mxu1 %vm441_vm0, %v7249_v52  ;;  %v399_v9 = vadd.f32 %v398_v6, %v159_v1  ;;  %v6041_v10 = vpop.f32.mrb[2].mxu1 }
 0x157   :  { %v335_v54 = vpop.f32.mrb[4].mxu0  ;;  %6470 = vmatprep.subr.msk.bf16.mxu1 %vm441_vm0, %v7251_v53  ;;  %v449_v55 = vsel %vm441_vm0, %v7251_v53, 0  ;;  %v410_v13 = vadd.f32 %v6041_v10, %v159_v1  ;;  %v401_v14 = vpop.f32.mrb[3].mxu1 }
 0x158   :  { %v337_v57 = vpop.f32.mrb[5].mxu0  ;;  %6047 = vmatpush3.bf16.xpose.msra.mxu1 %v449_v55  ;;  %v336_v59 = vadd.f32 %v335_v54, %v7239_v42  ;;  %v402_v17 = vadd.f32 %v401_v14, %v159_v1 }
 0x159   :  { %v339_v58 = vpop.f32.mrb[6].mxu0  ;;  %v338_v62 = vadd.f32 %v337_v57, %v7243_v44  ;;  %v7275_v20 = vpack.c.bf16 %v410_v13, %v407_v5 }
 0x15a   :  { %v340_v60 = vadd.f32 %v339_v58, %v7239_v42  ;;  %v341_v61 = vpop.f32.mrb[7].mxu0  ;;  %v7278_v22 = vpack.c.bf16 %v402_v17, %v399_v9 }
 0x15b   :  { %v342_v63 = vadd.f32 %v341_v61, %v7243_v44 }
 0x15c   :  { %v7264_v2 = vpack.c.bf16 %v340_v60, %v336_v59  ;;  %v6044_v25 = vpop.f32.mrb[4].mxu1 }
 0x15d   :  { %v7266_v3 = vpack.c.bf16 %v342_v63, %v338_v62  ;;  %v423_v26 = vadd.f32 %v6044_v25, %v159_v1  ;;  %v414_v27 = vpop.f32.mrb[5].mxu1 }
 0x15e   :  { %v415_v30 = vadd.f32 %v414_v27, %v159_v1  ;;  %v6045_v31 = vpop.f32.mrb[6].mxu1 }
 0x15f   :  { %v345_v7 = vpop.f32.mrb[8].mxu0  ;;  %6471 = vmatprep.subr.msk.bf16.mxu1 %vm441_vm0, %v7266_v3  ;;  %v452_v8 = vsel %vm441_vm0, %v7266_v3, 0  ;;  %v426_v34 = vadd.f32 %v6045_v31, %v159_v1  ;;  %v417_v35 = vpop.f32.mrb[7].mxu1 }
 0x160   :  { %v346_v11 = vadd.f32 %v345_v7, %v7239_v42  ;;  %v347_v12 = vpop.f32.mrb[9].mxu0  ;;  %6049 = vmatpush3.bf16.xpose.msra.mxu1 %v452_v8  ;;  %v418_v40 = vadd.f32 %v417_v35, %v159_v1 }
 0x161   :  { %v348_v15 = vadd.f32 %v347_v12, %v7243_v44  ;;  %v349_v16 = vpop.f32.mrb[10].mxu0  ;;  %6062 = vmatprep.subr.bf16.mxu1 %v7278_v22  ;;  %v7298_v46 = vpack.c.bf16 %v426_v34, %v423_v26 }
 0x162   :  { %v350_v18 = vadd.f32 %v349_v16, %v7239_v42  ;;  %v351_v19 = vpop.f32.mrb[11].mxu0  ;;  %v7301_v48 = vpack.c.bf16 %v418_v40, %v415_v30 }
 0x163   :  { %v352_v21 = vadd.f32 %v351_v19, %v7243_v44 }
 0x164   :  { %v7280_v23 = vpack.c.bf16 %v350_v18, %v346_v11 }
 0x165   :  { %v7282_v24 = vpack.c.bf16 %v352_v21, %v348_v15 }
 0x166   :  { %6058 = vmatprep.mubr.msk.bf16.mxu0 %vm441_vm0, %v7280_v23 }
 0x167   :  { %v355_v28 = vpop.f32.mrb[12].mxu0  ;;  %6051 = vmatmul.mubr.msk.bf16.vlgmr.msra.gmra.mrb[8].mxu1 %vm441_vm0, %v7264_v2  ;;  %6472 = vmatprep.subr.msk.bf16.mxu0 %vm441_vm0, %v7282_v24  ;;  %v510_v29 = vsel %vm441_vm0, %v7282_v24, 0 }
 0x168   :  { %v356_v32 = vadd.f32 %v355_v28, %v7239_v42  ;;  %v357_v33 = vpop.f32.mrb[13].mxu0  ;;  %6055 = vmatpush3.bf16.xpose.msra.mxu0 %v510_v29  ;;  %6063 = vmatpush3.bf16.msra.mxu1 %v7278_v22 }
 0x169   :  { %v358_v36 = vadd.f32 %v357_v33, %v7243_v44  ;;  %v359_v37 = vpop.f32.mrb[14].mxu0  ;;  %6064 = vmatprep.subr.bf16.mxu1 %v7275_v20 }
 0x16a   :  { %v360_v43 = vadd.f32 %v359_v37, %v7239_v42  ;;  %v361_v45 = vpop.f32.mrb[15].mxu0 }
 0x16b   :  { %v362_v47 = vadd.f32 %v361_v45, %v7243_v44 }
 0x16c   :  { %v7303_v49 = vpack.c.bf16 %v360_v43, %v356_v32  ;;  %6065 = vmatpush3.bf16.msra.mxu1 %v7275_v20 }
 0x16d   :  { %v7306_v50 = vpack.c.bf16 %v362_v47, %v358_v36  ;;  %6070 = vmatprep.subr.bf16.mxu1 %v7301_v48 }
 0x16f   :  { %6473 = vmatprep.subr.msk.bf16.mxu0 %vm441_vm0, %v7306_v50  ;;  %v513_v42 = vsel %vm441_vm0, %v7306_v50, 0 }
 0x170   :  { %6057 = vmatpush3.bf16.xpose.msra.mxu0 %v513_v42 }
 0x177   :  { %6059 = vmatmul.mubr.msk.bf16.vlgmr.msra.gmra.mrb[16].mxu0 %vm441_vm0, %v7303_v49 }
 0x23a   :  { %v6052_v44 = vpop.f32.mrb[8].mxu1 }
 0x23b   :  { %v566_v51 = vmul.f32 0.25, %v6052_v44  ;;  %v488_v54 = vpop.f32.mrb[9].mxu1 }
 0x23c   :  { %v564_v55 = vmul.f32 0.25, %v488_v54  ;;  %v6053_v56 = vpop.f32.mrb[10].mxu1 }
 0x23d   :  { %v567_v57 = vmul.f32 0.25, %v6053_v56  ;;  %v491_v58 = vpop.f32.mrb[11].mxu1  ;;  %v579_v59 = vsel %vm572_vm1, %v566_v51, -inf }
 0x23e   :  { %v565_v60 = vmul.f32 0.25, %v491_v58  ;;  %580 = vmax.xlane.f32.xlu1 %v579_v59  ;;  %v573_v61 = vsel %vm572_vm1, %v564_v55, -inf }
 0x23f   :  { %574 = vmax.xlane.f32.xlu0 %v573_v61  ;;  %v582_v62 = vsel %vm572_vm1, %v567_v57, -inf }
 0x240   :  { %v576_v63 = vsel %vm572_vm1, %v565_v60, -inf }
 0x242   :  { %583 = vmax.xlane.f32.xlu1 %v582_v62 }
 0x243   :  { %577 = vmax.xlane.f32.xlu0 %v576_v63 }
 0x24a   :  { %v6060_v1 = vpop.f32.mrb[16].mxu0 }
 0x24b   :  { %v549_v4 = vpop.f32.mrb[17].mxu0  ;;  %v570_v5 = vmul.f32 0.25, %v6060_v1 }
 0x24c   :  { %v568_v6 = vmul.f32 0.25, %v549_v4  ;;  %v6061_v7 = vpop.f32.mrb[18].mxu0 }
 0x24d   :  { %v552_v8 = vpop.f32.mrb[19].mxu0  ;;  %v571_v9 = vmul.f32 0.25, %v6061_v7  ;;  %v591_v13 = vsel %vm572_vm1, %v570_v5, -inf }
 0x24e   :  { %v569_v10 = vmul.f32 0.25, %v552_v8  ;;  %v585_v11 = vsel %vm572_vm1, %v568_v6, -inf }
 0x24f   :  { %586 = vmax.xlane.f32.xlu0 %v585_v11  ;;  %v594_v14 = vsel %vm572_vm1, %v571_v9, -inf }
 0x250   :  { %v588_v12 = vsel %vm572_vm1, %v569_v10, -inf }
 0x251   :  { %589 = vmax.xlane.f32.xlu1 %v588_v12 }
 0x253   :  { %592 = vmax.xlane.f32.xlu0 %v591_v13 }
 0x255   :  { %595 = vmax.xlane.f32.xlu1 %v594_v14 }
 0x2cb   :  { %v581_v15 = vpop.xlane.xlu1 %580 }
 0x2cc   :  { %v599_v16 = vsub.f32 %v566_v51, %v581_v15  ;;  %v575_v17 = vpop.xlane.xlu0 %574 }
 0x2cd   :  { %v597_v18 = vsub.f32 %v564_v55, %v575_v17 }
 0x2ce   :  { %v609_v19 = vmul.f32 1.442695, %v599_v16 }
 0x2cf   :  { %v605_v21 = vmul.f32 1.442695, %v597_v18  ;;  %v584_v25 = vpop.xlane.xlu1 %583 }
 0x2d0   :  { %6682 = vpow2.f32 %v609_v19  ;;  %v600_v26 = vsub.f32 %v567_v57, %v584_v25  ;;  %v578_v27 = vpop.xlane.xlu0 %577 }
 0x2d1   :  { %v598_v28 = vsub.f32 %v565_v60, %v578_v27  ;;  %6684 = vpow2.f32 %v605_v21 }
 0x2d2   :  { %v611_v29 = vmul.f32 1.442695, %v600_v26 }
 0x2d3   :  { %v607_v30 = vmul.f32 1.442695, %v598_v28 }
 0x2d4   :  { %6686 = vpow2.f32 %v611_v29 }
 0x2d5   :  { %6688 = vpow2.f32 %v607_v30 }
 0x2da   :  { %v7323_v31 = vpop.eup %6682 }
 0x2db   :  { %v627_v32 = vsel %vm572_vm1, %v7323_v31, 0.0  ;;  %v6685_v33 = vpop.eup %6684 }
 0x2dc   :  { %628 = vadd.xlane.f32.xlu0 %v627_v32  ;;  %v587_v34 = vpop.xlane.xlu0 %586  ;;  %v621_v40 = vsel %vm572_vm1, %v6685_v33, 0.0 }
 0x2dd   :  { %v601_v36 = vsub.f32 %v568_v6, %v587_v34 }
 0x2de   :  { %v6687_v35 = vpop.eup %6686  ;;  %v590_v58 = vpop.xlane.xlu1 %589 }
 0x2df   :  { %v630_v37 = vsel %vm572_vm1, %v6687_v35, 0.0  ;;  %v6689_v43 = vpop.eup %6688  ;;  %v613_v42 = vmul.f32 1.442695, %v601_v36  ;;  %v602_v61 = vsub.f32 %v569_v10, %v590_v58 }
 0x2e0   :  { %631 = vadd.xlane.f32.xlu1 %v630_v37  ;;  %622 = vadd.xlane.f32.xlu0 %v621_v40  ;;  %v593_v45 = vpop.xlane.xlu0 %592  ;;  %v624_v51 = vsel %vm572_vm1, %v6689_v43, 0.0 }
 0x2e1   :  { %v603_v47 = vsub.f32 %v570_v5, %v593_v45  ;;  %v615_v63 = vmul.f32 1.442695, %v602_v61 }
 0x2e2   :  { %v596_v59 = vpop.xlane.xlu1 %595 }
 0x2e3   :  { %v617_v44 = vmul.f32 1.442695, %v603_v47  ;;  %v604_v60 = vsub.f32 %v571_v9, %v596_v59 }
 0x2e4   :  { %625 = vadd.xlane.f32.xlu1 %v624_v51 }
 0x2e5   :  { %6690 = vpow2.f32 %v617_v44  ;;  %v619_v62 = vmul.f32 1.442695, %v604_v60 }
 0x2e6   :  { %6692 = vpow2.f32 %v613_v42 }
 0x2e7   :  { %6694 = vpow2.f32 %v619_v62 }
 0x2e8   :  { %6696 = vpow2.f32 %v615_v63 }
 0x2ef   :  { %v7330_v54 = vpop.eup %6690 }
 0x2f0   :  { %v639_v55 = vsel %vm572_vm1, %v7330_v54, 0.0  ;;  %v7334_v56 = vpop.eup %6692 }
 0x2f1   :  { %640 = vadd.xlane.f32.xlu0 %v639_v55  ;;  %v633_v57 = vsel %vm572_vm1, %v7334_v56, 0.0  ;;  %v6695_v1 = vpop.eup %6694 }
 0x2f2   :  { %v642_v4 = vsel %vm572_vm1, %v6695_v1, 0.0  ;;  %v6697_v5 = vpop.eup %6696 }
 0x2f3   :  { %v636_v6 = vsel %vm572_vm1, %v6697_v5, 0.0 }
 0x2f5   :  { %791 = vrot.lane.b32.xlu1 %v7266_v3, %s7098_s2  ;;  %634 = vadd.xlane.f32.xlu0 %v633_v57 }
 0x2f9   :  { %862 = vrot.lane.b32.xlu1 %v7282_v24, %s7098_s2 }
 0x30b   :  { %789 = vrot.lane.b32.xlu0 %v7251_v53, %s7098_s2 }
 0x30f   :  { %785 = vrot.lane.b32.xlu0 %v7264_v2, %s7098_s2 }
 0x313   :  { %856 = vrot.lane.b32.xlu0 %v7280_v23, %s7098_s2 }
 0x31d   :  { %643 = vadd.xlane.f32.xlu1 %v642_v4 }
 0x321   :  { %637 = vadd.xlane.f32.xlu1 %v636_v6 }
 0x332   :  { %783 = vrot.lane.b32.xlu1 %v7249_v52, %s7098_s2 }
 0x336   :  { %864 = vrot.lane.b32.xlu1 %v7306_v50, %s7098_s2 }
 0x33a   :  { %858 = vrot.lane.b32.xlu1 %v7303_v49, %s7098_s2 }
 0x369   :  { %v629_v7 = vpop.xlane.xlu0 %628 }
 0x36d   :  { %v632_v8 = vpop.xlane.xlu1 %631  ;;  %v623_v9 = vpop.xlane.xlu0 %622 }
 0x36e   :  { %6698 = vrcp.f32 %v632_v8 }
 0x36f   :  { %6700 = vrcp.f32 %v623_v9 }
 0x370   :  { %6702 = vrcp.f32 %v629_v7 }
 0x371   :  { %v626_v10 = vpop.xlane.xlu1 %625 }
 0x372   :  { %6704 = vrcp.f32 %v626_v10 }
 0x375   :  { %v792_v26 = vpop.permute.xlu1 %791 }
 0x378   :  { %v6699_v11 = vpop.eup %6698 }
 0x379   :  { %v6701_v12 = vpop.eup %6700  ;;  %v656_v15 = vmul.f32 %v6699_v11, %v6687_v35  ;;  %v863_v29 = vpop.permute.xlu1 %862 }
 0x37a   :  { %v6703_v13 = vpop.eup %6702  ;;  %v653_v16 = vmul.f32 %v6701_v12, %v6685_v33  ;;  %v873_v58 = vsel %vm441_vm0, %v863_v29, 0 }
 0x37b   :  { %v655_v18 = vmul.f32 %v6703_v13, %v7323_v31  ;;  %v803_v31 = vsel %vm441_vm0, %v792_v26, 0 }
 0x37c   :  { %v6705_v14 = vpop.eup %6704 }
 0x37d   :  { %v654_v17 = vmul.f32 %v6705_v14, %v6689_v43  ;;  %v662_v25 = vpack.c.bf16 %v656_v15, %v655_v18 }
 0x37e   :  { %v641_v19 = vpop.xlane.xlu0 %640 }
 0x37f   :  { %v661_v21 = vpack.c.bf16 %v654_v17, %v653_v16 }
 0x381   :  { %6066 = vmatprep.mubr.msk.bf16.mxu1 %vm572_vm1, %v661_v21 }
 0x382   :  { %6067 = vmatmul.mubr.msk.bf16.vlgmr.msra.gmra.mrb[12].mxu1 %vm572_vm1, %v662_v25  ;;  %v635_v27 = vpop.xlane.xlu0 %634 }
 0x383   :  { %6071 = vmatpush3.bf16.msra.mxu1 %v7301_v48 }
 0x384   :  { %6072 = vmatprep.subr.bf16.mxu1 %v7298_v46 }
 0x386   :  { %v790_v28 = vpop.permute.xlu0 %789 }
 0x387   :  { %6073 = vmatpush3.bf16.msra.mxu1 %v7298_v46  ;;  %6474 = vmatprep.subr.msk.bf16.mxu0 %vm441_vm0, %v790_v28  ;;  %v800_v30 = vsel %vm441_vm0, %v790_v28, 0 }
 0x388   :  { %6476 = vmatprep.subr.msk.bf16.mxu1 %vm441_vm0, %v863_v29  ;;  %6079 = vmatpush3.bf16.xpose.msra.mxu0 %v800_v30 }
 0x389   :  { %6475 = vmatprep.subr.msk.bf16.mxu0 %vm441_vm0, %v792_v26 }
 0x38a   :  { %v786_v35 = vpop.permute.xlu0 %785 }
 0x38e   :  { %v857_v57 = vpop.permute.xlu0 %856 }
 0x390   :  { %6081 = vmatpush3.bf16.xpose.msra.mxu0 %v803_v31 }
 0x3aa   :  { %v644_v32 = vpop.xlane.xlu1 %643 }
 0x3ab   :  { %6706 = vrcp.f32 %v644_v32 }
 0x3ac   :  { %6708 = vrcp.f32 %v635_v27 }
 0x3ad   :  { %6710 = vrcp.f32 %v641_v19 }
 0x3ae   :  { %v638_v33 = vpop.xlane.xlu1 %637 }
 0x3af   :  { %6712 = vrcp.f32 %v638_v33 }
 0x3b2   :  { %v784_v34 = vpop.permute.xlu1 %783 }
 0x3b3   :  { %6082 = vmatprep.mubr.msk.bf16.mxu0 %vm441_vm0, %v784_v34 }
 0x3b4   :  { %6083 = vmatmul.mubr.msk.bf16.vlgmr.msra.gmra.mrb[20].mxu0 %vm441_vm0, %v786_v35 }
 0x3b5   :  { %v6707_v36 = vpop.eup %6706 }
 0x3b6   :  { %v6709_v37 = vpop.eup %6708  ;;  %v660_v45 = vmul.f32 %v6707_v36, %v6695_v1  ;;  %v865_v59 = vpop.permute.xlu1 %864 }
 0x3b7   :  { %v6711_v40 = vpop.eup %6710  ;;  %v657_v47 = vmul.f32 %v6709_v37, %v7334_v56  ;;  %v876_v56 = vsel %vm441_vm0, %v865_v59, 0 }
 0x3b8   :  { %v659_v44 = vmul.f32 %v6711_v40, %v7330_v54 }
 0x3b9   :  { %v6713_v43 = vpop.eup %6712 }
 0x3ba   :  { %v658_v42 = vmul.f32 %v6713_v43, %v6697_v5  ;;  %v664_v55 = vpack.c.bf16 %v660_v45, %v659_v44  ;;  %v859_v60 = vpop.permute.xlu1 %858 }
 0x3bc   :  { %v663_v51 = vpack.c.bf16 %v658_v42, %v657_v47 }
 0x3be   :  { %6074 = vmatprep.mubr.msk.bf16.mxu1 %vm572_vm1, %v663_v51 }
 0x3bf   :  { %6075 = vmatmul.mubr.msk.bf16.vlgmr.msra.gmra.mrb[16].mxu1 %vm572_vm1, %v664_v55 }
 0x3c0   :  { %6087 = vmatpush3.bf16.xpose.msra.mxu1 %v873_v58  ;;  %6090 = vmatprep.mubr.msk.bf16.mxu1 %vm441_vm0, %v857_v57 }
 0x3c1   :  { %6477 = vmatprep.subr.msk.bf16.mxu1 %vm441_vm0, %v865_v59 }
 0x3c8   :  { %6089 = vmatpush3.bf16.xpose.msra.mxu1 %v876_v56 }
 0x3cf   :  { %6091 = vmatmul.mubr.msk.bf16.vlgmr.msra.gmra.mrb[20].mxu1 %vm441_vm0, %v859_v60 }
 0x455   :  { %v7378_v54 = vpop.f32.mrb[12].mxu1 }
 0x456   :  { %v7380_v61 = vpop.f32.mrb[13].mxu1 }
 0x457   :  { %v7382_v62 = vpop.f32.mrb[14].mxu1 }
 0x458   :  { %v776_v63 = vpack.c.bf16 %v7382_v62, %v7378_v54  ;;  %v7386_v1 = vpop.f32.mrb[15].mxu1 }
 0x459   :  { %v775_v4 = vpack.c.bf16 %v7386_v1, %v7380_v61 }
 0x487   :  { %v6084_v5 = vpop.f32.mrb[20].mxu0 }
 0x488   :  { %v839_v6 = vpop.f32.mrb[21].mxu0  ;;  %v929_v10 = vmul.f32 0.25, %v6084_v5 }
 0x489   :  { %v927_v7 = vmul.f32 0.25, %v839_v6  ;;  %v6085_v8 = vpop.f32.mrb[22].mxu0 }
 0x48a   :  { %v842_v9 = vpop.f32.mrb[23].mxu0  ;;  %v930_v14 = vmul.f32 0.25, %v6085_v8  ;;  %v941_v15 = vsel %vm572_vm1, %v929_v10, -inf }
 0x48b   :  { %v928_v11 = vmul.f32 0.25, %v842_v9  ;;  %v935_v12 = vsel %vm572_vm1, %v927_v7, -inf }
 0x48c   :  { %936 = vmax.xlane.f32.xlu0 %v935_v12  ;;  %v944_v18 = vsel %vm572_vm1, %v930_v14, -inf }
 0x48d   :  { %v938_v13 = vsel %vm572_vm1, %v928_v11, -inf }
 0x48e   :  { %939 = vmax.xlane.f32.xlu1 %v938_v13 }
 0x490   :  { %942 = vmax.xlane.f32.xlu0 %v941_v15 }
 0x492   :  { %v7393_v16 = vpop.f32.mrb[16].mxu1 }
 0x493   :  { %v7395_v17 = vpop.f32.mrb[17].mxu1 }
 0x494   :  { %v7398_v19 = vpop.f32.mrb[18].mxu1  ;;  %945 = vmax.xlane.f32.xlu0 %v944_v18 }
 0x495   :  { %v778_v21 = vpack.c.bf16 %v7398_v19, %v7393_v16  ;;  %v7402_v25 = vpop.f32.mrb[19].mxu1 }
 0x496   :  { %v777_v26 = vpack.c.bf16 %v7402_v25, %v7395_v17 }
 0x4a2   :  { %v6092_v27 = vpop.f32.mrb[20].mxu1 }
 0x4a3   :  { %v912_v28 = vpop.f32.mrb[21].mxu1  ;;  %v933_v32 = vmul.f32 0.25, %v6092_v27 }
 0x4a4   :  { %v931_v29 = vmul.f32 0.25, %v912_v28  ;;  %v6093_v30 = vpop.f32.mrb[22].mxu1 }
 0x4a5   :  { %v915_v31 = vpop.f32.mrb[23].mxu1  ;;  %v934_v35 = vmul.f32 0.25, %v6093_v30  ;;  %v953_v37 = vsel %vm572_vm1, %v933_v32, -inf }
 0x4a6   :  { %v932_v33 = vmul.f32 0.25, %v915_v31  ;;  %v947_v34 = vsel %vm572_vm1, %v931_v29, -inf }
 0x4a7   :  { %948 = vmax.xlane.f32.xlu0 %v947_v34  ;;  %v956_v40 = vsel %vm572_vm1, %v934_v35, -inf }
 0x4a8   :  { %v950_v36 = vsel %vm572_vm1, %v932_v33, -inf }
 0x4a9   :  { %951 = vmax.xlane.f32.xlu1 %v950_v36 }
 0x4ab   :  { %954 = vmax.xlane.f32.xlu0 %v953_v37 }
 0x4ad   :  { %957 = vmax.xlane.f32.xlu1 %v956_v40 }
 0x519   :  { %v937_v43 = vpop.xlane.xlu0 %936 }
 0x51a   :  { %v959_v45 = vsub.f32 %v927_v7, %v937_v43 }
 0x51b   :  { %v940_v47 = vpop.xlane.xlu1 %939 }
 0x51c   :  { %v967_v42 = vmul.f32 1.442695, %v959_v45  ;;  %v960_v44 = vsub.f32 %v928_v11, %v940_v47 }
 0x51d   :  { %v943_v51 = vpop.xlane.xlu0 %942 }
 0x51e   :  { %6714 = vpow2.f32 %v967_v42  ;;  %v969_v55 = vmul.f32 1.442695, %v960_v44  ;;  %v961_v57 = vsub.f32 %v929_v10, %v943_v51 }
 0x520   :  { %6716 = vpow2.f32 %v969_v55  ;;  %v971_v58 = vmul.f32 1.442695, %v961_v57 }
 0x521   :  { %v946_v59 = vpop.xlane.xlu0 %945 }
 0x522   :  { %6718 = vpow2.f32 %v971_v58  ;;  %v962_v56 = vsub.f32 %v930_v14, %v946_v59 }
 0x524   :  { %v973_v60 = vmul.f32 1.442695, %v962_v56 }
 0x526   :  { %6720 = vpow2.f32 %v973_v60 }
 0x528   :  { %v7410_v5 = vpop.eup %6714 }
 0x529   :  { %v983_v6 = vsel %vm572_vm1, %v7410_v5, 0.0 }
 0x52a   :  { %v7414_v7 = vpop.eup %6716  ;;  %984 = vadd.xlane.f32.xlu0 %v983_v6 }
 0x52b   :  { %v986_v8 = vsel %vm572_vm1, %v7414_v7, 0.0 }
 0x52c   :  { %v7418_v9 = vpop.eup %6718  ;;  %987 = vadd.xlane.f32.xlu1 %v986_v8 }
 0x52d   :  { %v989_v10 = vsel %vm572_vm1, %v7418_v9, 0.0 }
 0x52e   :  { %990 = vadd.xlane.f32.xlu0 %v989_v10 }
 0x530   :  { %v7422_v11 = vpop.eup %6720 }
 0x531   :  { %v992_v12 = vsel %vm572_vm1, %v7422_v11, 0.0 }
 0x532   :  { %993 = vadd.xlane.f32.xlu1 %v992_v12 }
 0x534   :  { %v949_v13 = vpop.xlane.xlu0 %948 }
 0x535   :  { %v963_v27 = vsub.f32 %v931_v29, %v949_v13 }
 0x536   :  { %v952_v15 = vpop.xlane.xlu1 %951 }
 0x537   :  { %v975_v31 = vmul.f32 1.442695, %v963_v27  ;;  %v964_v36 = vsub.f32 %v932_v33, %v952_v15 }
 0x538   :  { %v955_v14 = vpop.xlane.xlu0 %954 }
 0x539   :  { %v965_v18 = vsub.f32 %v933_v32, %v955_v14  ;;  %v977_v40 = vmul.f32 1.442695, %v964_v36 }
 0x53a   :  { %v958_v30 = vpop.xlane.xlu1 %957 }
 0x53b   :  { %v979_v28 = vmul.f32 1.442695, %v965_v18  ;;  %v966_v34 = vsub.f32 %v934_v35, %v958_v30 }
 0x53d   :  { %6722 = vpow2.f32 %v979_v28  ;;  %v981_v37 = vmul.f32 1.442695, %v966_v34 }
 0x53e   :  { %6724 = vpow2.f32 %v975_v31 }
 0x53f   :  { %6726 = vpow2.f32 %v981_v37 }
 0x540   :  { %6728 = vpow2.f32 %v977_v40 }
 0x543   :  { %1031 = vrot.lane.b32.xlu1 %v7275_v20, %s7098_s2 }
 0x544   :  { %1029 = vrot.lane.b32.xlu0 %v7278_v22, %s7098_s2 }
 0x547   :  { %1092 = vrot.lane.b32.xlu1 %v7301_v48, %s7098_s2  ;;  %v7432_v43 = vpop.eup %6722 }
 0x548   :  { %v1001_v45 = vsel %vm572_vm1, %v7432_v43, 0.0  ;;  %v7436_v47 = vpop.eup %6724 }
 0x549   :  { %v995_v29 = vsel %vm572_vm1, %v7436_v47, 0.0  ;;  %v7440_v32 = vpop.eup %6726 }
 0x54a   :  { %v1004_v33 = vsel %vm572_vm1, %v7440_v32, 0.0  ;;  %v6729_v35 = vpop.eup %6728 }
 0x54b   :  { %v998_v42 = vsel %vm572_vm1, %v6729_v35, 0.0 }
 0x563   :  { %1002 = vadd.xlane.f32.xlu0 %v1001_v45 }
 0x567   :  { %996 = vadd.xlane.f32.xlu0 %v995_v29 }
 0x56b   :  { %1005 = vadd.xlane.f32.xlu1 %v1004_v33 }
 0x56f   :  { %999 = vadd.xlane.f32.xlu1 %v998_v42 }
 0x57d   :  { %1329 = vrot.lane.b32.xlu0 %v7251_v53, %s7099_s11 }
 0x580   :  { %1094 = vrot.lane.b32.xlu1 %v7298_v46, %s7098_s2 }
 0x581   :  { %1325 = vrot.lane.b32.xlu0 %v7249_v52, %s7099_s11 }
 0x584   :  { %1331 = vrot.lane.b32.xlu1 %v7266_v3, %s7099_s11 }
 0x585   :  { %1327 = vrot.lane.b32.xlu0 %v7264_v2, %s7099_s11 }
 0x588   :  { %1398 = vrot.lane.b32.xlu1 %v7282_v24, %s7099_s11 }
 0x589   :  { %1394 = vrot.lane.b32.xlu0 %v7280_v23, %s7099_s11 }
 0x58c   :  { %1400 = vrot.lane.b32.xlu1 %v7306_v50, %s7099_s11 }
 0x590   :  { %1396 = vrot.lane.b32.xlu1 %v7303_v49, %s7099_s11 }
 0x5b7   :  { %v985_v44 = vpop.xlane.xlu0 %984 }
 0x5b8   :  { %6730 = vrcp.f32 %v985_v44 }
 0x5b9   :  { %v988_v51 = vpop.xlane.xlu1 %987 }
 0x5ba   :  { %6732 = vrcp.f32 %v988_v51 }
 0x5bb   :  { %v991_v55 = vpop.xlane.xlu0 %990 }
 0x5bc   :  { %6734 = vrcp.f32 %v991_v55 }
 0x5bf   :  { %v994_v57 = vpop.xlane.xlu1 %993  ;;  %v1030_v58 = vpop.permute.xlu0 %1029 }
 0x5c0   :  { %6736 = vrcp.f32 %v994_v57  ;;  %6094 = vmatprep.subr.bf16.mxu1 %v1030_v58 }
 0x5c1   :  { %6095 = vmatpush3.bf16.msra.mxu1 %v1030_v58 }
 0x5c2   :  { %v6731_v59 = vpop.eup %6730 }
 0x5c3   :  { %v1032_v56 = vpop.permute.xlu1 %1031  ;;  %v1015_v6 = vmul.f32 %v6731_v59, %v7410_v5 }
 0x5c4   :  { %v6733_v60 = vpop.eup %6732  ;;  %6096 = vmatprep.subr.bf16.mxu1 %v1032_v56 }
 0x5c5   :  { %6097 = vmatpush3.bf16.msra.mxu1 %v1032_v56  ;;  %v1016_v8 = vmul.f32 %v6733_v60, %v7414_v7  ;;  %v6554_v56 = vld [vmem:[#allocation7 + $0x8] sm:$0xff]  }
 0x5c6   :  { %v6735_v13 = vpop.eup %6734  ;;  %6110 = vmatprep.subr.bf16.mxu0 %v6554_v56 }
 0x5c7   :  { %v1093_v10 = vpop.permute.xlu1 %1092  ;;  %v1023_v12 = vpack.c.bf16 %v1016_v8, %v1015_v6  ;;  %v1017_v15 = vmul.f32 %v6735_v13, %v7418_v9  ;;  %6111 = vmatpush3.bf16.msra.mxu0 %v6554_v56  ;;  %v6555_v8 = vld [vmem:[#allocation7] sm:$0xff]  }
 0x5c8   :  { %6102 = vmatprep.subr.bf16.mxu1 %v1093_v10  ;;  %6120 = vmatprep.subr.bf16.mxu0 %v6555_v8 }
 0x5c9   :  { %6098 = vmatprep.mubr.msk.bf16.mxu1 %vm572_vm1, %v1023_v12 }
 0x5ca   :  { %v6737_v14 = vpop.eup %6736 }
 0x5cb   :  { %v1018_v18 = vmul.f32 %v6737_v14, %v7422_v11 }
 0x5cd   :  { %v1024_v27 = vpack.c.bf16 %v1018_v18, %v1017_v15 }
 0x5cf   :  { %6099 = vmatmul.mubr.msk.bf16.vlgmr.msra.gmra.mrb[24].mxu1 %vm572_vm1, %v1024_v27 }
 0x5d0   :  { %6103 = vmatpush3.bf16.msra.mxu1 %v1093_v10 }
 0x5f0   :  { %v1003_v28 = vpop.xlane.xlu0 %1002 }
 0x5f4   :  { %v997_v30 = vpop.xlane.xlu0 %996 }
 0x5f8   :  { %v1006_v5 = vpop.xlane.xlu1 %1005  ;;  %v1330_v34 = vpop.permute.xlu0 %1329 }
 0x5f9   :  { %6738 = vrcp.f32 %v1006_v5  ;;  %v1340_v55 = vsel %vm441_vm0, %v1330_v34, 0 }
 0x5fa   :  { %6740 = vrcp.f32 %v997_v30 }
 0x5fb   :  { %6742 = vrcp.f32 %v1003_v28 }
 0x5fc   :  { %v1000_v7 = vpop.xlane.xlu1 %999  ;;  %v1326_v51 = vpop.permute.xlu0 %1325 }
 0x5fd   :  { %6744 = vrcp.f32 %v1000_v7 }
 0x600   :  { %v1095_v31 = vpop.permute.xlu1 %1094 }
 0x601   :  { %6104 = vmatprep.subr.bf16.mxu1 %v1095_v31 }
 0x602   :  { %6105 = vmatpush3.bf16.msra.mxu1 %v1095_v31 }
 0x603   :  { %6478 = vmatprep.subr.msk.bf16.mxu1 %vm441_vm0, %v1330_v34  ;;  %v6739_v9 = vpop.eup %6738 }
 0x604   :  { %v6741_v11 = vpop.eup %6740  ;;  %v1022_v40 = vmul.f32 %v6739_v9, %v7440_v32  ;;  %v1332_v57 = vpop.permute.xlu1 %1331 }
 0x605   :  { %v6743_v36 = vpop.eup %6742  ;;  %v1019_v45 = vmul.f32 %v6741_v11, %v7436_v47  ;;  %v1343_v47 = vsel %vm441_vm0, %v1332_v57, 0 }
 0x606   :  { %v1021_v33 = vmul.f32 %v6743_v36, %v7432_v43  ;;  %v1328_v43 = vpop.permute.xlu0 %1327 }
 0x607   :  { %v6745_v37 = vpop.eup %6744 }
 0x608   :  { %v1020_v29 = vmul.f32 %v6745_v37, %v6729_v35  ;;  %v1026_v44 = vpack.c.bf16 %v1022_v40, %v1021_v33  ;;  %v1399_v32 = vpop.permute.xlu1 %1398 }
 0x609   :  { %v1409_v58 = vsel %vm441_vm0, %v1399_v32, 0 }
 0x60a   :  { %v1025_v42 = vpack.c.bf16 %v1020_v29, %v1019_v45  ;;  %v1395_v35 = vpop.permute.xlu0 %1394 }
 0x60c   :  { %6106 = vmatprep.mubr.msk.bf16.mxu1 %vm572_vm1, %v1025_v42  ;;  %v1401_v59 = vpop.permute.xlu1 %1400 }
 0x60d   :  { %6107 = vmatmul.mubr.msk.bf16.vlgmr.msra.gmra.mrb[28].mxu1 %vm572_vm1, %v1026_v44  ;;  %v1412_v60 = vsel %vm441_vm0, %v1401_v59, 0 }
 0x60e   :  { %6131 = vmatpush3.bf16.xpose.msra.mxu1 %v1340_v55  ;;  %6134 = vmatprep.mubr.msk.bf16.mxu1 %vm441_vm0, %v1326_v51 }
 0x60f   :  { %6479 = vmatprep.subr.msk.bf16.mxu1 %vm441_vm0, %v1332_v57 }
 0x610   :  { %v1397_v6 = vpop.permute.xlu1 %1396 }
 0x616   :  { %6133 = vmatpush3.bf16.xpose.msra.mxu1 %v1343_v47 }
 0x617   :  { %6480 = vmatprep.subr.msk.bf16.mxu1 %vm441_vm0, %v1399_v32 }
 0x61d   :  { %6135 = vmatmul.mubr.msk.bf16.vlgmr.msra.gmra.mrb[32].mxu1 %vm441_vm0, %v1328_v43 }
 0x61e   :  { %6139 = vmatpush3.bf16.xpose.msra.mxu1 %v1409_v58  ;;  %6142 = vmatprep.mubr.msk.bf16.mxu1 %vm441_vm0, %v1395_v35 }
 0x61f   :  { %6481 = vmatprep.subr.msk.bf16.mxu1 %vm441_vm0, %v1401_v59 }
 0x626   :  { %6141 = vmatpush3.bf16.xpose.msra.mxu1 %v1412_v60 }
 0x62d   :  { %6143 = vmatmul.mubr.msk.bf16.vlgmr.msra.gmra.mrb[36].mxu1 %vm441_vm0, %v1397_v6 }
 0x6a2   :  { %v6100_v10 = vpop.f32.mrb[24].mxu1 }
 0x6a3   :  { %v1075_v12 = vpop.f32.mrb[25].mxu1 }
 0x6a4   :  { %v6101_v13 = vpop.f32.mrb[26].mxu1 }
 0x6a5   :  { %v1154_v14 = vpack.c.bf16 %v6101_v13, %v6100_v10  ;;  %v1078_v15 = vpop.f32.mrb[27].mxu1 }
 0x6a6   :  { %v1153_v18 = vpack.c.bf16 %v1078_v15, %v1075_v12 }
 0x6a8   :  { %6112 = vmatprep.mubr.msk.bf16.mxu0 %vm441_vm0, %v1153_v18 }
 0x6a9   :  { %6113 = vmatmul.mubr.msk.bf16.vlgmr.msra.gmra.mrb[24].mxu0 %vm441_vm0, %v1154_v14 }
 0x6aa   :  { %6121 = vmatpush3.bf16.msra.mxu0 %v6555_v8 }
 0x6e0   :  { %v6108_v27 = vpop.f32.mrb[28].mxu1 }
 0x6e1   :  { %v1138_v28 = vpop.f32.mrb[29].mxu1 }
 0x6e2   :  { %v6109_v30 = vpop.f32.mrb[30].mxu1 }
 0x6e3   :  { %v1156_v5 = vpack.c.bf16 %v6109_v30, %v6108_v27  ;;  %v1141_v7 = vpop.f32.mrb[31].mxu1 }
 0x6e4   :  { %v1155_v31 = vpack.c.bf16 %v1141_v7, %v1138_v28 }
 0x6e6   :  { %6116 = vmatprep.mubr.msk.bf16.mxu0 %vm441_vm0, %v1155_v31 }
 0x6e7   :  { %6117 = vmatmul.mubr.msk.bf16.gmra.mrb[28].mxu0 %vm441_vm0, %v1156_v5 }
 0x6e8   :  { %6122 = vmatprep.mubr.msk.bf16.mxu0 %vm441_vm0, %v775_v4 }
 0x6ef   :  { %6123 = vmatmul.mubr.msk.bf16.vlgmr.msra.gmra.mrb[24].mxu0 %vm441_vm0, %v776_v63 }
 0x6f0   :  { %v6136_v34 = vpop.f32.mrb[32].mxu1  ;;  %6126 = vmatprep.mubr.msk.bf16.mxu0 %vm441_vm0, %v777_v26 }
 0x6f1   :  { %v1379_v9 = vpop.f32.mrb[33].mxu1  ;;  %v1465_v40 = vmul.f32 0.25, %v6136_v34 }
 0x6f2   :  { %v1463_v11 = vmul.f32 0.25, %v1379_v9  ;;  %v6137_v36 = vpop.f32.mrb[34].mxu1 }
 0x6f3   :  { %v1382_v37 = vpop.f32.mrb[35].mxu1  ;;  %v1466_v54 = vmul.f32 0.25, %v6137_v36  ;;  %v1477_v62 = vsel %vm572_vm1, %v1465_v40, -inf }
 0x6f4   :  { %v1464_v45 = vmul.f32 0.25, %v1382_v37  ;;  %v1471_v61 = vsel %vm572_vm1, %v1463_v11, -inf }
 0x6f5   :  { %1472 = vmax.xlane.f32.xlu0 %v1471_v61  ;;  %v1480_v63 = vsel %vm572_vm1, %v1466_v54, -inf }
 0x6f6   :  { %v1474_v1 = vsel %vm572_vm1, %v1464_v45, -inf }
 0x6f7   :  { %1475 = vmax.xlane.f32.xlu1 %v1474_v1  ;;  %6127 = vmatmul.mubr.msk.bf16.gmra.mrb[28].mxu0 %vm441_vm0, %v778_v21 }
 0x6f9   :  { %1478 = vmax.xlane.f32.xlu0 %v1477_v62 }
 0x6fd   :  { %1481 = vmax.xlane.f32.xlu0 %v1480_v63 }
 0x700   :  { %v6144_v4 = vpop.f32.mrb[36].mxu1 }
 0x701   :  { %v1448_v17 = vpop.f32.mrb[37].mxu1  ;;  %v1469_v33 = vmul.f32 0.25, %v6144_v4 }
 0x702   :  { %v1467_v25 = vmul.f32 0.25, %v1448_v17  ;;  %v6145_v26 = vpop.f32.mrb[38].mxu1 }
 0x703   :  { %v1451_v29 = vpop.f32.mrb[39].mxu1  ;;  %v1470_v16 = vmul.f32 0.25, %v6145_v26  ;;  %v1489_v21 = vsel %vm572_vm1, %v1469_v33, -inf }
 0x704   :  { %v7510_v42 = vmul.f32 0.25, %v1451_v29  ;;  %v1483_v44 = vsel %vm572_vm1, %v1467_v25, -inf }
 0x705   :  { %1484 = vmax.xlane.f32.xlu0 %v1483_v44  ;;  %v1492_v51 = vsel %vm572_vm1, %v1470_v16, -inf }
 0x706   :  { %v1486_v19 = vsel %vm572_vm1, %v7510_v42, -inf }
 0x707   :  { %1487 = vmax.xlane.f32.xlu1 %v1486_v19 }
 0x709   :  { %1490 = vmax.xlane.f32.xlu0 %v1489_v21 }
 0x70b   :  { %1493 = vmax.xlane.f32.xlu1 %v1492_v51 }
 0x782   :  { %v1473_v55 = vpop.xlane.xlu0 %1472 }
 0x783   :  { %v1495_v57 = vsub.f32 %v1463_v11, %v1473_v55 }
 0x784   :  { %v1476_v47 = vpop.xlane.xlu1 %1475 }
 0x785   :  { %v1503_v35 = vmul.f32 1.442695, %v1495_v57  ;;  %v1496_v58 = vsub.f32 %v1464_v45, %v1476_v47 }
 0x786   :  { %v1479_v32 = vpop.xlane.xlu0 %1478 }
 0x787   :  { %v1497_v43 = vsub.f32 %v1465_v40, %v1479_v32  ;;  %v1505_v6 = vmul.f32 1.442695, %v1496_v58 }
 0x789   :  { %v1507_v59 = vmul.f32 1.442695, %v1497_v43 }
 0x78a   :  { %v1482_v56 = vpop.xlane.xlu0 %1481 }
 0x78b   :  { %6746 = vpow2.f32 %v1507_v59  ;;  %v1498_v60 = vsub.f32 %v1466_v54, %v1482_v56 }
 0x78c   :  { %6748 = vpow2.f32 %v1503_v35 }
 0x78d   :  { %v1509_v8 = vmul.f32 1.442695, %v1498_v60  ;;  %v6556_v60 = vld [vmem:[#allocation7 + $0x10] sm:$0xff]  }
 0x78f   :  { %6750 = vpow2.f32 %v1509_v8 }
 0x790   :  { %6752 = vpow2.f32 %v1505_v6 }
 0x792   :  { %v1485_v10 = vpop.xlane.xlu0 %1484 }
 0x793   :  { %v1499_v13 = vsub.f32 %v1467_v25, %v1485_v10 }
 0x794   :  { %v1488_v45 = vpop.xlane.xlu1 %1487 }
 0x795   :  { %v7517_v12 = vpop.eup %6746  ;;  %v1511_v30 = vmul.f32 1.442695, %v1499_v13  ;;  %v1500_v54 = vsub.f32 %v7510_v42, %v1488_v45 }
 0x796   :  { %v1491_v14 = vpop.xlane.xlu0 %1490  ;;  %v1525_v15 = vsel %vm572_vm1, %v7517_v12, 0.0  ;;  %v7521_v18 = vpop.eup %6748 }
 0x797   :  { %v1501_v27 = vsub.f32 %v1469_v33, %v1491_v14  ;;  %1526 = vadd.xlane.f32.xlu0 %v1525_v15  ;;  %v1519_v7 = vsel %vm572_vm1, %v7521_v18, 0.0  ;;  %v1513_v63 = vmul.f32 1.442695, %v1500_v54 }
 0x798   :  { %v1494_v61 = vpop.xlane.xlu1 %1493 }
 0x799   :  { %v7523_v28 = vpop.eup %6750  ;;  %v1515_v5 = vmul.f32 1.442695, %v1501_v27  ;;  %v1502_v1 = vsub.f32 %v1470_v16, %v1494_v61 }
 0x79a   :  { %v1528_v31 = vsel %vm572_vm1, %v7523_v28, 0.0  ;;  %v6753_v34 = vpop.eup %6752 }
 0x79b   :  { %6754 = vpow2.f32 %v1515_v5  ;;  %1520 = vadd.xlane.f32.xlu0 %v1519_v7  ;;  %1529 = vadd.xlane.f32.xlu1 %v1528_v31  ;;  %v1522_v9 = vsel %vm572_vm1, %v6753_v34, 0.0  ;;  %v1517_v62 = vmul.f32 1.442695, %v1502_v1 }
 0x79c   :  { %6756 = vpow2.f32 %v1511_v30 }
 0x79d   :  { %6758 = vpow2.f32 %v1517_v62 }
 0x79e   :  { %6760 = vpow2.f32 %v1513_v63 }
 0x79f   :  { %1523 = vadd.xlane.f32.xlu1 %v1522_v9 }
 0x7a5   :  { %v7530_v11 = vpop.eup %6754 }
 0x7a6   :  { %v1537_v36 = vsel %vm572_vm1, %v7530_v11, 0.0  ;;  %v7534_v37 = vpop.eup %6756 }
 0x7a7   :  { %1538 = vadd.xlane.f32.xlu0 %v1537_v36  ;;  %v1531_v40 = vsel %vm572_vm1, %v7534_v37, 0.0  ;;  %v6759_v4 = vpop.eup %6758 }
 0x7a8   :  { %v1540_v17 = vsel %vm572_vm1, %v6759_v4, 0.0  ;;  %v7554_v25 = vpop.eup %6760 }
 0x7a9   :  { %v1534_v26 = vsel %vm572_vm1, %v7554_v25, 0.0 }
 0x7ab   :  { %1532 = vadd.xlane.f32.xlu0 %v1531_v40 }
 0x7b0   :  { %1565 = vrot.lane.b32.xlu1 %v7275_v20, %s7099_s11 }
 0x7b4   :  { %1624 = vrot.lane.b32.xlu1 %v7301_v48, %s7099_s11 }
 0x7c1   :  { %1563 = vrot.lane.b32.xlu0 %v7278_v22, %s7099_s11 }
 0x7c5   :  { %1786 = vrot.lane.b32.xlu0 %v7251_v53, %s7100_s12 }
 0x7c9   :  { %1855 = vrot.lane.b32.xlu0 %v7282_v24, %s7100_s12 }
 0x7cd   :  { %1784 = vrot.lane.b32.xlu0 %v7264_v2, %s7100_s12 }
 0x7d1   :  { %1851 = vrot.lane.b32.xlu0 %v7280_v23, %s7100_s12 }
 0x7d8   :  { %1541 = vadd.xlane.f32.xlu1 %v1540_v17 }
 0x7dc   :  { %1535 = vadd.xlane.f32.xlu1 %v1534_v26 }
 0x7ed   :  { %1626 = vrot.lane.b32.xlu1 %v7298_v46, %s7099_s11 }
 0x7f1   :  { %1788 = vrot.lane.b32.xlu1 %v7266_v3, %s7100_s12 }
 0x7f5   :  { %1782 = vrot.lane.b32.xlu1 %v7249_v52, %s7100_s12 }
 0x7f9   :  { %1857 = vrot.lane.b32.xlu1 %v7306_v50, %s7100_s12 }
 0x7fd   :  { %1853 = vrot.lane.b32.xlu1 %v7303_v49, %s7100_s12 }
 0x824   :  { %v1527_v29 = vpop.xlane.xlu0 %1526 }
 0x828   :  { %v1530_v33 = vpop.xlane.xlu1 %1529  ;;  %v1521_v42 = vpop.xlane.xlu0 %1520 }
 0x829   :  { %6762 = vrcp.f32 %v1521_v42 }
 0x82c   :  { %v1524_v44 = vpop.xlane.xlu1 %1523 }
 0x82d   :  { %6764 = vrcp.f32 %v1524_v44 }
 0x82e   :  { %6766 = vrcp.f32 %v1530_v33 }
 0x82f   :  { %6768 = vrcp.f32 %v1527_v29 }
 0x830   :  { %v1566_v16 = vpop.permute.xlu1 %1565 }
 0x833   :  { %v6763_v51 = vpop.eup %6762 }
 0x834   :  { %v1625_v19 = vpop.permute.xlu1 %1624  ;;  %v1539_v21 = vpop.xlane.xlu0 %1538  ;;  %v1551_v47 = vmul.f32 %v6763_v51, %v7521_v18 }
 0x835   :  { %6154 = vmatprep.subr.bf16.mxu1 %v1625_v19 }
 0x836   :  { %6155 = vmatpush3.bf16.msra.mxu1 %v1625_v19 }
 0x837   :  { %v6765_v55 = vpop.eup %6764 }
 0x838   :  { %v1533_v57 = vpop.xlane.xlu0 %1532  ;;  %v1552_v32 = vmul.f32 %v6765_v55, %v6753_v34  ;;  %v6767_v35 = vpop.eup %6766 }
 0x839   :  { %v6769_v59 = vpop.eup %6768  ;;  %v1554_v56 = vmul.f32 %v6767_v35, %v7523_v28 }
 0x83a   :  { %v1559_v43 = vpack.c.bf16 %v1552_v32, %v1551_v47  ;;  %v1553_v8 = vmul.f32 %v6769_v59, %v7517_v12 }
 0x83c   :  { %6150 = vmatprep.mubr.msk.bf16.mxu0 %vm572_vm1, %v1559_v43  ;;  %v1564_v58 = vpop.permute.xlu0 %1563  ;;  %v1560_v10 = vpack.c.bf16 %v1554_v56, %v1553_v8 }
 0x83d   :  { %6146 = vmatprep.subr.bf16.mxu0 %v1564_v58 }
 0x83e   :  { %6147 = vmatpush3.bf16.msra.mxu0 %v1564_v58 }
 0x83f   :  { %6148 = vmatprep.subr.bf16.mxu0 %v1566_v16 }
 0x840   :  { %v1787_v6 = vpop.permute.xlu0 %1786 }
 0x841   :  { %v1797_v61 = vsel %vm441_vm0, %v1787_v6, 0 }
 0x842   :  { %6149 = vmatpush3.bf16.msra.mxu0 %v1566_v16 }
 0x843   :  { %6162 = vmatprep.subr.bf16.mxu0 %v6556_v60 }
 0x844   :  { %v1856_v13 = vpop.permute.xlu0 %1855 }
 0x845   :  { %6151 = vmatmul.mubr.msk.bf16.vlgmr.msra.gmra.mrb[32].mxu0 %vm572_vm1, %v1560_v10 }
 0x846   :  { %6163 = vmatpush3.bf16.msra.mxu0 %v6556_v60 }
 0x847   :  { %6484 = vmatprep.subr.msk.bf16.mxu0 %vm441_vm0, %v1856_v13 }
 0x848   :  { %v1785_v1 = vpop.permute.xlu0 %1784 }
 0x84c   :  { %v1852_v51 = vpop.permute.xlu0 %1851 }
 0x865   :  { %v1542_v14 = vpop.xlane.xlu1 %1541 }
 0x866   :  { %6770 = vrcp.f32 %v1542_v14 }
 0x867   :  { %6772 = vrcp.f32 %v1533_v57 }
 0x868   :  { %6774 = vrcp.f32 %v1539_v21 }
 0x869   :  { %v1536_v15 = vpop.xlane.xlu1 %1535 }
 0x86a   :  { %6776 = vrcp.f32 %v1536_v15 }
 0x86d   :  { %v1627_v18 = vpop.permute.xlu1 %1626 }
 0x86e   :  { %6156 = vmatprep.subr.bf16.mxu1 %v1627_v18 }
 0x86f   :  { %6157 = vmatpush3.bf16.msra.mxu1 %v1627_v18 }
 0x870   :  { %6482 = vmatprep.subr.msk.bf16.mxu1 %vm441_vm0, %v1787_v6  ;;  %v6771_v12 = vpop.eup %6770 }
 0x871   :  { %v6773_v27 = vpop.eup %6772  ;;  %v1558_v5 = vmul.f32 %v6771_v12, %v6759_v4  ;;  %v1789_v7 = vpop.permute.xlu1 %1788 }
 0x872   :  { %v6775_v28 = vpop.eup %6774  ;;  %v1555_v31 = vmul.f32 %v6773_v27, %v7534_v37  ;;  %v1800_v37 = vsel %vm441_vm0, %v1789_v7, 0 }
 0x873   :  { %v1557_v9 = vmul.f32 %v6775_v28, %v7530_v11 }
 0x874   :  { %v6777_v30 = vpop.eup %6776 }
 0x875   :  { %v1556_v34 = vmul.f32 %v6777_v30, %v7554_v25  ;;  %v1562_v40 = vpack.c.bf16 %v1558_v5, %v1557_v9  ;;  %v1783_v45 = vpop.permute.xlu1 %1782  ;;  %v1866_v25 = vsel %vm441_vm0, %v1856_v13, 0 }
 0x877   :  { %v1561_v36 = vpack.c.bf16 %v1556_v34, %v1555_v31 }
 0x879   :  { %6158 = vmatprep.mubr.msk.bf16.mxu1 %vm572_vm1, %v1561_v36  ;;  %v1858_v26 = vpop.permute.xlu1 %1857 }
 0x87a   :  { %6159 = vmatmul.mubr.msk.bf16.vlgmr.msra.gmra.mrb[40].mxu1 %vm572_vm1, %v1562_v40  ;;  %v1869_v29 = vsel %vm441_vm0, %v1858_v26, 0 }
 0x87b   :  { %6173 = vmatpush3.bf16.xpose.msra.mxu1 %v1797_v61  ;;  %6176 = vmatprep.mubr.msk.bf16.mxu1 %vm441_vm0, %v1783_v45 }
 0x87c   :  { %6483 = vmatprep.subr.msk.bf16.mxu1 %vm441_vm0, %v1789_v7 }
 0x87d   :  { %v1854_v55 = vpop.permute.xlu1 %1853 }
 0x883   :  { %6175 = vmatpush3.bf16.xpose.msra.mxu1 %v1800_v37 }
 0x88a   :  { %6177 = vmatmul.mubr.msk.bf16.vlgmr.msra.gmra.mrb[44].mxu1 %vm441_vm0, %v1785_v1 }
 0x918   :  { %v6152_v11 = vpop.f32.mrb[32].mxu0 }
 0x919   :  { %v1609_v54 = vpop.f32.mrb[33].mxu0 }
 0x91a   :  { %v6153_v62 = vpop.f32.mrb[34].mxu0 }
 0x91b   :  { %v1686_v63 = vpack.c.bf16 %v6153_v62, %v6152_v11  ;;  %v1612_v4 = vpop.f32.mrb[35].mxu0 }
 0x91c   :  { %v1685_v17 = vpack.c.bf16 %v1612_v4, %v1609_v54 }
 0x91e   :  { %6164 = vmatprep.mubr.msk.bf16.mxu0 %vm441_vm0, %v1685_v17 }
 0x91f   :  { %6165 = vmatmul.mubr.msk.bf16.vlgmr.msra.gmra.mrb[24].mxu0 %vm441_vm0, %v1686_v63 }
 0x920   :  { %6181 = vmatpush3.bf16.xpose.msra.mxu0 %v1866_v25 }
 0x921   :  { %6485 = vmatprep.subr.msk.bf16.mxu0 %vm441_vm0, %v1858_v26 }
 0x928   :  { %6183 = vmatpush3.bf16.xpose.msra.mxu0 %v1869_v29 }
 0x94d   :  { %v6160_v33 = vpop.f32.mrb[40].mxu1 }
 0x94e   :  { %v1670_v42 = vpop.f32.mrb[41].mxu1 }
 0x94f   :  { %v6161_v44 = vpop.f32.mrb[42].mxu1 }
 0x950   :  { %v1688_v16 = vpack.c.bf16 %v6161_v44, %v6160_v33  ;;  %v1673_v19 = vpop.f32.mrb[43].mxu1 }
 0x951   :  { %v1687_v21 = vpack.c.bf16 %v1673_v19, %v1670_v42 }
 0x953   :  { %6168 = vmatprep.mubr.msk.bf16.mxu0 %vm441_vm0, %v1687_v21 }
 0x954   :  { %6169 = vmatmul.mubr.msk.bf16.gmra.mrb[28].mxu0 %vm441_vm0, %v1688_v16 }
 0x955   :  { %6184 = vmatprep.mubr.msk.bf16.mxu0 %vm441_vm0, %v1852_v51 }
 0x95c   :  { %6185 = vmatmul.mubr.msk.bf16.vlgmr.msra.gmra.mrb[36].mxu0 %vm441_vm0, %v1854_v55 }
 0x95d   :  { %v6178_v57 = vpop.f32.mrb[44].mxu1 }
 0x95e   :  { %v1836_v47 = vpop.f32.mrb[45].mxu1  ;;  %v1922_v58 = vmul.f32 0.25, %v6178_v57 }
 0x95f   :  { %v1920_v32 = vmul.f32 0.25, %v1836_v47  ;;  %v6179_v43 = vpop.f32.mrb[46].mxu1 }
 0x960   :  { %v1839_v35 = vpop.f32.mrb[47].mxu1  ;;  %v1923_v6 = vmul.f32 0.25, %v6179_v43  ;;  %v1934_v8 = vsel %vm572_vm1, %v1922_v58, -inf }
 0x961   :  { %v1921_v59 = vmul.f32 0.25, %v1839_v35  ;;  %v1928_v56 = vsel %vm572_vm1, %v1920_v32, -inf }
 0x962   :  { %1929 = vmax.xlane.f32.xlu0 %v1928_v56  ;;  %v1937_v10 = vsel %vm572_vm1, %v1923_v6, -inf }
 0x963   :  { %v1931_v60 = vsel %vm572_vm1, %v1921_v59, -inf }
 0x964   :  { %1932 = vmax.xlane.f32.xlu1 %v1931_v60 }
 0x966   :  { %1935 = vmax.xlane.f32.xlu0 %v1934_v8 }
 0x96a   :  { %1938 = vmax.xlane.f32.xlu0 %v1937_v10 }
 0x9ef   :  { %v1930_v13 = vpop.xlane.xlu0 %1929 }
 0x9f0   :  { %v1952_v18 = vsub.f32 %v1920_v32, %v1930_v13 }
 0x9f1   :  { %v1933_v15 = vpop.xlane.xlu1 %1932 }
 0x9f2   :  { %v1953_v12 = vsub.f32 %v1921_v59, %v1933_v15  ;;  %v1960_v28 = vmul.f32 1.442695, %v1952_v18 }
 0x9f3   :  { %v1936_v14 = vpop.xlane.xlu0 %1935 }
 0x9f4   :  { %v1954_v30 = vsub.f32 %v1922_v58, %v1936_v14  ;;  %v1962_v5 = vmul.f32 1.442695, %v1953_v12  ;;  %6778 = vpow2.f32 %v1960_v28 }
 0x9f6   :  { %v1964_v31 = vmul.f32 1.442695, %v1954_v30  ;;  %6780 = vpow2.f32 %v1962_v5 }
 0x9f7   :  { %v1939_v27 = vpop.xlane.xlu0 %1938 }
 0x9f8   :  { %v1955_v7 = vsub.f32 %v1923_v6, %v1939_v27  ;;  %6782 = vpow2.f32 %v1964_v31 }
 0x9fa   :  { %v1966_v9 = vmul.f32 1.442695, %v1955_v7 }
 0x9fc   :  { %6784 = vpow2.f32 %v1966_v9 }
 0x9fe   :  { %v6779_v4 = vpop.eup %6778 }
 0x9ff   :  { %v1976_v26 = vsel %vm572_vm1, %v6779_v4, 0.0 }
 0xa00   :  { %v6781_v25 = vpop.eup %6780 }
 0xa01   :  { %v1979_v33 = vsel %vm572_vm1, %v6781_v25, 0.0 }
 0xa02   :  { %v7603_v29 = vpop.eup %6782 }
 0xa03   :  { %v1982_v44 = vsel %vm572_vm1, %v7603_v29, 0.0 }
 0xa06   :  { %v7606_v42 = vpop.eup %6784 }
 0xa07   :  { %v1985_v16 = vsel %vm572_vm1, %v7606_v42, 0.0 }
 0xa2f   :  { %v6186_v34 = vpop.f32.mrb[36].mxu0 }
 0xa30   :  { %v1905_v36 = vpop.f32.mrb[37].mxu0  ;;  %v1926_v37 = vmul.f32 0.25, %v6186_v34 }
 0xa31   :  { %v1924_v40 = vmul.f32 0.25, %v1905_v36  ;;  %v6187_v45 = vpop.f32.mrb[38].mxu0 }
 0xa32   :  { %v1908_v61 = vpop.f32.mrb[39].mxu0  ;;  %v1927_v54 = vmul.f32 0.25, %v6187_v45  ;;  %v1946_v63 = vsel %vm572_vm1, %v1926_v37, -inf }
 0xa33   :  { %v1925_v1 = vmul.f32 0.25, %v1908_v61  ;;  %v1940_v11 = vsel %vm572_vm1, %v1924_v40, -inf }
 0xa34   :  { %1941 = vmax.xlane.f32.xlu0 %v1940_v11  ;;  %v1949_v17 = vsel %vm572_vm1, %v1927_v54, -inf }
 0xa35   :  { %v1943_v62 = vsel %vm572_vm1, %v1925_v1, -inf }
 0xa36   :  { %1944 = vmax.xlane.f32.xlu1 %v1943_v62  ;;  %v6557_v62 = vld [vmem:[#allocation7 + $0x18] sm:$0xff]  }
 0xa38   :  { %1947 = vmax.xlane.f32.xlu0 %v1946_v63 }
 0xa3a   :  { %1950 = vmax.xlane.f32.xlu1 %v1949_v17 }
 0xa3c   :  { %1977 = vadd.xlane.f32.xlu0 %v1976_v26 }
 0xa3e   :  { %1980 = vadd.xlane.f32.xlu1 %v1979_v33 }
 0xa40   :  { %1983 = vadd.xlane.f32.xlu0 %v1982_v44 }
 0xa42   :  { %1986 = vadd.xlane.f32.xlu1 %v1985_v16 }
 0xa53   :  { %2022 = vrot.lane.b32.xlu1 %v7275_v20, %s7100_s12 }
 0xa57   :  { %2081 = vrot.lane.b32.xlu1 %v7301_v48, %s7100_s12 }
 0xac1   :  { %v1942_v19 = vpop.xlane.xlu0 %1941 }
 0xac2   :  { %v1956_v21 = vsub.f32 %v1924_v40, %v1942_v19 }
 0xac3   :  { %v1945_v51 = vpop.xlane.xlu1 %1944 }
 0xac4   :  { %v1968_v55 = vmul.f32 1.442695, %v1956_v21  ;;  %v1957_v47 = vsub.f32 %v1925_v1, %v1945_v51 }
 0xac5   :  { %v1948_v57 = vpop.xlane.xlu0 %1947 }
 0xac6   :  { %v1958_v32 = vsub.f32 %v1926_v37, %v1948_v57  ;;  %6786 = vpow2.f32 %v1968_v55  ;;  %v1970_v56 = vmul.f32 1.442695, %v1957_v47 }
 0xac7   :  { %v1951_v43 = vpop.xlane.xlu1 %1950 }
 0xac8   :  { %v1972_v35 = vmul.f32 1.442695, %v1958_v32  ;;  %v1959_v58 = vsub.f32 %v1927_v54, %v1951_v43 }
 0xac9   :  { %v1978_v59 = vpop.xlane.xlu0 %1977 }
 0xaca   :  { %6788 = vpow2.f32 %v1972_v35  ;;  %v1974_v60 = vmul.f32 1.442695, %v1959_v58 }
 0xacb   :  { %6790 = vrcp.f32 %v1978_v59  ;;  %v1981_v6 = vpop.xlane.xlu1 %1980 }
 0xacc   :  { %6792 = vpow2.f32 %v1974_v60 }
 0xacd   :  { %6794 = vrcp.f32 %v1981_v6  ;;  %v1984_v40 = vpop.xlane.xlu0 %1983 }
 0xace   :  { %6796 = vpow2.f32 %v1970_v56 }
 0xacf   :  { %v1987_v8 = vpop.xlane.xlu1 %1986 }
 0xad0   :  { %v7616_v10 = vpop.eup %6786  ;;  %6798 = vrcp.f32 %v1987_v8 }
 0xad1   :  { %v1988_v34 = vsel %vm572_vm1, %v7616_v10, 0.0  ;;  %6800 = vrcp.f32 %v1984_v40 }
 0xad3   :  { %v2023_v13 = vpop.permute.xlu1 %2022 }
 0xad4   :  { %v7618_v14 = vpop.eup %6788 }
 0xad5   :  { %v6791_v15 = vpop.eup %6790  ;;  %v1994_v18 = vsel %vm572_vm1, %v7618_v14, 0.0 }
 0xad6   :  { %v6793_v12 = vpop.eup %6792  ;;  %1995 = vadd.xlane.f32.xlu0 %v1994_v18  ;;  %v2008_v7 = vmul.f32 %v6791_v15, %v6779_v4 }
 0xad7   :  { %v6795_v27 = vpop.eup %6794  ;;  %v2082_v28 = vpop.permute.xlu1 %2081  ;;  %v1997_v30 = vsel %vm572_vm1, %v6793_v12, 0.0 }
 0xad8   :  { %v6797_v5 = vpop.eup %6796  ;;  %1998 = vadd.xlane.f32.xlu1 %v1997_v30  ;;  %6196 = vmatprep.subr.bf16.mxu0 %v2082_v28  ;;  %v2009_v31 = vmul.f32 %v6795_v27, %v6781_v25 }
 0xad9   :  { %6197 = vmatpush3.bf16.msra.mxu0 %v2082_v28  ;;  %v1991_v36 = vsel %vm572_vm1, %v6797_v5, 0.0 }
 0xada   :  { %1989 = vadd.xlane.f32.xlu0 %v1988_v34  ;;  %v2016_v9 = vpack.c.bf16 %v2009_v31, %v2008_v7  ;;  %v6799_v11 = vpop.eup %6798 }
 0xadb   :  { %v6801_v63 = vpop.eup %6800  ;;  %v2011_v17 = vmul.f32 %v6799_v11, %v7606_v42 }
 0xadc   :  { %6192 = vmatprep.mubr.msk.bf16.mxu1 %vm572_vm1, %v2016_v9  ;;  %1992 = vadd.xlane.f32.xlu1 %v1991_v36  ;;  %v2010_v25 = vmul.f32 %v6801_v63, %v7603_v29 }
 0xade   :  { %v2017_v19 = vpack.c.bf16 %v2011_v17, %v2010_v25 }
 0xaed   :  { %2083 = vrot.lane.b32.xlu1 %v7298_v46, %s7100_s12 }
 0xaf0   :  { %2020 = vrot.lane.b32.xlu0 %v7278_v22, %s7100_s12 }
 0xaf1   :  { %2245 = vrot.lane.b32.xlu1 %v7266_v3, %s7094_s0 }
 0xaf4   :  { %2243 = vrot.lane.b32.xlu0 %v7251_v53, %s7094_s0 }
 0xaf5   :  { %2239 = vrot.lane.b32.xlu1 %v7249_v52, %s7094_s0 }
 0xaf8   :  { %2312 = vrot.lane.b32.xlu0 %v7282_v24, %s7094_s0 }
 0xaf9   :  { %2314 = vrot.lane.b32.xlu1 %v7306_v50, %s7094_s0 }
 0xafc   :  { %2241 = vrot.lane.b32.xlu0 %v7264_v2, %s7094_s0 }
 0xafd   :  { %2310 = vrot.lane.b32.xlu1 %v7303_v49, %s7094_s0 }
 0xb00   :  { %2308 = vrot.lane.b32.xlu0 %v7280_v23, %s7094_s0 }
 0xb63   :  { %v1996_v45 = vpop.xlane.xlu0 %1995 }
 0xb65   :  { %v1999_v61 = vpop.xlane.xlu1 %1998 }
 0xb66   :  { %6802 = vrcp.f32 %v1999_v61 }
 0xb67   :  { %v1990_v37 = vpop.xlane.xlu0 %1989 }
 0xb68   :  { %6804 = vrcp.f32 %v1990_v37 }
 0xb69   :  { %6806 = vrcp.f32 %v1996_v45  ;;  %v1993_v1 = vpop.xlane.xlu1 %1992 }
 0xb6a   :  { %6808 = vrcp.f32 %v1993_v1 }
 0xb6b   :  { %v2021_v54 = vpop.permute.xlu0 %2020 }
 0xb6c   :  { %6188 = vmatprep.subr.bf16.mxu1 %v2021_v54 }
 0xb6d   :  { %v2084_v4 = vpop.permute.xlu1 %2083  ;;  %6189 = vmatpush3.bf16.msra.mxu1 %v2021_v54 }
 0xb6e   :  { %6190 = vmatprep.subr.bf16.mxu1 %v2023_v13  ;;  %6198 = vmatprep.subr.bf16.mxu0 %v2084_v4 }
 0xb6f   :  { %6199 = vmatpush3.bf16.msra.mxu0 %v2084_v4  ;;  %v2244_v33 = vpop.permute.xlu0 %2243 }
 0xb70   :  { %6204 = vmatprep.subr.bf16.mxu0 %v6557_v62  ;;  %v6803_v26 = vpop.eup %6802  ;;  %v2254_v35 = vsel %vm441_vm0, %v2244_v33, 0 }
 0xb71   :  { %v2246_v44 = vpop.permute.xlu1 %2245  ;;  %6191 = vmatpush3.bf16.msra.mxu1 %v2023_v13  ;;  %v2015_v55 = vmul.f32 %v6803_v26, %v6793_v12 }
 0xb72   :  { %v6805_v16 = vpop.eup %6804  ;;  %6486 = vmatprep.subr.msk.bf16.mxu1 %vm441_vm0, %v2244_v33  ;;  %v2257_v59 = vsel %vm441_vm0, %v2246_v44, 0 }
 0xb73   :  { %v6807_v21 = vpop.eup %6806  ;;  %v2012_v57 = vmul.f32 %v6805_v16, %v7616_v10  ;;  %v2313_v58 = vpop.permute.xlu0 %2312 }
 0xb74   :  { %v6809_v51 = vpop.eup %6808  ;;  %6193 = vmatmul.mubr.msk.bf16.vlgmr.msra.gmra.mrb[48].mxu1 %vm572_vm1, %v2017_v19  ;;  %v2014_v29 = vmul.f32 %v6807_v21, %v7618_v14  ;;  %v2323_v12 = vsel %vm441_vm0, %v2313_v58, 0 }
 0xb75   :  { %v2240_v42 = vpop.permute.xlu1 %2239  ;;  %v2013_v47 = vmul.f32 %v6809_v51, %v6797_v5 }
 0xb76   :  { %6218 = vmatprep.mubr.msk.bf16.mxu1 %vm441_vm0, %v2240_v42  ;;  %v2019_v43 = vpack.c.bf16 %v2015_v55, %v2014_v29 }
 0xb77   :  { %v2018_v32 = vpack.c.bf16 %v2013_v47, %v2012_v57  ;;  %v2242_v56 = vpop.permute.xlu0 %2241 }
 0xb79   :  { %6200 = vmatprep.mubr.msk.bf16.mxu0 %vm572_vm1, %v2018_v32  ;;  %v2315_v27 = vpop.permute.xlu1 %2314 }
 0xb7a   :  { %6201 = vmatmul.mubr.msk.bf16.vlgmr.msra.gmra.mrb[40].mxu0 %vm572_vm1, %v2019_v43  ;;  %6215 = vmatpush3.bf16.xpose.msra.mxu1 %v2254_v35  ;;  %v2326_v34 = vsel %vm441_vm0, %v2315_v27, 0 }
 0xb7b   :  { %6205 = vmatpush3.bf16.msra.mxu0 %v6557_v62  ;;  %6487 = vmatprep.subr.msk.bf16.mxu1 %vm441_vm0, %v2246_v44  ;;  %v2309_v31 = vpop.permute.xlu0 %2308 }
 0xb7c   :  { %6488 = vmatprep.subr.msk.bf16.mxu0 %vm441_vm0, %v2313_v58 }
 0xb7d   :  { %v2311_v36 = vpop.permute.xlu1 %2310 }
 0xb82   :  { %6217 = vmatpush3.bf16.xpose.msra.mxu1 %v2257_v59 }
 0xb89   :  { %6219 = vmatmul.mubr.msk.bf16.vlgmr.msra.gmra.mrb[52].mxu1 %vm441_vm0, %v2242_v56 }
 0xc47   :  { %v6194_v60 = vpop.f32.mrb[48].mxu1 }
 0xc48   :  { %v2066_v6 = vpop.f32.mrb[49].mxu1 }
 0xc49   :  { %v6195_v8 = vpop.f32.mrb[50].mxu1 }
 0xc4a   :  { %v2143_v10 = vpack.c.bf16 %v6195_v8, %v6194_v60  ;;  %v2069_v13 = vpop.f32.mrb[51].mxu1 }
 0xc4b   :  { %v2142_v14 = vpack.c.bf16 %v2069_v13, %v2066_v6 }
 0xc4d   :  { %v6202_v15 = vpop.f32.mrb[40].mxu0  ;;  %6206 = vmatprep.mubr.msk.bf16.mxu0 %vm441_vm0, %v2142_v14 }
 0xc4e   :  { %v2127_v18 = vpop.f32.mrb[41].mxu0  ;;  %6207 = vmatmul.mubr.msk.bf16.vlgmr.msra.gmra.mrb[24].mxu0 %vm441_vm0, %v2143_v10 }
 0xc4f   :  { %6223 = vmatpush3.bf16.xpose.msra.mxu0 %v2323_v12  ;;  %v6203_v28 = vpop.f32.mrb[42].mxu0 }
 0xc50   :  { %v2145_v30 = vpack.c.bf16 %v6203_v28, %v6202_v15  ;;  %6489 = vmatprep.subr.msk.bf16.mxu0 %vm441_vm0, %v2315_v27  ;;  %v2130_v5 = vpop.f32.mrb[43].mxu0 }
 0xc51   :  { %v2144_v7 = vpack.c.bf16 %v2130_v5, %v2127_v18 }
 0xc53   :  { %6210 = vmatprep.mubr.msk.bf16.mxu0 %vm441_vm0, %v2144_v7 }
 0xc56   :  { %6211 = vmatmul.mubr.msk.bf16.gmra.mrb[28].mxu0 %vm441_vm0, %v2145_v30 }
 0xc57   :  { %6225 = vmatpush3.bf16.xpose.msra.mxu0 %v2326_v34  ;;  %6226 = vmatprep.mubr.msk.bf16.mxu0 %vm441_vm0, %v2309_v31 }
 0xc5c   :  { %v6220_v9 = vpop.f32.mrb[52].mxu1 }
 0xc5d   :  { %v2293_v40 = vpop.f32.mrb[53].mxu1  ;;  %v2379_v1 = vmul.f32 0.25, %v6220_v9 }
 0xc5e   :  { %v2377_v45 = vmul.f32 0.25, %v2293_v40  ;;  %v6221_v61 = vpop.f32.mrb[54].mxu1  ;;  %6227 = vmatmul.mubr.msk.bf16.vlgmr.msra.gmra.mrb[44].mxu0 %vm441_vm0, %v2311_v36 }
 0xc5f   :  { %v2296_v37 = vpop.f32.mrb[55].mxu1  ;;  %v2380_v63 = vmul.f32 0.25, %v6221_v61  ;;  %v2391_v4 = vsel %vm572_vm1, %v2379_v1, -inf }
 0xc60   :  { %v2378_v11 = vmul.f32 0.25, %v2296_v37  ;;  %v2385_v54 = vsel %vm572_vm1, %v2377_v45, -inf }
 0xc61   :  { %2386 = vmax.xlane.f32.xlu0 %v2385_v54  ;;  %v2394_v17 = vsel %vm572_vm1, %v2380_v63, -inf }
 0xc62   :  { %v2388_v62 = vsel %vm572_vm1, %v2378_v11, -inf }
 0xc63   :  { %2389 = vmax.xlane.f32.xlu1 %v2388_v62 }
 0xc65   :  { %2392 = vmax.xlane.f32.xlu0 %v2391_v4 }
 0xc69   :  { %2395 = vmax.xlane.f32.xlu0 %v2394_v17 }
 0xcee   :  { %v2387_v25 = vpop.xlane.xlu0 %2386 }
 0xcef   :  { %v2409_v44 = vsub.f32 %v2377_v45, %v2387_v25 }
 0xcf0   :  { %v2390_v33 = vpop.xlane.xlu1 %2389 }
 0xcf1   :  { %v2410_v16 = vsub.f32 %v2378_v11, %v2390_v33  ;;  %v2417_v21 = vmul.f32 1.442695, %v2409_v44 }
 0xcf2   :  { %v2393_v26 = vpop.xlane.xlu0 %2392 }
 0xcf3   :  { %v2411_v51 = vsub.f32 %v2379_v1, %v2393_v26  ;;  %v2419_v55 = vmul.f32 1.442695, %v2410_v16  ;;  %6810 = vpow2.f32 %v2417_v21 }
 0xcf5   :  { %v2421_v57 = vmul.f32 1.442695, %v2411_v51  ;;  %6812 = vpow2.f32 %v2419_v55 }
 0xcf6   :  { %v2396_v19 = vpop.xlane.xlu0 %2395 }
 0xcf7   :  { %v2412_v42 = vsub.f32 %v2380_v63, %v2396_v19  ;;  %6814 = vpow2.f32 %v2421_v57 }
 0xcf9   :  { %v2423_v29 = vmul.f32 1.442695, %v2412_v42 }
 0xcfb   :  { %6816 = vpow2.f32 %v2423_v29 }
 0xcfd   :  { %v6811_v13 = vpop.eup %6810 }
 0xcfe   :  { %v2433_v18 = vsel %vm572_vm1, %v6811_v13, 0.0 }
 0xcff   :  { %v6813_v15 = vpop.eup %6812 }
 0xd00   :  { %v2436_v27 = vsel %vm572_vm1, %v6813_v15, 0.0 }
 0xd01   :  { %v7679_v12 = vpop.eup %6814 }
 0xd02   :  { %v2439_v30 = vsel %vm572_vm1, %v7679_v12, 0.0 }
 0xd05   :  { %v7682_v28 = vpop.eup %6816 }
 0xd06   :  { %v2442_v5 = vsel %vm572_vm1, %v7682_v28, 0.0 }
 0xd31   :  { %v6228_v47 = vpop.f32.mrb[44].mxu0 }
 0xd32   :  { %v2362_v32 = vpop.f32.mrb[45].mxu0  ;;  %v2383_v59 = vmul.f32 0.25, %v6228_v47  ;;  %v6558_v47 = vld [vmem:[#allocation7 + $0x20] sm:$0xff]  }
 0xd33   :  { %v2381_v43 = vmul.f32 0.25, %v2362_v32  ;;  %v6229_v35 = vpop.f32.mrb[46].mxu0  ;;  %6246 = vmatprep.subr.bf16.mxu0 %v6558_v47 }
 0xd34   :  { %v2365_v58 = vpop.f32.mrb[47].mxu0  ;;  %v2384_v6 = vmul.f32 0.25, %v6229_v35  ;;  %v2403_v10 = vsel %vm572_vm1, %v2383_v59, -inf  ;;  %6247 = vmatpush3.bf16.msra.mxu0 %v6558_v47 }
 0xd35   :  { %v2382_v56 = vmul.f32 0.25, %v2365_v58  ;;  %v2397_v60 = vsel %vm572_vm1, %v2381_v43, -inf }
 0xd36   :  { %2398 = vmax.xlane.f32.xlu0 %v2397_v60  ;;  %v2406_v14 = vsel %vm572_vm1, %v2384_v6, -inf }
 0xd37   :  { %v2400_v8 = vsel %vm572_vm1, %v2382_v56, -inf }
 0xd38   :  { %2401 = vmax.xlane.f32.xlu1 %v2400_v8 }
 0xd3a   :  { %2404 = vmax.xlane.f32.xlu0 %v2403_v10 }
 0xd3c   :  { %2407 = vmax.xlane.f32.xlu1 %v2406_v14 }
 0xd3e   :  { %2434 = vadd.xlane.f32.xlu0 %v2433_v18 }
 0xd40   :  { %2437 = vadd.xlane.f32.xlu1 %v2436_v27 }
 0xd42   :  { %2440 = vadd.xlane.f32.xlu0 %v2439_v30 }
 0xd44   :  { %2443 = vadd.xlane.f32.xlu1 %v2442_v5 }
 0xd55   :  { %2479 = vrot.lane.b32.xlu1 %v7275_v20, %s7094_s0 }
 0xd59   :  { %2538 = vrot.lane.b32.xlu1 %v7301_v48, %s7094_s0 }
 0xdc3   :  { %v2399_v7 = vpop.xlane.xlu0 %2398 }
 0xdc4   :  { %v2413_v31 = vsub.f32 %v2381_v43, %v2399_v7 }
 0xdc5   :  { %v2402_v34 = vpop.xlane.xlu1 %2401 }
 0xdc6   :  { %v2425_v9 = vmul.f32 1.442695, %v2413_v31  ;;  %v2414_v40 = vsub.f32 %v2382_v56, %v2402_v34 }
 0xdc7   :  { %v2405_v36 = vpop.xlane.xlu0 %2404 }
 0xdc8   :  { %v2415_v45 = vsub.f32 %v2383_v59, %v2405_v36  ;;  %6818 = vpow2.f32 %v2425_v9  ;;  %v2427_v54 = vmul.f32 1.442695, %v2414_v40 }
 0xdc9   :  { %v2408_v61 = vpop.xlane.xlu1 %2407 }
 0xdca   :  { %v2429_v37 = vmul.f32 1.442695, %v2415_v45  ;;  %v2416_v1 = vsub.f32 %v2384_v6, %v2408_v61 }
 0xdcb   :  { %v2435_v11 = vpop.xlane.xlu0 %2434 }
 0xdcc   :  { %6820 = vpow2.f32 %v2429_v37  ;;  %v2431_v62 = vmul.f32 1.442695, %v2416_v1 }
 0xdcd   :  { %6822 = vrcp.f32 %v2435_v11  ;;  %v2438_v63 = vpop.xlane.xlu1 %2437 }
 0xdce   :  { %6824 = vpow2.f32 %v2431_v62 }
 0xdcf   :  { %6826 = vrcp.f32 %v2438_v63  ;;  %v2441_v43 = vpop.xlane.xlu0 %2440 }
 0xdd0   :  { %6828 = vpow2.f32 %v2427_v54 }
 0xdd1   :  { %v2444_v29 = vpop.xlane.xlu1 %2443 }
 0xdd2   :  { %v7692_v4 = vpop.eup %6818  ;;  %6830 = vrcp.f32 %v2444_v29 }
 0xdd3   :  { %v2445_v55 = vsel %vm572_vm1, %v7692_v4, 0.0  ;;  %6832 = vrcp.f32 %v2441_v43 }
 0xdd5   :  { %v2480_v32 = vpop.permute.xlu1 %2479 }
 0xdd6   :  { %v7694_v17 = vpop.eup %6820 }
 0xdd7   :  { %v6823_v25 = vpop.eup %6822  ;;  %v2451_v26 = vsel %vm572_vm1, %v7694_v17, 0.0 }
 0xdd8   :  { %v7698_v33 = vpop.eup %6824  ;;  %2452 = vadd.xlane.f32.xlu0 %v2451_v26  ;;  %v2465_v21 = vmul.f32 %v6823_v25, %v6811_v13 }
 0xdd9   :  { %v6827_v44 = vpop.eup %6826  ;;  %v2454_v16 = vsel %vm572_vm1, %v7698_v33, 0.0  ;;  %v2539_v35 = vpop.permute.xlu1 %2538 }
 0xdda   :  { %v6829_v19 = vpop.eup %6828  ;;  %2455 = vadd.xlane.f32.xlu1 %v2454_v16  ;;  %v2466_v51 = vmul.f32 %v6827_v44, %v6813_v15 }
 0xddb   :  { %v2448_v57 = vsel %vm572_vm1, %v6829_v19, 0.0 }
 0xddc   :  { %2446 = vadd.xlane.f32.xlu0 %v2445_v55  ;;  %v2473_v42 = vpack.c.bf16 %v2466_v51, %v2465_v21  ;;  %v6831_v6 = vpop.eup %6830 }
 0xddd   :  { %v6833_v10 = vpop.eup %6832  ;;  %v2468_v13 = vmul.f32 %v6831_v6, %v7682_v28 }
 0xdde   :  { %6234 = vmatprep.mubr.msk.bf16.mxu1 %vm572_vm1, %v2473_v42  ;;  %2449 = vadd.xlane.f32.xlu1 %v2448_v57  ;;  %v2467_v15 = vmul.f32 %v6833_v10, %v7679_v12 }
 0xde0   :  { %v2474_v30 = vpack.c.bf16 %v2468_v13, %v2467_v15 }
 0xdef   :  { %2540 = vrot.lane.b32.xlu1 %v7298_v46, %s7094_s0 }
 0xdf2   :  { %2477 = vrot.lane.b32.xlu0 %v7278_v22, %s7094_s0 }
 0xdf3   :  { %2702 = vrot.lane.b32.xlu1 %v7266_v3, %s7101_s13 }
 0xdf6   :  { %2700 = vrot.lane.b32.xlu0 %v7251_v53, %s7101_s13 }
 0xdf7   :  { %2696 = vrot.lane.b32.xlu1 %v7249_v52, %s7101_s13 }
 0xdfa   :  { %2769 = vrot.lane.b32.xlu0 %v7282_v24, %s7101_s13 }
 0xdfb   :  { %2771 = vrot.lane.b32.xlu1 %v7306_v50, %s7101_s13 }
 0xdfe   :  { %2698 = vrot.lane.b32.xlu0 %v7264_v2, %s7101_s13 }
 0xdff   :  { %2767 = vrot.lane.b32.xlu1 %v7303_v49, %s7101_s13 }
 0xe02   :  { %2765 = vrot.lane.b32.xlu0 %v7280_v23, %s7101_s13 }
 0xe65   :  { %v2453_v58 = vpop.xlane.xlu0 %2452 }
 0xe67   :  { %v2456_v59 = vpop.xlane.xlu1 %2455 }
 0xe69   :  { %v2447_v56 = vpop.xlane.xlu0 %2446 }
 0xe6a   :  { %6834 = vrcp.f32 %v2447_v56 }
 0xe6b   :  { %6836 = vrcp.f32 %v2456_v59  ;;  %v2450_v60 = vpop.xlane.xlu1 %2449 }
 0xe6c   :  { %6838 = vrcp.f32 %v2450_v60 }
 0xe6d   :  { %6840 = vrcp.f32 %v2453_v58  ;;  %v2478_v8 = vpop.permute.xlu0 %2477 }
 0xe6e   :  { %6230 = vmatprep.subr.bf16.mxu1 %v2478_v8 }
 0xe6f   :  { %6231 = vmatpush3.bf16.msra.mxu1 %v2478_v8  ;;  %v2541_v18 = vpop.permute.xlu1 %2540 }
 0xe70   :  { %6232 = vmatprep.subr.bf16.mxu1 %v2480_v32 }
 0xe71   :  { %v2701_v14 = vpop.permute.xlu0 %2700 }
 0xe72   :  { %v2711_v1 = vsel %vm441_vm0, %v2701_v14, 0 }
 0xe73   :  { %6233 = vmatpush3.bf16.msra.mxu1 %v2480_v32  ;;  %v2703_v12 = vpop.permute.xlu1 %2702 }
 0xe74   :  { %v6835_v27 = vpop.eup %6834  ;;  %6238 = vmatprep.subr.bf16.mxu1 %v2539_v35  ;;  %v2714_v11 = vsel %vm441_vm0, %v2703_v12, 0 }
 0xe75   :  { %v6837_v5 = vpop.eup %6836  ;;  %v2770_v7 = vpop.permute.xlu0 %2769  ;;  %v2469_v28 = vmul.f32 %v6835_v27, %v7692_v4 }
 0xe76   :  { %v6839_v31 = vpop.eup %6838  ;;  %6235 = vmatmul.mubr.msk.bf16.vlgmr.msra.gmra.mrb[56].mxu1 %vm572_vm1, %v2474_v30  ;;  %6492 = vmatprep.subr.msk.bf16.mxu0 %vm441_vm0, %v2770_v7  ;;  %v2472_v36 = vmul.f32 %v6837_v5, %v7698_v33  ;;  %v2780_v33 = vsel %vm441_vm0, %v2770_v7, 0 }
 0xe77   :  { %v6841_v34 = vpop.eup %6840  ;;  %6239 = vmatpush3.bf16.msra.mxu1 %v2539_v35  ;;  %v2470_v9 = vmul.f32 %v6839_v31, %v6829_v19  ;;  %v2697_v37 = vpop.permute.xlu1 %2696 }
 0xe78   :  { %6240 = vmatprep.subr.bf16.mxu1 %v2541_v18  ;;  %v2471_v45 = vmul.f32 %v6841_v34, %v7694_v17 }
 0xe79   :  { %v2475_v40 = vpack.c.bf16 %v2470_v9, %v2469_v28  ;;  %v2699_v54 = vpop.permute.xlu0 %2698 }
 0xe7a   :  { %v2476_v61 = vpack.c.bf16 %v2472_v36, %v2471_v45 }
 0xe7b   :  { %6241 = vmatpush3.bf16.msra.mxu1 %v2541_v18  ;;  %6242 = vmatprep.mubr.msk.bf16.mxu1 %vm572_vm1, %v2475_v40  ;;  %v2772_v44 = vpop.permute.xlu1 %2771 }
 0xe7c   :  { %6490 = vmatprep.subr.msk.bf16.mxu1 %vm441_vm0, %v2701_v14  ;;  %v2783_v57 = vsel %vm441_vm0, %v2772_v44, 0 }
 0xe7d   :  { %v2766_v47 = vpop.permute.xlu0 %2765 }
 0xe7e   :  { %6243 = vmatmul.mubr.msk.bf16.vlgmr.msra.gmra.mrb[60].mxu1 %vm572_vm1, %v2476_v61 }
 0xe7f   :  { %6260 = vmatprep.mubr.msk.bf16.mxu1 %vm441_vm0, %v2697_v37  ;;  %v2768_v29 = vpop.permute.xlu1 %2767 }
 0xe84   :  { %6257 = vmatpush3.bf16.xpose.msra.mxu1 %v2711_v1 }
 0xe85   :  { %6491 = vmatprep.subr.msk.bf16.mxu1 %vm441_vm0, %v2703_v12 }
 0xe8c   :  { %6259 = vmatpush3.bf16.xpose.msra.mxu1 %v2714_v11 }
 0xe93   :  { %6261 = vmatmul.mubr.msk.bf16.vlgmr.msra.gmra.mrb[64].mxu1 %vm441_vm0, %v2699_v54 }
 0xf49   :  { %v6236_v62 = vpop.f32.mrb[56].mxu1 }
 0xf4a   :  { %v2523_v63 = vpop.f32.mrb[57].mxu1 }
 0xf4b   :  { %v6237_v4 = vpop.f32.mrb[58].mxu1 }
 0xf4c   :  { %v2600_v17 = vpack.c.bf16 %v6237_v4, %v6236_v62  ;;  %v2526_v25 = vpop.f32.mrb[59].mxu1 }
 0xf4d   :  { %v2599_v26 = vpack.c.bf16 %v2526_v25, %v2523_v63 }
 0xf4f   :  { %6248 = vmatprep.mubr.msk.bf16.mxu0 %vm441_vm0, %v2599_v26 }
 0xf50   :  { %6249 = vmatmul.mubr.msk.bf16.vlgmr.msra.gmra.mrb[24].mxu0 %vm441_vm0, %v2600_v17 }
 0xf51   :  { %6265 = vmatpush3.bf16.xpose.msra.mxu0 %v2780_v33  ;;  %v6244_v16 = vpop.f32.mrb[60].mxu1 }
 0xf52   :  { %6493 = vmatprep.subr.msk.bf16.mxu0 %vm441_vm0, %v2772_v44  ;;  %v2584_v19 = vpop.f32.mrb[61].mxu1 }
 0xf53   :  { %v6245_v21 = vpop.f32.mrb[62].mxu1 }
 0xf54   :  { %v2602_v51 = vpack.c.bf16 %v6245_v21, %v6244_v16  ;;  %v2587_v55 = vpop.f32.mrb[63].mxu1 }
 0xf55   :  { %v2601_v42 = vpack.c.bf16 %v2587_v55, %v2584_v19 }
 0xf57   :  { %6252 = vmatprep.mubr.msk.bf16.mxu0 %vm441_vm0, %v2601_v42 }
 0xf58   :  { %6253 = vmatmul.mubr.msk.bf16.gmra.mrb[28].mxu0 %vm441_vm0, %v2602_v51 }
 0xf59   :  { %6267 = vmatpush3.bf16.xpose.msra.mxu0 %v2783_v57  ;;  %6268 = vmatprep.mubr.msk.bf16.mxu0 %vm441_vm0, %v2766_v47 }
 0xf60   :  { %6269 = vmatmul.mubr.msk.bf16.vlgmr.msra.gmra.mrb[48].mxu0 %vm441_vm0, %v2768_v29 }
 0xf66   :  { %v6262_v32 = vpop.f32.mrb[64].mxu1 }
 0xf67   :  { %v2750_v43 = vpop.f32.mrb[65].mxu1  ;;  %v2836_v56 = vmul.f32 0.25, %v6262_v32 }
 0xf68   :  { %v2834_v35 = vmul.f32 0.25, %v2750_v43  ;;  %v6263_v58 = vpop.f32.mrb[66].mxu1 }
 0xf69   :  { %v2753_v59 = vpop.f32.mrb[67].mxu1  ;;  %v2837_v10 = vmul.f32 0.25, %v6263_v58  ;;  %v2848_v13 = vsel %vm572_vm1, %v2836_v56, -inf }
 0xf6a   :  { %v2835_v60 = vmul.f32 0.25, %v2753_v59  ;;  %v2842_v6 = vsel %vm572_vm1, %v2834_v35, -inf }
 0xf6b   :  { %2843 = vmax.xlane.f32.xlu0 %v2842_v6  ;;  %v2851_v14 = vsel %vm572_vm1, %v2837_v10, -inf }
 0xf6c   :  { %v2845_v8 = vsel %vm572_vm1, %v2835_v60, -inf }
 0xf6d   :  { %2846 = vmax.xlane.f32.xlu1 %v2845_v8 }
 0xf6f   :  { %2849 = vmax.xlane.f32.xlu0 %v2848_v13 }
 0xf73   :  { %2852 = vmax.xlane.f32.xlu0 %v2851_v14 }
 0xff8   :  { %v2844_v15 = vpop.xlane.xlu0 %2843 }
 0xff9   :  { %v2866_v30 = vsub.f32 %v2834_v35, %v2844_v15 }
 0xffa   :  { %v2847_v27 = vpop.xlane.xlu1 %2846 }
 0xffb   :  { %v2867_v5 = vsub.f32 %v2835_v60, %v2847_v27  ;;  %v2874_v31 = vmul.f32 1.442695, %v2866_v30 }
 0xffc   :  { %v2850_v18 = vpop.xlane.xlu0 %2849 }
 0xffd   :  { %v2868_v34 = vsub.f32 %v2836_v56, %v2850_v18  ;;  %v2876_v28 = vmul.f32 1.442695, %v2867_v5  ;;  %6842 = vpow2.f32 %v2874_v31 }
 0xfff   :  { %v2878_v36 = vmul.f32 1.442695, %v2868_v34  ;;  %6844 = vpow2.f32 %v2876_v28 }
0x1000   :  { %v2853_v7 = vpop.xlane.xlu0 %2852 }
0x1001   :  { %v2869_v9 = vsub.f32 %v2837_v10, %v2853_v7  ;;  %6846 = vpow2.f32 %v2878_v36 }
0x1003   :  { %v2880_v40 = vmul.f32 1.442695, %v2869_v9 }
0x1005   :  { %6848 = vpow2.f32 %v2880_v40 }
0x1007   :  { %v6843_v25 = vpop.eup %6842 }
0x1008   :  { %v2890_v44 = vsel %vm572_vm1, %v6843_v25, 0.0 }
0x1009   :  { %v6845_v33 = vpop.eup %6844 }
0x100a   :  { %v2893_v19 = vsel %vm572_vm1, %v6845_v33, 0.0 }
0x100b   :  { %v7759_v16 = vpop.eup %6846 }
0x100c   :  { %v2896_v51 = vsel %vm572_vm1, %v7759_v16, 0.0 }
0x100f   :  { %v7762_v21 = vpop.eup %6848 }
0x1010   :  { %v2899_v55 = vsel %vm572_vm1, %v7762_v21, 0.0 }
0x1033   :  { %v6270_v12 = vpop.f32.mrb[48].mxu0 }
0x1034   :  { %v2819_v45 = vpop.f32.mrb[49].mxu0  ;;  %v2840_v11 = vmul.f32 0.25, %v6270_v12 }
0x1035   :  { %v2838_v61 = vmul.f32 0.25, %v2819_v45  ;;  %v6271_v37 = vpop.f32.mrb[50].mxu0 }
0x1036   :  { %v2822_v1 = vpop.f32.mrb[51].mxu0  ;;  %v2841_v63 = vmul.f32 0.25, %v6271_v37  ;;  %v2860_v17 = vsel %vm572_vm1, %v2840_v11, -inf }
0x1037   :  { %v2839_v54 = vmul.f32 0.25, %v2822_v1  ;;  %v2854_v62 = vsel %vm572_vm1, %v2838_v61, -inf }
0x1038   :  { %2855 = vmax.xlane.f32.xlu0 %v2854_v62  ;;  %v2863_v26 = vsel %vm572_vm1, %v2841_v63, -inf }
0x1039   :  { %v2857_v4 = vsel %vm572_vm1, %v2839_v54, -inf }
0x103a   :  { %2858 = vmax.xlane.f32.xlu1 %v2857_v4  ;;  %v6559_v4 = vld [vmem:[#allocation7 + $0x28] sm:$0xff]  }
0x103c   :  { %2861 = vmax.xlane.f32.xlu0 %v2860_v17 }
0x103e   :  { %2864 = vmax.xlane.f32.xlu1 %v2863_v26 }
0x1040   :  { %2891 = vadd.xlane.f32.xlu0 %v2890_v44 }
0x1042   :  { %2894 = vadd.xlane.f32.xlu1 %v2893_v19 }
0x1044   :  { %2897 = vadd.xlane.f32.xlu0 %v2896_v51 }
0x1046   :  { %2900 = vadd.xlane.f32.xlu1 %v2899_v55 }
0x1057   :  { %2936 = vrot.lane.b32.xlu1 %v7275_v20, %s7101_s13 }
0x105b   :  { %2995 = vrot.lane.b32.xlu1 %v7301_v48, %s7101_s13 }
0x10c5   :  { %v2856_v42 = vpop.xlane.xlu0 %2855 }
0x10c6   :  { %v2870_v57 = vsub.f32 %v2838_v61, %v2856_v42 }
0x10c7   :  { %v2859_v47 = vpop.xlane.xlu1 %2858 }
0x10c8   :  { %v2882_v29 = vmul.f32 1.442695, %v2870_v57  ;;  %v2871_v43 = vsub.f32 %v2839_v54, %v2859_v47 }
0x10c9   :  { %v2862_v32 = vpop.xlane.xlu0 %2861 }
0x10ca   :  { %v2872_v35 = vsub.f32 %v2840_v11, %v2862_v32  ;;  %6850 = vpow2.f32 %v2882_v29  ;;  %v2884_v6 = vmul.f32 1.442695, %v2871_v43 }
0x10cb   :  { %v2865_v58 = vpop.xlane.xlu1 %2864 }
0x10cc   :  { %v2886_v59 = vmul.f32 1.442695, %v2872_v35  ;;  %v2873_v56 = vsub.f32 %v2841_v63, %v2865_v58 }
0x10cd   :  { %v2892_v60 = vpop.xlane.xlu0 %2891 }
0x10ce   :  { %6852 = vpow2.f32 %v2886_v59  ;;  %v2888_v8 = vmul.f32 1.442695, %v2873_v56 }
0x10cf   :  { %6854 = vrcp.f32 %v2892_v60  ;;  %v2895_v10 = vpop.xlane.xlu1 %2894 }
0x10d0   :  { %6856 = vpow2.f32 %v2888_v8 }
0x10d1   :  { %6858 = vrcp.f32 %v2895_v10  ;;  %v2898_v61 = vpop.xlane.xlu0 %2897 }
0x10d2   :  { %6860 = vpow2.f32 %v2884_v6 }
0x10d3   :  { %v2901_v13 = vpop.xlane.xlu1 %2900 }
0x10d4   :  { %v7772_v14 = vpop.eup %6850  ;;  %6862 = vrcp.f32 %v2901_v13 }
0x10d5   :  { %v2902_v12 = vsel %vm572_vm1, %v7772_v14, 0.0  ;;  %6864 = vrcp.f32 %v2898_v61 }
0x10d7   :  { %v2937_v15 = vpop.permute.xlu1 %2936 }
0x10d8   :  { %v7774_v18 = vpop.eup %6852 }
0x10d9   :  { %v6855_v27 = vpop.eup %6854  ;;  %v2908_v30 = vsel %vm572_vm1, %v7774_v18, 0.0 }
0x10da   :  { %v6857_v5 = vpop.eup %6856  ;;  %2909 = vadd.xlane.f32.xlu0 %v2908_v30  ;;  %v2922_v9 = vmul.f32 %v6855_v27, %v6843_v25 }
0x10db   :  { %v6859_v7 = vpop.eup %6858  ;;  %v2996_v31 = vpop.permute.xlu1 %2995  ;;  %v2911_v34 = vsel %vm572_vm1, %v6857_v5, 0.0 }
0x10dc   :  { %v6861_v28 = vpop.eup %6860  ;;  %2912 = vadd.xlane.f32.xlu1 %v2911_v34  ;;  %6280 = vmatprep.subr.bf16.mxu0 %v2996_v31  ;;  %v2923_v36 = vmul.f32 %v6859_v7, %v6845_v33 }
0x10dd   :  { %6281 = vmatpush3.bf16.msra.mxu0 %v2996_v31  ;;  %v2905_v45 = vsel %vm572_vm1, %v6861_v28, 0.0 }
0x10de   :  { %2903 = vadd.xlane.f32.xlu0 %v2902_v12  ;;  %v2930_v40 = vpack.c.bf16 %v2923_v36, %v2922_v9  ;;  %v6863_v62 = vpop.eup %6862 }
0x10df   :  { %v6865_v17 = vpop.eup %6864  ;;  %v2925_v26 = vmul.f32 %v6863_v62, %v7762_v21 }
0x10e0   :  { %6276 = vmatprep.mubr.msk.bf16.mxu1 %vm572_vm1, %v2930_v40  ;;  %2906 = vadd.xlane.f32.xlu1 %v2905_v45  ;;  %v2924_v33 = vmul.f32 %v6865_v17, %v7759_v16 }
0x10e2   :  { %v2931_v42 = vpack.c.bf16 %v2925_v26, %v2924_v33 }
0x10f1   :  { %2997 = vrot.lane.b32.xlu1 %v7298_v46, %s7101_s13 }
0x10f4   :  { %2934 = vrot.lane.b32.xlu0 %v7278_v22, %s7101_s13 }
0x10f5   :  { %3159 = vrot.lane.b32.xlu1 %v7266_v3, %s7102_s1 }
0x10f8   :  { %3157 = vrot.lane.b32.xlu0 %v7251_v53, %s7102_s1 }
0x10f9   :  { %3153 = vrot.lane.b32.xlu1 %v7249_v52, %s7102_s1 }
0x10fc   :  { %3226 = vrot.lane.b32.xlu0 %v7282_v24, %s7102_s1 }
0x10fd   :  { %3228 = vrot.lane.b32.xlu1 %v7306_v50, %s7102_s1 }
0x1100   :  { %3155 = vrot.lane.b32.xlu0 %v7264_v2, %s7102_s1 }
0x1101   :  { %3224 = vrot.lane.b32.xlu1 %v7303_v49, %s7102_s1 }
0x1104   :  { %3222 = vrot.lane.b32.xlu0 %v7280_v23, %s7102_s1 }
0x1167   :  { %v2910_v37 = vpop.xlane.xlu0 %2909 }
0x1169   :  { %v2913_v1 = vpop.xlane.xlu1 %2912 }
0x116a   :  { %6866 = vrcp.f32 %v2913_v1 }
0x116b   :  { %v2904_v11 = vpop.xlane.xlu0 %2903 }
0x116c   :  { %6868 = vrcp.f32 %v2904_v11 }
0x116d   :  { %6870 = vrcp.f32 %v2910_v37  ;;  %v2907_v54 = vpop.xlane.xlu1 %2906 }
0x116e   :  { %6872 = vrcp.f32 %v2907_v54 }
0x116f   :  { %v2935_v63 = vpop.permute.xlu0 %2934 }
0x1170   :  { %6272 = vmatprep.subr.bf16.mxu1 %v2935_v63 }
0x1171   :  { %v2998_v25 = vpop.permute.xlu1 %2997  ;;  %6273 = vmatpush3.bf16.msra.mxu1 %v2935_v63 }
0x1172   :  { %6274 = vmatprep.subr.bf16.mxu1 %v2937_v15  ;;  %6282 = vmatprep.subr.bf16.mxu0 %v2998_v25 }
0x1173   :  { %6283 = vmatpush3.bf16.msra.mxu0 %v2998_v25  ;;  %v3158_v19 = vpop.permute.xlu0 %3157 }
0x1174   :  { %6288 = vmatprep.subr.bf16.mxu0 %v6559_v4  ;;  %v6867_v44 = vpop.eup %6866  ;;  %v3168_v59 = vsel %vm441_vm0, %v3158_v19, 0 }
0x1175   :  { %v3160_v51 = vpop.permute.xlu1 %3159  ;;  %6275 = vmatpush3.bf16.msra.mxu1 %v2937_v15  ;;  %v2929_v29 = vmul.f32 %v6867_v44, %v6857_v5 }
0x1176   :  { %v6869_v55 = vpop.eup %6868  ;;  %6494 = vmatprep.subr.msk.bf16.mxu1 %vm441_vm0, %v3158_v19  ;;  %v3171_v60 = vsel %vm441_vm0, %v3160_v51, 0 }
0x1177   :  { %v6871_v57 = vpop.eup %6870  ;;  %v2926_v32 = vmul.f32 %v6869_v55, %v7772_v14  ;;  %v3227_v56 = vpop.permute.xlu0 %3226 }
0x1178   :  { %v6873_v47 = vpop.eup %6872  ;;  %6277 = vmatmul.mubr.msk.bf16.vlgmr.msra.gmra.mrb[68].mxu1 %vm572_vm1, %v2931_v42  ;;  %v2928_v16 = vmul.f32 %v6871_v57, %v7774_v18  ;;  %v3237_v30 = vsel %vm441_vm0, %v3227_v56, 0 }
0x1179   :  { %v3154_v21 = vpop.permute.xlu1 %3153  ;;  %v2927_v43 = vmul.f32 %v6873_v47, %v6861_v28 }
0x117a   :  { %6302 = vmatprep.mubr.msk.bf16.mxu1 %vm441_vm0, %v3154_v21  ;;  %v2933_v58 = vpack.c.bf16 %v2929_v29, %v2928_v16 }
0x117b   :  { %v2932_v35 = vpack.c.bf16 %v2927_v43, %v2926_v32  ;;  %v3156_v6 = vpop.permute.xlu0 %3155 }
0x117d   :  { %6284 = vmatprep.mubr.msk.bf16.mxu0 %vm572_vm1, %v2932_v35  ;;  %v3229_v7 = vpop.permute.xlu1 %3228 }
0x117e   :  { %6285 = vmatmul.mubr.msk.bf16.vlgmr.msra.gmra.mrb[52].mxu0 %vm572_vm1, %v2933_v58  ;;  %6299 = vmatpush3.bf16.xpose.msra.mxu1 %v3168_v59  ;;  %v3240_v36 = vsel %vm441_vm0, %v3229_v7, 0 }
0x117f   :  { %6289 = vmatpush3.bf16.msra.mxu0 %v6559_v4  ;;  %6495 = vmatprep.subr.msk.bf16.mxu1 %vm441_vm0, %v3160_v51  ;;  %v3223_v12 = vpop.permute.xlu0 %3222 }
0x1180   :  { %6496 = vmatprep.subr.msk.bf16.mxu0 %vm441_vm0, %v3227_v56 }
0x1181   :  { %v3225_v45 = vpop.permute.xlu1 %3224 }
0x1186   :  { %6301 = vmatpush3.bf16.xpose.msra.mxu1 %v3171_v60 }
0x118d   :  { %6303 = vmatmul.mubr.msk.bf16.vlgmr.msra.gmra.mrb[72].mxu1 %vm441_vm0, %v3156_v6 }
0x124b   :  { %v6278_v8 = vpop.f32.mrb[68].mxu1 }
0x124c   :  { %v2980_v10 = vpop.f32.mrb[69].mxu1 }
0x124d   :  { %v6279_v13 = vpop.f32.mrb[70].mxu1 }
0x124e   :  { %v3057_v14 = vpack.c.bf16 %v6279_v13, %v6278_v8  ;;  %v2983_v15 = vpop.f32.mrb[71].mxu1 }
0x124f   :  { %v3056_v18 = vpack.c.bf16 %v2983_v15, %v2980_v10 }
0x1251   :  { %v6286_v27 = vpop.f32.mrb[52].mxu0  ;;  %6290 = vmatprep.mubr.msk.bf16.mxu0 %vm441_vm0, %v3056_v18 }
0x1252   :  { %v3041_v5 = vpop.f32.mrb[53].mxu0  ;;  %6291 = vmatmul.mubr.msk.bf16.vlgmr.msra.gmra.mrb[24].mxu0 %vm441_vm0, %v3057_v14 }
0x1253   :  { %6307 = vmatpush3.bf16.xpose.msra.mxu0 %v3237_v30  ;;  %v6287_v31 = vpop.f32.mrb[54].mxu0 }
0x1254   :  { %v3059_v34 = vpack.c.bf16 %v6287_v31, %v6286_v27  ;;  %6497 = vmatprep.subr.msk.bf16.mxu0 %vm441_vm0, %v3229_v7  ;;  %v3044_v28 = vpop.f32.mrb[55].mxu0 }
0x1255   :  { %v3058_v9 = vpack.c.bf16 %v3044_v28, %v3041_v5 }
0x1257   :  { %6294 = vmatprep.mubr.msk.bf16.mxu0 %vm441_vm0, %v3058_v9 }
0x125a   :  { %6295 = vmatmul.mubr.msk.bf16.gmra.mrb[28].mxu0 %vm441_vm0, %v3059_v34 }
0x125b   :  { %6309 = vmatpush3.bf16.xpose.msra.mxu0 %v3240_v36  ;;  %6310 = vmatprep.mubr.msk.bf16.mxu0 %vm441_vm0, %v3223_v12 }
0x1260   :  { %v6304_v40 = vpop.f32.mrb[72].mxu1 }
0x1261   :  { %v3207_v61 = vpop.f32.mrb[73].mxu1  ;;  %v3293_v54 = vmul.f32 0.25, %v6304_v40 }
0x1262   :  { %v3291_v37 = vmul.f32 0.25, %v3207_v61  ;;  %v6305_v1 = vpop.f32.mrb[74].mxu1  ;;  %6311 = vmatmul.mubr.msk.bf16.vlgmr.msra.gmra.mrb[56].mxu0 %vm441_vm0, %v3225_v45 }
0x1263   :  { %v3210_v11 = vpop.f32.mrb[75].mxu1  ;;  %v3294_v17 = vmul.f32 0.25, %v6305_v1  ;;  %v3305_v25 = vsel %vm572_vm1, %v3293_v54, -inf }
0x1264   :  { %v3292_v62 = vmul.f32 0.25, %v3210_v11  ;;  %v3299_v63 = vsel %vm572_vm1, %v3291_v37, -inf }
0x1265   :  { %3300 = vmax.xlane.f32.xlu0 %v3299_v63  ;;  %v3308_v26 = vsel %vm572_vm1, %v3294_v17, -inf }
0x1266   :  { %v3302_v4 = vsel %vm572_vm1, %v3292_v62, -inf }
0x1267   :  { %3303 = vmax.xlane.f32.xlu1 %v3302_v4 }
0x1269   :  { %3306 = vmax.xlane.f32.xlu0 %v3305_v25 }
0x126d   :  { %3309 = vmax.xlane.f32.xlu0 %v3308_v26 }
0x12f2   :  { %v3301_v33 = vpop.xlane.xlu0 %3300 }
0x12f3   :  { %v3323_v51 = vsub.f32 %v3291_v37, %v3301_v33 }
0x12f4   :  { %v3304_v19 = vpop.xlane.xlu1 %3303 }
0x12f5   :  { %v3324_v55 = vsub.f32 %v3292_v62, %v3304_v19  ;;  %v3331_v57 = vmul.f32 1.442695, %v3323_v51 }
0x12f6   :  { %v3307_v44 = vpop.xlane.xlu0 %3306 }
0x12f7   :  { %v3325_v47 = vsub.f32 %v3293_v54, %v3307_v44  ;;  %v3333_v29 = vmul.f32 1.442695, %v3324_v55  ;;  %6874 = vpow2.f32 %v3331_v57 }
0x12f9   :  { %v3335_v32 = vmul.f32 1.442695, %v3325_v47  ;;  %6876 = vpow2.f32 %v3333_v29 }
0x12fa   :  { %v3310_v42 = vpop.xlane.xlu0 %3309 }
0x12fb   :  { %v3326_v21 = vsub.f32 %v3294_v17, %v3310_v42  ;;  %6878 = vpow2.f32 %v3335_v32 }
0x12fd   :  { %v3337_v16 = vmul.f32 1.442695, %v3326_v21 }
0x12ff   :  { %6880 = vpow2.f32 %v3337_v16 }
0x1301   :  { %v6875_v15 = vpop.eup %6874 }
0x1302   :  { %v3347_v30 = vsel %vm572_vm1, %v6875_v15, 0.0 }
0x1303   :  { %v6877_v27 = vpop.eup %6876 }
0x1304   :  { %v3350_v7 = vsel %vm572_vm1, %v6877_v27, 0.0 }
0x1305   :  { %v7835_v5 = vpop.eup %6878 }
0x1306   :  { %v3353_v34 = vsel %vm572_vm1, %v7835_v5, 0.0 }
0x1309   :  { %v7838_v31 = vpop.eup %6880 }
0x130a   :  { %v3356_v28 = vsel %vm572_vm1, %v7838_v31, 0.0 }
0x1335   :  { %v6312_v43 = vpop.f32.mrb[56].mxu0 }
0x1336   :  { %v3276_v35 = vpop.f32.mrb[57].mxu0  ;;  %v3297_v60 = vmul.f32 0.25, %v6312_v43  ;;  %v6560_v43 = vld [vmem:[#allocation7 + $0x30] sm:$0xff]  }
0x1337   :  { %v3295_v58 = vmul.f32 0.25, %v3276_v35  ;;  %v6313_v59 = vpop.f32.mrb[58].mxu0  ;;  %6330 = vmatprep.subr.bf16.mxu0 %v6560_v43 }
0x1338   :  { %v3279_v56 = vpop.f32.mrb[59].mxu0  ;;  %v3298_v10 = vmul.f32 0.25, %v6313_v59  ;;  %v3317_v14 = vsel %vm572_vm1, %v3297_v60, -inf  ;;  %6331 = vmatpush3.bf16.msra.mxu0 %v6560_v43 }
0x1339   :  { %v3296_v6 = vmul.f32 0.25, %v3279_v56  ;;  %v3311_v8 = vsel %vm572_vm1, %v3295_v58, -inf }
0x133a   :  { %3312 = vmax.xlane.f32.xlu0 %v3311_v8  ;;  %v3320_v18 = vsel %vm572_vm1, %v3298_v10, -inf }
0x133b   :  { %v3314_v13 = vsel %vm572_vm1, %v3296_v6, -inf }
0x133c   :  { %3315 = vmax.xlane.f32.xlu1 %v3314_v13 }
0x133e   :  { %3318 = vmax.xlane.f32.xlu0 %v3317_v14 }
0x1340   :  { %3321 = vmax.xlane.f32.xlu1 %v3320_v18 }
0x1342   :  { %3348 = vadd.xlane.f32.xlu0 %v3347_v30 }
0x1344   :  { %3351 = vadd.xlane.f32.xlu1 %v3350_v7 }
0x1346   :  { %3354 = vadd.xlane.f32.xlu0 %v3353_v34 }
0x1348   :  { %3357 = vadd.xlane.f32.xlu1 %v3356_v28 }
0x1359   :  { %3393 = vrot.lane.b32.xlu1 %v7275_v20, %s7102_s1 }
0x135d   :  { %3452 = vrot.lane.b32.xlu1 %v7301_v48, %s7102_s1 }
0x13c7   :  { %v3313_v9 = vpop.xlane.xlu0 %3312 }
0x13c8   :  { %v3327_v36 = vsub.f32 %v3295_v58, %v3313_v9 }
0x13c9   :  { %v3316_v12 = vpop.xlane.xlu1 %3315 }
0x13ca   :  { %v3339_v40 = vmul.f32 1.442695, %v3327_v36  ;;  %v3328_v61 = vsub.f32 %v3296_v6, %v3316_v12 }
0x13cb   :  { %v3319_v45 = vpop.xlane.xlu0 %3318 }
0x13cc   :  { %v3329_v37 = vsub.f32 %v3297_v60, %v3319_v45  ;;  %6882 = vpow2.f32 %v3339_v40  ;;  %v3341_v63 = vmul.f32 1.442695, %v3328_v61 }
0x13cd   :  { %v3322_v1 = vpop.xlane.xlu1 %3321 }
0x13ce   :  { %v3343_v11 = vmul.f32 1.442695, %v3329_v37  ;;  %v3330_v54 = vsub.f32 %v3298_v10, %v3322_v1 }
0x13cf   :  { %v3349_v62 = vpop.xlane.xlu0 %3348 }
0x13d0   :  { %6884 = vpow2.f32 %v3343_v11  ;;  %v3345_v4 = vmul.f32 1.442695, %v3330_v54 }
0x13d1   :  { %6886 = vrcp.f32 %v3349_v62  ;;  %v3352_v17 = vpop.xlane.xlu1 %3351 }
0x13d2   :  { %6888 = vpow2.f32 %v3345_v4 }
0x13d3   :  { %6890 = vrcp.f32 %v3352_v17  ;;  %v3355_v16 = vpop.xlane.xlu0 %3354 }
0x13d4   :  { %6892 = vpow2.f32 %v3341_v63 }
0x13d6   :  { %v7848_v25 = vpop.eup %6882 }
0x13d7   :  { %v3359_v29 = vsel %vm572_vm1, %v7848_v25, 0.0 }
0x13da   :  { %v7850_v26 = vpop.eup %6884 }
0x13db   :  { %v6887_v33 = vpop.eup %6886  ;;  %v3365_v44 = vsel %vm572_vm1, %v7850_v26, 0.0 }
0x13dc   :  { %v7854_v19 = vpop.eup %6888  ;;  %3366 = vadd.xlane.f32.xlu0 %v3365_v44  ;;  %v3379_v57 = vmul.f32 %v6887_v33, %v6875_v15 }
0x13dd   :  { %v6891_v51 = vpop.eup %6890  ;;  %v3368_v55 = vsel %vm572_vm1, %v7854_v19, 0.0 }
0x13de   :  { %v6893_v42 = vpop.eup %6892  ;;  %3369 = vadd.xlane.f32.xlu1 %v3368_v55  ;;  %v3380_v47 = vmul.f32 %v6891_v51, %v6877_v27 }
0x13df   :  { %v3362_v32 = vsel %vm572_vm1, %v6893_v42, 0.0 }
0x13e0   :  { %3360 = vadd.xlane.f32.xlu0 %v3359_v29  ;;  %v3387_v21 = vpack.c.bf16 %v3380_v47, %v3379_v57 }
0x13e2   :  { %6318 = vmatprep.mubr.msk.bf16.mxu1 %vm572_vm1, %v3387_v21  ;;  %3363 = vadd.xlane.f32.xlu1 %v3362_v32 }
0x13f3   :  { %3454 = vrot.lane.b32.xlu1 %v7298_v46, %s7102_s1 }
0x13f6   :  { %3391 = vrot.lane.b32.xlu0 %v7278_v22, %s7102_s1 }
0x13f7   :  { %3616 = vrot.lane.b32.xlu1 %v7266_v3, %s7103_s15 }
0x13fa   :  { %3614 = vrot.lane.b32.xlu0 %v7251_v53, %s7103_s15  ;;  %v3358_v53 = vpop.xlane.xlu1 %3357 }
0x13fb   :  { %3610 = vrot.lane.b32.xlu1 %v7249_v52, %s7103_s15  ;;  %6894 = vrcp.f32 %v3358_v53 }
0x13fc   :  { %6896 = vrcp.f32 %v3355_v16 }
0x13fe   :  { %3683 = vrot.lane.b32.xlu0 %v7282_v24, %s7103_s15  ;;  %v3394_v3 = vpop.permute.xlu1 %3393 }
0x13ff   :  { %3685 = vrot.lane.b32.xlu1 %v7306_v50, %s7103_s15 }
0x1402   :  { %3612 = vrot.lane.b32.xlu0 %v7264_v2, %s7103_s15  ;;  %v3453_v52 = vpop.permute.xlu1 %3452 }
0x1403   :  { %3681 = vrot.lane.b32.xlu1 %v7303_v49, %s7103_s15 }
0x1405   :  { %v6895_v2 = vpop.eup %6894 }
0x1406   :  { %3679 = vrot.lane.b32.xlu0 %v7280_v23, %s7103_s15  ;;  %v6897_v49 = vpop.eup %6896  ;;  %v3382_v23 = vmul.f32 %v6895_v2, %v7838_v31 }
0x1407   :  { %v3381_v60 = vmul.f32 %v6897_v49, %v7835_v5 }
0x1409   :  { %v3388_v10 = vpack.c.bf16 %v3382_v23, %v3381_v60 }
0x1469   :  { %v3367_v35 = vpop.xlane.xlu0 %3366 }
0x146b   :  { %v3370_v24 = vpop.xlane.xlu1 %3369 }
0x146d   :  { %v3361_v58 = vpop.xlane.xlu0 %3360 }
0x146e   :  { %6898 = vrcp.f32 %v3361_v58 }
0x146f   :  { %6900 = vrcp.f32 %v3370_v24  ;;  %v3364_v50 = vpop.xlane.xlu1 %3363 }
0x1470   :  { %6902 = vrcp.f32 %v3364_v50 }
0x1471   :  { %6904 = vrcp.f32 %v3367_v35  ;;  %v3392_v59 = vpop.permute.xlu0 %3391 }
0x1472   :  { %6314 = vmatprep.subr.bf16.mxu1 %v3392_v59 }
0x1473   :  { %6315 = vmatpush3.bf16.msra.mxu1 %v3392_v59  ;;  %v3455_v6 = vpop.permute.xlu1 %3454 }
0x1474   :  { %6316 = vmatprep.subr.bf16.mxu1 %v3394_v3 }
0x1475   :  { %v3615_v56 = vpop.permute.xlu0 %3614 }
0x1476   :  { %v3625_v36 = vsel %vm441_vm0, %v3615_v56, 0 }
0x1477   :  { %6317 = vmatpush3.bf16.msra.mxu1 %v3394_v3  ;;  %v3617_v5 = vpop.permute.xlu1 %3616 }
0x1478   :  { %v6899_v8 = vpop.eup %6898  ;;  %6322 = vmatprep.subr.bf16.mxu1 %v3453_v52  ;;  %v3628_v12 = vsel %vm441_vm0, %v3617_v5, 0 }
0x1479   :  { %v6901_v13 = vpop.eup %6900  ;;  %v3684_v14 = vpop.permute.xlu0 %3683  ;;  %v3383_v27 = vmul.f32 %v6899_v8, %v7848_v25 }
0x147a   :  { %v6903_v15 = vpop.eup %6902  ;;  %6319 = vmatmul.mubr.msk.bf16.vlgmr.msra.gmra.mrb[76].mxu1 %vm572_vm1, %v3388_v10  ;;  %6500 = vmatprep.subr.msk.bf16.mxu0 %vm441_vm0, %v3684_v14  ;;  %v3386_v7 = vmul.f32 %v6901_v13, %v7854_v19  ;;  %v3694_v62 = vsel %vm441_vm0, %v3684_v14, 0 }
0x147b   :  { %v6905_v18 = vpop.eup %6904  ;;  %6323 = vmatpush3.bf16.msra.mxu1 %v3453_v52  ;;  %v3384_v30 = vmul.f32 %v6903_v15, %v6893_v42  ;;  %v3611_v9 = vpop.permute.xlu1 %3610 }
0x147c   :  { %6324 = vmatprep.subr.bf16.mxu1 %v3455_v6  ;;  %v3385_v34 = vmul.f32 %v6905_v18, %v7850_v26 }
0x147d   :  { %v3389_v31 = vpack.c.bf16 %v3384_v30, %v3383_v27  ;;  %v3613_v40 = vpop.permute.xlu0 %3612 }
0x147e   :  { %v3390_v28 = vpack.c.bf16 %v3386_v7, %v3385_v34 }
0x147f   :  { %6325 = vmatpush3.bf16.msra.mxu1 %v3455_v6  ;;  %6326 = vmatprep.mubr.msk.bf16.mxu1 %vm572_vm1, %v3389_v31  ;;  %v3686_v63 = vpop.permute.xlu1 %3685 }
0x1480   :  { %6498 = vmatprep.subr.msk.bf16.mxu1 %vm441_vm0, %v3615_v56  ;;  %v3697_v19 = vsel %vm441_vm0, %v3686_v63, 0 }
0x1481   :  { %v3680_v51 = vpop.permute.xlu0 %3679 }
0x1482   :  { %6327 = vmatmul.mubr.msk.bf16.vlgmr.msra.gmra.mrb[80].mxu1 %vm572_vm1, %v3390_v28 }
0x1483   :  { %6344 = vmatprep.mubr.msk.bf16.mxu1 %vm441_vm0, %v3611_v9  ;;  %v3682_v55 = vpop.permute.xlu1 %3681 }
0x1488   :  { %6341 = vmatpush3.bf16.xpose.msra.mxu1 %v3625_v36 }
0x1489   :  { %6499 = vmatprep.subr.msk.bf16.mxu1 %vm441_vm0, %v3617_v5 }
0x1490   :  { %6343 = vmatpush3.bf16.xpose.msra.mxu1 %v3628_v12 }
0x1497   :  { %6345 = vmatmul.mubr.msk.bf16.vlgmr.msra.gmra.mrb[84].mxu1 %vm441_vm0, %v3613_v40 }
0x154d   :  { %v6320_v45 = vpop.f32.mrb[76].mxu1 }
0x154e   :  { %v3437_v61 = vpop.f32.mrb[77].mxu1 }
0x154f   :  { %v6321_v37 = vpop.f32.mrb[78].mxu1 }
0x1550   :  { %v3514_v1 = vpack.c.bf16 %v6321_v37, %v6320_v45  ;;  %v3440_v11 = vpop.f32.mrb[79].mxu1 }
0x1551   :  { %v3513_v54 = vpack.c.bf16 %v3440_v11, %v3437_v61 }
0x1553   :  { %6332 = vmatprep.mubr.msk.bf16.mxu0 %vm441_vm0, %v3513_v54 }
0x1554   :  { %6333 = vmatmul.mubr.msk.bf16.vlgmr.msra.gmra.mrb[24].mxu0 %vm441_vm0, %v3514_v1 }
0x1555   :  { %6349 = vmatpush3.bf16.xpose.msra.mxu0 %v3694_v62  ;;  %v6328_v4 = vpop.f32.mrb[80].mxu1 }
0x1556   :  { %6501 = vmatprep.subr.msk.bf16.mxu0 %vm441_vm0, %v3686_v63  ;;  %v3498_v17 = vpop.f32.mrb[81].mxu1 }
0x1557   :  { %v6329_v25 = vpop.f32.mrb[82].mxu1 }
0x1558   :  { %v3516_v26 = vpack.c.bf16 %v6329_v25, %v6328_v4  ;;  %v3501_v33 = vpop.f32.mrb[83].mxu1 }
0x1559   :  { %v3515_v44 = vpack.c.bf16 %v3501_v33, %v3498_v17 }
0x155b   :  { %6336 = vmatprep.mubr.msk.bf16.mxu0 %vm441_vm0, %v3515_v44 }
0x155c   :  { %6337 = vmatmul.mubr.msk.bf16.gmra.mrb[28].mxu0 %vm441_vm0, %v3516_v26 }
0x155d   :  { %6351 = vmatpush3.bf16.xpose.msra.mxu0 %v3697_v19  ;;  %6352 = vmatprep.mubr.msk.bf16.mxu0 %vm441_vm0, %v3680_v51 }
0x1564   :  { %6353 = vmatmul.mubr.msk.bf16.vlgmr.msra.gmra.mrb[60].mxu0 %vm441_vm0, %v3682_v55 }
0x156a   :  { %v6346_v42 = vpop.f32.mrb[84].mxu1 }
0x156b   :  { %v3664_v57 = vpop.f32.mrb[85].mxu1  ;;  %v3750_v32 = vmul.f32 0.25, %v6346_v42 }
0x156c   :  { %v3748_v47 = vmul.f32 0.25, %v3664_v57  ;;  %v6347_v29 = vpop.f32.mrb[86].mxu1 }
0x156d   :  { %v3667_v21 = vpop.f32.mrb[87].mxu1  ;;  %v3751_v16 = vmul.f32 0.25, %v6347_v29  ;;  %v3762_v52 = vsel %vm572_vm1, %v3750_v32, -inf }
0x156e   :  { %v3749_v43 = vmul.f32 0.25, %v3667_v21  ;;  %v3756_v53 = vsel %vm572_vm1, %v3748_v47, -inf }
0x156f   :  { %3757 = vmax.xlane.f32.xlu0 %v3756_v53  ;;  %v3765_v35 = vsel %vm572_vm1, %v3751_v16, -inf }
0x1570   :  { %v3759_v3 = vsel %vm572_vm1, %v3749_v43, -inf }
0x1571   :  { %3760 = vmax.xlane.f32.xlu1 %v3759_v3 }
0x1573   :  { %3763 = vmax.xlane.f32.xlu0 %v3762_v52 }
0x1577   :  { %3766 = vmax.xlane.f32.xlu0 %v3765_v35 }
0x15fc   :  { %v3758_v24 = vpop.xlane.xlu0 %3757 }
0x15fd   :  { %v3780_v2 = vsub.f32 %v3748_v47, %v3758_v24 }
0x15fe   :  { %v3761_v50 = vpop.xlane.xlu1 %3760 }
0x15ff   :  { %v3781_v59 = vsub.f32 %v3749_v43, %v3761_v50  ;;  %v3788_v23 = vmul.f32 1.442695, %v3780_v2 }
0x1600   :  { %v3764_v58 = vpop.xlane.xlu0 %3763 }
0x1601   :  { %v3782_v56 = vsub.f32 %v3750_v32, %v3764_v58  ;;  %v3790_v60 = vmul.f32 1.442695, %v3781_v59  ;;  %6906 = vpow2.f32 %v3788_v23 }
0x1603   :  { %v3792_v8 = vmul.f32 1.442695, %v3782_v56  ;;  %6908 = vpow2.f32 %v3790_v60 }
0x1604   :  { %v3767_v49 = vpop.xlane.xlu0 %3766 }
0x1605   :  { %v3783_v6 = vsub.f32 %v3751_v16, %v3767_v49  ;;  %6910 = vpow2.f32 %v3792_v8 }
0x1607   :  { %v3794_v13 = vmul.f32 1.442695, %v3783_v6 }
0x1609   :  { %6912 = vpow2.f32 %v3794_v13 }
0x160b   :  { %v6907_v9 = vpop.eup %6906 }
0x160c   :  { %v3804_v40 = vsel %vm572_vm1, %v6907_v9, 0.0 }
0x160d   :  { %v6909_v12 = vpop.eup %6908 }
0x160e   :  { %v3807_v61 = vsel %vm572_vm1, %v6909_v12, 0.0 }
0x160f   :  { %v7915_v45 = vpop.eup %6910 }
0x1610   :  { %v3810_v1 = vsel %vm572_vm1, %v7915_v45, 0.0 }
0x1613   :  { %v7918_v37 = vpop.eup %6912 }
0x1614   :  { %v3813_v11 = vsel %vm572_vm1, %v7918_v37, 0.0 }
0x1637   :  { %v6354_v10 = vpop.f32.mrb[60].mxu0 }
0x1638   :  { %v3733_v14 = vpop.f32.mrb[61].mxu0  ;;  %v3754_v30 = vmul.f32 0.25, %v6354_v10  ;;  %v6561_v10 = vld [vmem:[#allocation7 + $0x38] sm:$0xff]  }
0x1639   :  { %v3752_v15 = vmul.f32 0.25, %v3733_v14  ;;  %v6355_v18 = vpop.f32.mrb[62].mxu0 }
0x163a   :  { %v3736_v27 = vpop.f32.mrb[63].mxu0  ;;  %v3755_v31 = vmul.f32 0.25, %v6355_v18  ;;  %v3774_v28 = vsel %vm572_vm1, %v3754_v30, -inf }
0x163b   :  { %v3753_v7 = vmul.f32 0.25, %v3736_v27  ;;  %v3768_v5 = vsel %vm572_vm1, %v3752_v15, -inf }
0x163c   :  { %3769 = vmax.xlane.f32.xlu0 %v3768_v5  ;;  %v3777_v36 = vsel %vm572_vm1, %v3755_v31, -inf }
0x163d   :  { %v3771_v34 = vsel %vm572_vm1, %v3753_v7, -inf }
0x163e   :  { %3772 = vmax.xlane.f32.xlu1 %v3771_v34 }
0x1640   :  { %3775 = vmax.xlane.f32.xlu0 %v3774_v28 }
0x1642   :  { %3778 = vmax.xlane.f32.xlu1 %v3777_v36 }
0x1644   :  { %3805 = vadd.xlane.f32.xlu0 %v3804_v40  ;;  %v6564_v40 = vld [vmem:[#allocation8 + $0x4] ss:$8 sps:$4 sm:$0xff]  }
0x1646   :  { %3808 = vadd.xlane.f32.xlu1 %v3807_v61  ;;  %v6565_v61 = vld [vmem:[#allocation8 + $0x10] ss:$8 sps:$4 sm:$0xff]  }
0x1648   :  { %3811 = vadd.xlane.f32.xlu0 %v3810_v1  ;;  %v6568_v1 = vld [vmem:[#allocation8 + $0x20] ss:$8 sps:$4 sm:$0xff]  }
0x164a   :  { %3814 = vadd.xlane.f32.xlu1 %v3813_v11  ;;  %v6573_v11 = vld [vmem:[#allocation8 + $0x34] ss:$8 sps:$4 sm:$0xff]  }
0x165b   :  { %3850 = vrot.lane.b32.xlu1 %v7275_v20, %s7103_s15 }
0x165f   :  { %3909 = vrot.lane.b32.xlu1 %v7301_v48, %s7103_s15 }
0x16c9   :  { %v3770_v54 = vpop.xlane.xlu0 %3769 }
0x16ca   :  { %v3784_v62 = vsub.f32 %v3752_v15, %v3770_v54  ;;  %v6571_v54 = vld [vmem:[#allocation8 + $0x30] ss:$8 sps:$4 sm:$0xff]  }
0x16cb   :  { %v3773_v63 = vpop.xlane.xlu1 %3772 }
0x16cc   :  { %v3796_v4 = vmul.f32 1.442695, %v3784_v62  ;;  %v3785_v25 = vsub.f32 %v3753_v7, %v3773_v63  ;;  %v6576_v62 = vld [vmem:[#allocation8 + $0x44] ss:$8 sps:$4 sm:$0xff]   ;;  %v6574_v63 = vld [vmem:[#allocation8 + $0x40] ss:$8 sps:$4 sm:$0xff]  }
0x16cd   :  { %v3776_v17 = vpop.xlane.xlu0 %3775 }
0x16ce   :  { %v3786_v26 = vsub.f32 %v3754_v30, %v3776_v17  ;;  %6914 = vpow2.f32 %v3796_v4  ;;  %v3798_v55 = vmul.f32 1.442695, %v3785_v25  ;;  %v6579_v4 = vld [vmem:[#allocation8 + $0x54] ss:$8 sps:$4 sm:$0xff]   ;;  %v6577_v17 = vld [vmem:[#allocation8 + $0x50] ss:$8 sps:$4 sm:$0xff]  }
0x16cf   :  { %v3779_v33 = vpop.xlane.xlu1 %3778  ;;  %v6582_v25 = vld [vmem:[#allocation8 + $0x64] ss:$8 sps:$4 sm:$0xff]  }
0x16d0   :  { %v3800_v44 = vmul.f32 1.442695, %v3786_v26  ;;  %v3787_v19 = vsub.f32 %v3755_v31, %v3779_v33  ;;  %v6580_v26 = vld [vmem:[#allocation8 + $0x60] ss:$8 sps:$4 sm:$0xff]   ;;  %v6585_v33 = vld [vmem:[#allocation8 + $0x74] ss:$8 sps:$4 sm:$0xff]  }
0x16d1   :  { %v3806_v51 = vpop.xlane.xlu0 %3805 }
0x16d2   :  { %6916 = vpow2.f32 %v3800_v44  ;;  %v3802_v42 = vmul.f32 1.442695, %v3787_v19  ;;  %v6583_v44 = vld [vmem:[#allocation8 + $0x70] ss:$8 sps:$4 sm:$0xff]   ;;  %v6588_v19 = vld [vmem:[#allocation8 + $0x84] ss:$8 sps:$4 sm:$0xff]  }
0x16d3   :  { %6918 = vrcp.f32 %v3806_v51  ;;  %v3809_v20 = vpop.xlane.xlu1 %3808  ;;  %v6586_v51 = vld [vmem:[#allocation8 + $0x80] ss:$8 sps:$4 sm:$0xff]  }
0x16d4   :  { %6920 = vpow2.f32 %v3802_v42  ;;  %v6589_v42 = vld [vmem:[#allocation8 + $0x90] ss:$8 sps:$4 sm:$0xff]  }
0x16d5   :  { %6922 = vrcp.f32 %v3809_v20  ;;  %v3812_v59 = vpop.xlane.xlu0 %3811  ;;  %v6594_v20 = vld [vmem:[#allocation8 + $0xa4] ss:$8 sps:$4 sm:$0xff]  }
0x16d6   :  { %6924 = vpow2.f32 %v3798_v55  ;;  %v6591_v55 = vld [vmem:[#allocation8 + $0x94] ss:$8 sps:$4 sm:$0xff]  }
0x16d7   :  { %v3815_v48 = vpop.xlane.xlu1 %3814 }
0x16d8   :  { %v6915_v57 = vpop.eup %6914  ;;  %6926 = vrcp.f32 %v3815_v48  ;;  %v6592_v48 = vld [vmem:[#allocation8 + $0xa0] ss:$8 sps:$4 sm:$0xff]  }
0x16d9   :  { %v3816_v58 = vsel %vm572_vm1, %v6915_v57, 0.0  ;;  %6928 = vrcp.f32 %v3812_v59  ;;  %v6598_v59 = vld [vmem:[#allocation8 + $0xc0] ss:$8 sps:$4 sm:$0xff]  }
0x16db   :  { %v3851_v47 = vpop.permute.xlu1 %3850 }
0x16dc   :  { %v6917_v29 = vpop.eup %6916 }
0x16dd   :  { %v6919_v21 = vpop.eup %6918  ;;  %v3822_v32 = vsel %vm572_vm1, %v6917_v29, 0.0 }
0x16de   :  { %v6921_v43 = vpop.eup %6920  ;;  %3823 = vadd.xlane.f32.xlu0 %v3822_v32  ;;  %v3836_v35 = vmul.f32 %v6919_v21, %v6907_v9 }
0x16df   :  { %v6923_v53 = vpop.eup %6922  ;;  %v3910_v3 = vpop.permute.xlu1 %3909  ;;  %v3825_v16 = vsel %vm572_vm1, %v6921_v43, 0.0 }
0x16e0   :  { %v6925_v52 = vpop.eup %6924  ;;  %3826 = vadd.xlane.f32.xlu1 %v3825_v16  ;;  %6364 = vmatprep.subr.bf16.mxu0 %v3910_v3  ;;  %v3837_v24 = vmul.f32 %v6923_v53, %v6909_v12  ;;  %v6562_v12 = vld [vmem:[#allocation8] ss:$8 sps:$4 sm:$0xff]  }
0x16e1   :  { %6365 = vmatpush3.bf16.msra.mxu0 %v3910_v3  ;;  %v3819_v2 = vsel %vm572_vm1, %v6925_v52, 0.0 }
0x16e2   :  { %3817 = vadd.xlane.f32.xlu0 %v3816_v58  ;;  %v3844_v50 = vpack.c.bf16 %v3837_v24, %v3836_v35  ;;  %v6927_v6 = vpop.eup %6926  ;;  %v6597_v58 = vld [vmem:[#allocation8 + $0xb4] ss:$8 sps:$4 sm:$0xff]  }
0x16e3   :  { %v6929_v13 = vpop.eup %6928 }
0x16e4   :  { %6360 = vmatprep.mubr.msk.bf16.mxu1 %vm572_vm1, %v3844_v50  ;;  %3820 = vadd.xlane.f32.xlu1 %v3819_v2  ;;  %v3838_v14 = vmul.f32 %v6929_v13, %v7915_v45  ;;  %v6567_v45 = vld [vmem:[#allocation8 + $0x14] ss:$8 sps:$4 sm:$0xff]   ;;  %v6595_v50 = vld [vmem:[#allocation8 + $0xb0] ss:$8 sps:$4 sm:$0xff]   ;;  %v6600_v2 = vld [vmem:[#allocation8 + $0xc4] ss:$8 sps:$4 sm:$0xff]  }
0x16f5   :  { %3911 = vrot.lane.b32.xlu1 %v7298_v46, %s7103_s15 }
0x16f8   :  { %3848 = vrot.lane.b32.xlu0 %v7278_v22, %s7103_s15  ;;  %v3839_v22 = vmul.f32 %v6927_v6, %v7918_v37  ;;  %v6570_v37 = vld [vmem:[#allocation8 + $0x24] ss:$8 sps:$4 sm:$0xff]   ;;  %v6609_v6 = vld [vmem:[#allocation8 + $0xf4] ss:$8 sps:$4 sm:$0xff]  }
0x16fa   :  { %v3845_v27 = vpack.c.bf16 %v3839_v22, %v3838_v14  ;;  %v6938_v22 = vld [vmem:[#allocation2] sm:$0xff] }
0x176b   :  { %v3824_v49 = vpop.xlane.xlu0 %3823 }
0x176d   :  { %v3827_v23 = vpop.xlane.xlu1 %3826 }
0x176e   :  { %6930 = vrcp.f32 %v3827_v23  ;;  %v6601_v23 = vld [vmem:[#allocation8 + $0xd0] ss:$8 sps:$4 sm:$0xff]  }
0x176f   :  { %v3818_v56 = vpop.xlane.xlu0 %3817 }
0x1770   :  { %6932 = vrcp.f32 %v3818_v56  ;;  %v6606_v56 = vld [vmem:[#allocation8 + $0xe4] ss:$8 sps:$4 sm:$0xff]  }
0x1771   :  { %6934 = vrcp.f32 %v3824_v49  ;;  %v3821_v60 = vpop.xlane.xlu1 %3820  ;;  %v6603_v49 = vld [vmem:[#allocation8 + $0xd4] ss:$8 sps:$4 sm:$0xff]  }
0x1772   :  { %6936 = vrcp.f32 %v3821_v60  ;;  %v6604_v60 = vld [vmem:[#allocation8 + $0xe0] ss:$8 sps:$4 sm:$0xff]  }
0x1773   :  { %v3849_v8 = vpop.permute.xlu0 %3848 }
0x1774   :  { %6356 = vmatprep.subr.bf16.mxu1 %v3849_v8 }
0x1775   :  { %v3912_v46 = vpop.permute.xlu1 %3911  ;;  %6357 = vmatpush3.bf16.msra.mxu1 %v3849_v8  ;;  %v6607_v8 = vld [vmem:[#allocation8 + $0xf0] ss:$8 sps:$4 sm:$0xff]  }
0x1776   :  { %6358 = vmatprep.subr.bf16.mxu1 %v3851_v47  ;;  %6366 = vmatprep.subr.bf16.mxu0 %v3912_v46 }
0x1777   :  { %6367 = vmatpush3.bf16.msra.mxu0 %v3912_v46 }
0x1778   :  { %6372 = vmatprep.subr.bf16.mxu0 %v6561_v10  ;;  %v6931_v15 = vpop.eup %6930 }
0x1779   :  { %6359 = vmatpush3.bf16.msra.mxu1 %v3851_v47  ;;  %v3843_v5 = vmul.f32 %v6931_v15, %v6921_v43 }
0x177a   :  { %v6933_v18 = vpop.eup %6932  ;;  %4541 = vmatprep.subr.bf16.mxu1 %v6564_v40 }
0x177b   :  { %v6935_v30 = vpop.eup %6934  ;;  %v3840_v31 = vmul.f32 %v6933_v18, %v6915_v57  ;;  %v7949_v18 = vld [vmem:[%s8434_s4] ss:$0 sm:$0xff] }
0x177c   :  { %v6937_v7 = vpop.eup %6936  ;;  %6361 = vmatmul.mubr.msk.bf16.vlgmr.msra.gmra.mrb[88].mxu1 %vm572_vm1, %v3845_v27  ;;  %v3842_v28 = vmul.f32 %v6935_v30, %v6917_v29  ;;  %v6939_v30 = vld [vmem:[#allocation2 + $0x8] sm:$0xff] }
0x177d   :  { %v3841_v34 = vmul.f32 %v6937_v7, %v6925_v52  ;;  %4542 = vmatpush1.bf16.msra.mxu1 %v6562_v12  ;;  %v6940_v12 = vld [vmem:[#allocation2 + $0x18] sm:$0xff] }
0x177e   :  { %v3847_v36 = vpack.c.bf16 %v3843_v5, %v3842_v28  ;;  %4543 = vmatprep.subr.bf16.mxu1 %v6567_v45  ;;  %v6941_v45 = vld [vmem:[#allocation2 + $0x38] sm:$0xff] }
0x177f   :  { %v3846_v9 = vpack.c.bf16 %v3841_v34, %v3840_v31 }
0x1781   :  { %6368 = vmatprep.mubr.msk.bf16.mxu0 %vm572_vm1, %v3846_v9  ;;  %4544 = vmatpush1.bf16.msra.mxu1 %v6565_v61 }
0x1782   :  { %6369 = vmatmul.mubr.msk.bf16.vlgmr.msra.gmra.mrb[64].mxu0 %vm572_vm1, %v3847_v36  ;;  %4545 = vmatprep.subr.bf16.mxu1 %v6570_v37 }
0x1783   :  { %6373 = vmatpush3.bf16.msra.mxu0 %v6561_v10  ;;  %v6612_v10 = vld [vmem:[#allocation8 + $0x104] ss:$8 sps:$4 sm:$0xff]  }
0x1785   :  { %4546 = vmatpush1.bf16.msra.mxu1 %v6568_v1  ;;  %v6942_v1 = vld [vmem:[#allocation2 + $0x10] sm:$0xff] }
0x1786   :  { %4547 = vmatprep.subr.bf16.mxu1 %v6573_v11 }
0x1789   :  { %4548 = vmatpush1.bf16.msra.mxu1 %v6571_v54 }
0x178a   :  { %4549 = vmatprep.subr.bf16.mxu1 %v6576_v62 }
0x178d   :  { %4550 = vmatpush1.bf16.msra.mxu1 %v6574_v63 }
0x178e   :  { %4551 = vmatprep.subr.bf16.mxu1 %v6579_v4 }
0x1791   :  { %4552 = vmatpush1.bf16.msra.mxu1 %v6577_v17 }
0x1792   :  { %4553 = vmatprep.subr.bf16.mxu1 %v6582_v25 }
0x1795   :  { %4554 = vmatpush1.bf16.msra.mxu1 %v6580_v26 }
0x1796   :  { %4555 = vmatprep.subr.bf16.mxu1 %v6585_v33 }
0x1799   :  { %4556 = vmatpush1.bf16.msra.mxu1 %v6583_v44  ;;  %v6657_v44 = vld [vmem:[#allocation10 + $0x98] sm:$0xff]  }
0x179a   :  { %4557 = vmatprep.subr.bf16.mxu1 %v6588_v19  ;;  %v6610_v19 = vld [vmem:[#allocation8 + $0x100] ss:$8 sps:$4 sm:$0xff]  }
0x179d   :  { %4558 = vmatpush1.bf16.msra.mxu1 %v6586_v51 }
0x179e   :  { %4559 = vmatprep.subr.bf16.mxu1 %v6591_v55  ;;  %v6615_v55 = vld [vmem:[#allocation8 + $0x114] ss:$8 sps:$4 sm:$0xff]  }
0x17a1   :  { %4560 = vmatpush1.bf16.msra.mxu1 %v6589_v42  ;;  %v6943_v42 = vld [vmem:[#allocation2 + $0x28] sm:$0xff] }
0x17a2   :  { %4561 = vmatprep.subr.bf16.mxu1 %v6594_v20 }
0x17a5   :  { %4562 = vmatpush1.bf16.msra.mxu1 %v6592_v48 }
0x17a6   :  { %4563 = vmatprep.subr.bf16.mxu1 %v6597_v58  ;;  %v6621_v58 = vld [vmem:[#allocation8 + $0x134] ss:$8 sps:$4 sm:$0xff]  }
0x17a9   :  { %4564 = vmatpush1.bf16.msra.mxu1 %v6595_v50  ;;  %v4095_v50 = vadd.s32 32, %v7230_v38 }
0x17aa   :  { %4565 = vmatprep.subr.bf16.mxu1 %v6600_v2 }
0x17ab   :  { %vm5719_vm6 = vcmp.ne.s32.totalorder %v4095_v50, 32  ;;  %v6638_v50 = vld [vmem:[#allocation10 + $0x50] sm:$0xff]  }
0x17ac   :  { %vm8011_vm7 = vmpackc.low %vm7104_vm4, %vm5719_vm6 }
0x17ad   :  { %4566 = vmatpush1.bf16.msra.mxu1 %v6598_v59 }
0x17ae   :  { %4567 = vmatprep.subr.bf16.mxu1 %v6603_v49  ;;  %v6945_v49 = vld [vmem:[#allocation2 + $0x30] sm:$0xff] }
0x17b1   :  { %4568 = vmatpush1.bf16.msra.mxu1 %v6601_v23 }
0x17b2   :  { %4569 = vmatprep.subr.bf16.mxu1 %v6606_v56 }
0x17b5   :  { %4570 = vmatpush1.bf16.msra.mxu1 %v6604_v60  ;;  %v6619_v60 = vld [vmem:[#allocation8 + $0x130] ss:$8 sps:$4 sm:$0xff]  }
0x17b6   :  { %4571 = vmatprep.subr.bf16.mxu1 %v6609_v6  ;;  %v6624_v6 = vld [vmem:[#allocation8 + $0x144] ss:$8 sps:$4 sm:$0xff]  }
0x17b9   :  { %4572 = vmatpush1.bf16.msra.mxu1 %v6607_v8 }
0x17ba   :  { %4614 = vmatprep.subr.bf16.mxu1 %v6612_v10 }
0x184f   :  { %v6362_v57 = vpop.f32.mrb[88].mxu1 }
0x1850   :  { %v3894_v47 = vpop.f32.mrb[89].mxu1 }
0x1851   :  { %v6363_v29 = vpop.f32.mrb[90].mxu1 }
0x1852   :  { %v3971_v21 = vpack.c.bf16 %v6363_v29, %v6362_v57  ;;  %v3897_v32 = vpop.f32.mrb[91].mxu1 }
0x1853   :  { %v3970_v43 = vpack.c.bf16 %v3897_v32, %v3894_v47  ;;  %v6944_v47 = vld [vmem:[#allocation2 + $0x20] sm:$0xff] }
0x1855   :  { %v6370_v53 = vpop.f32.mrb[64].mxu0  ;;  %6374 = vmatprep.mubr.msk.bf16.mxu0 %vm441_vm0, %v3970_v43  ;;  %v6618_v43 = vld [vmem:[#allocation8 + $0x124] ss:$8 sps:$4 sm:$0xff]  }
0x1856   :  { %v3955_v3 = vpop.f32.mrb[65].mxu0  ;;  %6375 = vmatmul.mubr.msk.bf16.vlgmr.msra.gmra.mrb[24].mxu0 %vm441_vm0, %v3971_v21  ;;  %v6613_v21 = vld [vmem:[#allocation8 + $0x110] ss:$8 sps:$4 sm:$0xff]  }
0x1857   :  { %v6371_v16 = vpop.f32.mrb[66].mxu0 }
0x1858   :  { %v3973_v52 = vpack.c.bf16 %v6371_v16, %v6370_v53  ;;  %v3958_v35 = vpop.f32.mrb[67].mxu0 }
0x1859   :  { %v3972_v24 = vpack.c.bf16 %v3958_v35, %v3955_v3  ;;  %v6616_v35 = vld [vmem:[#allocation8 + $0x120] ss:$8 sps:$4 sm:$0xff]  }
0x185b   :  { %6378 = vmatprep.mubr.msk.bf16.mxu0 %vm441_vm0, %v3972_v24 }
0x185e   :  { %6379 = vmatmul.mubr.msk.bf16.gmra.mrb[28].mxu0 %vm441_vm0, %v3973_v52 }
0x1929   :  { %v6376_v13 = vpop.f32.mrb[24].mxu0 }
0x192a   :  { %v4028_v46 = vpop.f32.mrb[25].mxu0  ;;  %v4069_v11 = vadd.f32 %v6942_v1, %v6376_v13 }
0x192b   :  { %v4067_v14 = vadd.f32 %v6938_v22, %v4028_v46  ;;  %v6377_v15 = vpop.f32.mrb[26].mxu0  ;;  %v6622_v22 = vld [vmem:[#allocation8 + $0x140] ss:$8 sps:$4 sm:$0xff]  }
0x192c   :  { %v4031_v27 = vpop.f32.mrb[27].mxu0  ;;  %v4070_v40 = vadd.f32 %v6940_v12, %v6377_v15  ;;  %v7971_v25 = vadd.f32 %v7949_v18, %v4069_v11  ;;  %v6627_v15 = vld [vmem:[#allocation8 + $0x154] ss:$8 sps:$4 sm:$0xff]   ;;  %v6667_v46 = vld [vmem:[#allocation10 + $0x100] sm:$0xff]  }
0x192d   :  { %v4068_v7 = vadd.f32 %v6939_v30, %v4031_v27  ;;  %v7952_v5 = vadd.f32 %v7949_v18, %v4067_v14  ;;  %v6633_v12 = vld [vmem:[#allocation8 + $0x174] ss:$8 sps:$4 sm:$0xff]  }
0x192e   :  { %v7967_v4 = vadd.f32 %v7949_v18, %v4070_v40  ;;  %8452 = vst [vmem:[#allocation18_spill] sm:$0xff] %v7971_v25  ;;  %v4149_v32 = vrot.slane %v7971_v25, 7 }
0x192f   :  { %v7955_v31 = vadd.f32 %v7949_v18, %v4068_v7  ;;  %v4147_v63 = vrot.slane %v7952_v5, 7  ;;  %v6630_v7 = vld [vmem:[#allocation8 + $0x164] ss:$8 sps:$4 sm:$0xff]  }
0x1930   :  { %8451 = vst [vmem:[#allocation17_spill] sm:$0xff] %v7967_v4  ;;  %v4234_v48 = vpack.c.bf16 %v7967_v4, %v7971_v25  ;;  %v4150_v57 = vrot.slane %v7967_v4, 7 }
0x1931   :  { %v6380_v34 = vpop.f32.mrb[28].mxu0  ;;  %v4233_v28 = vpack.c.bf16 %v7955_v31, %v7952_v5  ;;  %v4148_v54 = vrot.slane %v7955_v31, 7  ;;  %v4189_v40 = vrot.slane %v7955_v31, 1 }
0x1932   :  { %v4044_v9 = vpop.f32.mrb[29].mxu0  ;;  %v4160_v3 = vsel %vm4155_vm2, %v4149_v32, %v4150_v57  ;;  %v4073_v23 = vadd.f32 %v6945_v49, %v6380_v34  ;;  %v6641_v49 = vld [vmem:[#allocation10 + $0x18] sm:$0xff]  }
0x1933   :  { %v6381_v36 = vpop.f32.mrb[30].mxu0  ;;  %4573 = vmatprep.mubr.bf16.mxu1 %v4233_v28  ;;  %v4162_v26 = vsel %vm4155_vm2, %v4147_v63, %v4148_v54  ;;  %v4071_v29 = vadd.f32 %v6944_v47, %v4044_v9  ;;  %v4161_v16 = vsel %vm4155_vm2, %v4148_v54, %v4149_v32  ;;  %v6628_v9 = vld [vmem:[#allocation8 + $0x160] ss:$8 sps:$4 sm:$0xff]  }
0x1934   :  { %v4074_v61 = vadd.f32 %v6941_v45, %v6381_v36  ;;  %v4047_v37 = vpop.f32.mrb[31].mxu0  ;;  %v4230_v24 = vpack.c.bf16 %v4160_v3, %v4161_v16  ;;  %v8006_v10 = vadd.f32 %v7949_v18, %v4073_v23  ;;  %v4190_v45 = vrot.slane %v7971_v25, 1  ;;  %v6642_v23 = vld [vmem:[#allocation10 + $0x60] sm:$0xff]  }
0x1935   :  { %v4072_v20 = vadd.f32 %v6943_v42, %v4047_v37  ;;  %v7996_v52 = vadd.f32 %v7949_v18, %v4071_v29  ;;  %v6631_v37 = vld [vmem:[#allocation8 + $0x170] ss:$8 sps:$4 sm:$0xff]   ;;  %v4098_v29 = vadd.s32 56, %v7230_v38 }
0x1936   :  { %v7961_v62 = vadd.f32 %v7949_v18, %v4074_v61  ;;  %8457 = vst [vmem:[#allocation21_spill] sm:$0xff] %v8006_v10  ;;  %v4153_v30 = vrot.slane %v8006_v10, 7  ;;  %v4188_v61 = vrot.slane %v7952_v5, 1  ;;  %v4202_v1 = vsel %vm4196_vm8, %v4189_v40, %v4190_v45 }
0x1937   :  { %v7989_v53 = vadd.f32 %v7949_v18, %v4072_v20  ;;  %8456 = vst [vmem:[#allocation20_spill] sm:$0xff] %v7996_v52  ;;  %v4151_v56 = vrot.slane %v7996_v52, 7  ;;  %v6625_v18 = vld [vmem:[#allocation8 + $0x150] ss:$8 sps:$4 sm:$0xff]   ;;  %v4194_v20 = vrot.slane %v8006_v10, 1  ;;  %vm5721_vm11 = vcmp.ne.s32.totalorder %v4098_v29, 63 }
0x1938   :  { %8450 = vst [vmem:[#allocation16_spill] sm:$0xff] %v7961_v62  ;;  %v4154_v17 = vrot.slane %v7961_v62, 7  ;;  %v4236_v27 = vpack.c.bf16 %v7961_v62, %v8006_v10  ;;  %v4203_v11 = vsel %vm4196_vm8, %v4188_v61, %v4189_v40  ;;  %vm8063_vm12 = vmpackc.low %vm5721_vm11, %vm7104_vm4 }
0x1939   :  { %8455 = vst [vmem:[#allocation19_spill] sm:$0xff] %v7989_v53  ;;  %v4152_v2 = vrot.slane %v7989_v53, 7  ;;  %v4235_v59 = vpack.c.bf16 %v7989_v53, %v7996_v52  ;;  %v4159_v13 = vsel %vm4155_vm2, %v4150_v57, %v4151_v56  ;;  %v4237_v54 = vpack.c.bf16 %v4202_v1, %v4203_v11 }
0x193a   :  { %v4163_v33 = vsel %vm4155_vm2, %v4154_v17, %v4147_v63  ;;  %v4156_v34 = vsel %vm4155_vm2, %v4153_v30, %v4154_v17  ;;  %v4094_v63 = vadd.s32 24, %v7230_v38  ;;  %v4192_v17 = vrot.slane %v7996_v52, 1  ;;  %v6653_v38 = vld [vmem:[#allocation10 + $0x88] sm:$0xff]  }
0x193b   :  { %v5623_v51 = vpack.c.bf16 %v4162_v26, %v4163_v33  ;;  %v4158_v8 = vsel %vm4155_vm2, %v4151_v56, %v4152_v2  ;;  %v4157_v28 = vsel %vm4155_vm2, %v4152_v2, %v4153_v30  ;;  %v4191_v26 = vrot.slane %v7967_v4, 1  ;;  %v6639_v2 = vld [vmem:[#allocation10 + $0x10] sm:$0xff]   ;;  %v6643_v56 = vld [vmem:[#allocation10 + $0x20] sm:$0xff]  }
0x193c   :  { %v5627_v14 = vpack.c.bf16 %v4158_v8, %v4159_v13  ;;  %v4232_v36 = vpack.c.bf16 %v4156_v34, %v4157_v28  ;;  %vm5720_vm9 = vcmp.ne.s32.totalorder %v4094_v63, 31  ;;  %v4193_v42 = vrot.slane %v7989_v53, 1  ;;  %v6646_v8 = vld [vmem:[#allocation10 + $0x70] sm:$0xff]  }
0x193d   :  { %5624 = vmatmul.mubr.msk.bf16.vlgmr.msra.gmra.mrb[92].mxu1 %vm7978_vm5, %v5623_v51  ;;  %v4200_v33 = vsel %vm4196_vm8, %v4191_v26, %v4192_v17  ;;  %vm8042_vm10 = vmpackc.low %vm5720_vm9, %vm7104_vm4  ;;  %v6647_v13 = vld [vmem:[#allocation10 + $0x30] sm:$0xff]  }
0x193e   :  { %4583 = vmatprep.mubr.bf16.mxu1 %v4234_v48  ;;  %4615 = vmatpush1.bf16.msra.mxu1 %v6610_v19  ;;  %v4201_v19 = vsel %vm4196_vm8, %v4190_v45, %v4191_v26  ;;  %v4198_v48 = vsel %vm4196_vm8, %v4193_v42, %v4194_v20  ;;  %v4199_v57 = vsel %vm4196_vm8, %v4192_v17, %v4193_v42 }
0x193f   :  { %4616 = vmatprep.subr.bf16.mxu1 %v6615_v55  ;;  %v5631_v55 = vpack.c.bf16 %v4200_v33, %v4201_v19  ;;  %v4239_v47 = vpack.c.bf16 %v4198_v48, %v4199_v57 }
0x1942   :  { %4617 = vmatpush1.bf16.msra.mxu1 %v6613_v21  ;;  %v4195_v21 = vrot.slane %v7961_v62, 1 }
0x1943   :  { %4618 = vmatprep.subr.bf16.mxu1 %v6618_v43 }
0x1944   :  { %v4197_v32 = vsel %vm4196_vm8, %v4194_v20, %v4195_v21  ;;  %v4204_v43 = vsel %vm4196_vm8, %v4195_v21, %v4188_v61 }
0x1945   :  { %4584 = vmatmul.mubr.bf16.gmra.mrb[96].mxu1 %v4230_v24  ;;  %v5635_v16 = vpack.c.bf16 %v4204_v43, %v4197_v32  ;;  %v6635_v24 = vld [vmem:[#allocation10] sm:$0xff]  }
0x1946   :  { %4593 = vmatprep.mubr.bf16.mxu1 %v4235_v59  ;;  %4619 = vmatpush1.bf16.msra.mxu1 %v6616_v35  ;;  %v6634_v35 = vld [vmem:[#allocation10 + $0x40] sm:$0xff]   ;;  %v6640_v59 = vld [vmem:[#allocation10 + $0x58] sm:$0xff]  }
0x1947   :  { %4620 = vmatprep.subr.bf16.mxu1 %v6621_v58  ;;  %5902 = vmatprep.subr.bf16.mxu0 %v6634_v35  ;;  %v6637_v58 = vld [vmem:[#allocation10 + $0x8] sm:$0xff]  }
0x1948   :  { %5903 = vmatpush3.bf16.msra.mxu0 %v6635_v24 }
0x194a   :  { %4621 = vmatpush1.bf16.msra.mxu1 %v6619_v60  ;;  %v6644_v60 = vld [vmem:[#allocation10 + $0x68] sm:$0xff]  }
0x194b   :  { %4622 = vmatprep.subr.bf16.mxu1 %v6624_v6  ;;  %v6645_v6 = vld [vmem:[#allocation10 + $0x28] sm:$0xff]  }
0x194d   :  { %5628 = vmatmul.mubr.msk.bf16.gmra.mrb[100].mxu1 %vm8011_vm7, %v5627_v14  ;;  %v6649_v14 = vld [vmem:[#allocation10 + $0x38] sm:$0xff]  }
0x194e   :  { %4603 = vmatprep.mubr.bf16.mxu1 %v4236_v27  ;;  %4623 = vmatpush1.bf16.msra.mxu1 %v6622_v22  ;;  %v6648_v22 = vld [vmem:[#allocation10 + $0x78] sm:$0xff]   ;;  %v4289_v27 = vld [vmem:[%s8436_s6] sm:$0x3] }
0x194f   :  { %4624 = vmatprep.subr.bf16.mxu1 %v6627_v15  ;;  %v6650_v15 = vld [vmem:[#allocation10 + $0xc0] sm:$0xff]   ;;  %v8078_v30 = vrot.slane %v4289_v27, %v154_v41 }
0x1952   :  { %4625 = vmatpush1.bf16.msra.mxu1 %v6625_v18  ;;  %v8074_v18 = vrot.slane %v4289_v27, %v150_v39 }
0x1953   :  { %4626 = vmatprep.subr.bf16.mxu1 %v6630_v7 }
0x1955   :  { %4604 = vmatmul.mubr.bf16.gmra.mrb[104].mxu1 %v4232_v36 }
0x1956   :  { %4627 = vmatpush1.bf16.msra.mxu1 %v6628_v9  ;;  %4646 = vmatprep.mubr.bf16.mxu1 %v7097_v0 }
0x1957   :  { %4628 = vmatprep.subr.bf16.mxu1 %v6633_v12 }
0x195a   :  { %4629 = vmatpush1.bf16.msra.mxu1 %v6631_v37 }
0x195d   :  { %4647 = vmatmul.mubr.bf16.vlgmr.msra.gmra.mrb[92].mxu1 %v4237_v54 }
0x195e   :  { %4656 = vmatprep.mubr.bf16.mxu1 %v7097_v0 }
0x1965   :  { %5632 = vmatmul.mubr.msk.bf16.gmra.mrb[96].mxu1 %vm8042_vm10, %v5631_v55 }
0x1966   :  { %4666 = vmatprep.mubr.bf16.mxu1 %v7097_v0 }
0x196d   :  { %4667 = vmatmul.mubr.bf16.gmra.mrb[100].mxu1 %v4239_v47 }
0x196e   :  { %4676 = vmatprep.mubr.bf16.mxu1 %v7097_v0  ;;  %v6636_v0 = vld [vmem:[#allocation10 + $0x48] sm:$0xff]  }
0x196f   :  { %5904 = vmatprep.subr.bf16.mxu0 %v6636_v0 }
0x1970   :  { %5905 = vmatpush3.bf16.msra.mxu0 %v6637_v58 }
0x1971   :  { %5906 = vmatprep.subr.bf16.mxu0 %v6638_v50 }
0x1974   :  { %5907 = vmatpush3.bf16.msra.mxu0 %v6639_v2 }
0x1975   :  { %5636 = vmatmul.mubr.msk.bf16.gmra.mrb[104].mxu1 %vm8063_vm12, %v5635_v16  ;;  %5908 = vmatprep.subr.bf16.mxu0 %v6640_v59 }
0x1978   :  { %5909 = vmatpush3.bf16.msra.mxu0 %v6641_v49 }
0x1979   :  { %5910 = vmatprep.subr.bf16.mxu0 %v6642_v23 }
0x197c   :  { %5911 = vmatpush3.bf16.msra.mxu0 %v6643_v56 }
0x197d   :  { %5912 = vmatprep.subr.bf16.mxu0 %v6644_v60 }
0x1980   :  { %5913 = vmatpush3.bf16.msra.mxu0 %v6645_v6 }
0x1981   :  { %5914 = vmatprep.subr.bf16.mxu0 %v6646_v8 }
0x1984   :  { %5915 = vmatpush3.bf16.msra.mxu0 %v6647_v13 }
0x1985   :  { %5916 = vmatprep.subr.bf16.mxu0 %v6648_v22 }
0x1988   :  { %5917 = vmatpush3.bf16.msra.mxu0 %v6649_v14 }
0x1989   :  { %5942 = vmatprep.subr.bf16.mxu0 %v6650_v15 }
0x1a30   :  { %v4648_v7 = vpop.f32.mrb[92].mxu1 }
0x1a31   :  { %v6382_v34 = vadd.f32 %v4648_v7, %v8074_v18  ;;  %v4650_v28 = vpop.f32.mrb[93].mxu1 }
0x1a32   :  { %v6383_v9 = vadd.f32 %v4650_v28, %v8078_v30  ;;  %v4652_v36 = vpop.f32.mrb[94].mxu1 }
0x1a33   :  { %v8082_v12 = vmax.f32 %v6382_v34, 0.0  ;;  %v6384_v40 = vadd.f32 %v4652_v36, %v8074_v18  ;;  %v4654_v45 = vpop.f32.mrb[95].mxu1 }
0x1a34   :  { %v8085_v61 = vmax.f32 %v6383_v9, 0.0  ;;  %v6385_v39 = vadd.f32 %v4654_v45, %v8078_v30 }
0x1a35   :  { %v8088_v37 = vmax.f32 %v6384_v40, 0.0  ;;  %v8443_v41 = vrot.slane %v8082_v12, 7  ;;  %v8440_v1 = vrot.slane %v8082_v12, 1  ;;  %v8464_v62 = vrot.slane %v8082_v12, 7 }
0x1a36   :  { %v8092_v11 = vmax.f32 %v6385_v39, 0.0  ;;  %v8442_v54 = vrot.slane %v8085_v61, 7  ;;  %v8441_v33 = vrot.slane %v8085_v61, 1 }
0x1a37   :  { %v4705_v63 = vrot.slane %v8088_v37, 7  ;;  %v4753_v17 = vrot.slane %v8088_v37, 1 }
0x1a38   :  { %v4706_v19 = vrot.slane %v8092_v11, 7  ;;  %v4754_v55 = vrot.slane %v8092_v11, 1  ;;  %v4658_v42 = vpop.f32.mrb[96].mxu1 }
0x1a39   :  { %v8108_v48 = vsel %vm4155_vm2, %v8443_v41, %v4705_v63  ;;  %v8114_v57 = vsel %vm4196_vm8, %v8440_v1, %v4753_v17  ;;  %v6386_v47 = vadd.f32 %v4658_v42, %v8074_v18  ;;  %v4660_v29 = vpop.f32.mrb[97].mxu1 }
0x1a3a   :  { %v6387_v21 = vadd.f32 %v4660_v29, %v8078_v30  ;;  %v4662_v32 = vpop.f32.mrb[98].mxu1  ;;  %v8122_v43 = vsel %vm4155_vm2, %v8442_v54, %v4706_v19  ;;  %v8128_v16 = vsel %vm4196_vm8, %v8441_v33, %v4754_v55 }
0x1a3b   :  { %v8130_v35 = vmax.f32 %v6386_v47, 0.0  ;;  %v6388_v24 = vadd.f32 %v4662_v32, %v8074_v18  ;;  %v4664_v0 = vpop.f32.mrb[99].mxu1 }
0x1a3c   :  { %v8133_v58 = vmax.f32 %v6387_v21, 0.0  ;;  %v6389_v50 = vadd.f32 %v4664_v0, %v8078_v30 }
0x1a3d   :  { %v4707_v2 = vrot.slane %v8130_v35, 7  ;;  %v4755_v59 = vrot.slane %v8130_v35, 1  ;;  %v8138_v49 = vmax.f32 %v6388_v24, 0.0 }
0x1a3e   :  { %v4708_v23 = vrot.slane %v8133_v58, 7  ;;  %v4756_v56 = vrot.slane %v8133_v58, 1  ;;  %v8142_v60 = vmax.f32 %v6389_v50, 0.0 }
0x1a3f   :  { %v8146_v6 = vsel %vm4196_vm8, %v4753_v17, %v4755_v59  ;;  %v4709_v8 = vrot.slane %v8138_v49, 7  ;;  %v4757_v13 = vrot.slane %v8138_v49, 1  ;;  %v8152_v22 = vsel %vm4155_vm2, %v4705_v63, %v4707_v2 }
0x1a40   :  { %v4710_v15 = vrot.slane %v8142_v60, 7  ;;  %v4758_v27 = vrot.slane %v8142_v60, 1  ;;  %v4668_v7 = vpop.f32.mrb[100].mxu1  ;;  %v8160_v34 = vsel %vm4155_vm2, %v4706_v19, %v4708_v23  ;;  %v8180_v42 = vsel %vm4196_vm8, %v4754_v55, %v4756_v56 }
0x1a41   :  { %v6390_v28 = vadd.f32 %v4668_v7, %v8074_v18  ;;  %v4670_v9 = vpop.f32.mrb[101].mxu1  ;;  %v8165_v36 = vsel %vm4155_vm2, %v4707_v2, %v4709_v8  ;;  %v8198_v55 = vsel %vm4196_vm8, %v4755_v59, %v4757_v13 }
0x1a42   :  { %v6391_v39 = vadd.f32 %v4670_v9, %v8078_v30  ;;  %v4672_v63 = vpop.f32.mrb[102].mxu1  ;;  %v8174_v17 = vsel %vm4155_vm2, %v4708_v23, %v4710_v15  ;;  %v8194_v2 = vsel %vm4196_vm8, %v4756_v56, %v4758_v27 }
0x1a43   :  { %v8182_v47 = vmax.f32 %v6390_v28, 0.0  ;;  %v6392_v29 = vadd.f32 %v4672_v63, %v8074_v18  ;;  %v4674_v21 = vpop.f32.mrb[103].mxu1 }
0x1a44   :  { %v8189_v0 = vmax.f32 %v6391_v39, 0.0  ;;  %v6393_v50 = vadd.f32 %v4674_v21, %v8078_v30 }
0x1a45   :  { %v4711_v23 = vrot.slane %v8182_v47, 7  ;;  %v4759_v7 = vrot.slane %v8182_v47, 1  ;;  %v8202_v28 = vmax.f32 %v6392_v29, 0.0 }
0x1a46   :  { %v4712_v9 = vrot.slane %v8189_v0, 7  ;;  %v4760_v39 = vrot.slane %v8189_v0, 1  ;;  %v8206_v63 = vmax.f32 %v6393_v50, 0.0 }
0x1a47   :  { %v4713_v21 = vrot.slane %v8202_v28, 7  ;;  %v4761_v56 = vrot.slane %v8202_v28, 1  ;;  %v8212_v59 = vsel %vm4155_vm2, %v4709_v8, %v4711_v23  ;;  %v8235_v19 = vsel %vm4196_vm8, %v4757_v13, %v4759_v7 }
0x1a48   :  { %v4714_v29 = vrot.slane %v8206_v63, 7  ;;  %v4762_v24 = vrot.slane %v8206_v63, 1  ;;  %v4678_v45 = vpop.f32.mrb[104].mxu1  ;;  %v8220_v50 = vsel %vm4155_vm2, %v4710_v15, %v4712_v9  ;;  %v8231_v14 = vsel %vm4196_vm8, %v4758_v27, %v4760_v39 }
0x1a49   :  { %v6394_v26 = vadd.f32 %v4678_v45, %v8074_v18  ;;  %v4680_v20 = vpop.f32.mrb[105].mxu1  ;;  %v8227_v8 = vsel %vm4155_vm2, %v4711_v23, %v4713_v21 }
0x1a4a   :  { %v6395_v15 = vadd.f32 %v4680_v20, %v8078_v30  ;;  %v4682_v32 = vpop.f32.mrb[106].mxu1  ;;  %v4724_v40 = vsel %vm4155_vm2, %v4712_v9, %v4714_v29  ;;  %v8255_v45 = vsel %vm4196_vm8, %v4760_v39, %v4762_v24 }
0x1a4b   :  { %v8244_v1 = vmax.f32 %v6394_v26, 0.0  ;;  %v6396_v27 = vadd.f32 %v4682_v32, %v8074_v18  ;;  %v4684_v33 = vpop.f32.mrb[107].mxu1  ;;  %v5696_v13 = vpack.c.bf16 %v4724_v40, %v8220_v50  ;;  %v8259_v26 = vsel %vm4196_vm8, %v4759_v7, %v4761_v56 }
0x1a4c   :  { %v8250_v54 = vmax.f32 %v6395_v15, 0.0  ;;  %v6397_v9 = vadd.f32 %v4684_v33, %v8078_v30 }
0x1a4d   :  { %v4715_v18 = vrot.slane %v8244_v1, 7  ;;  %v4763_v32 = vrot.slane %v8244_v1, 1  ;;  %v8263_v40 = vmax.f32 %v6396_v27, 0.0 }
0x1a4e   :  { %v4716_v50 = vrot.slane %v8250_v54, 7  ;;  %v4764_v15 = vrot.slane %v8250_v54, 1  ;;  %v8267_v20 = vmax.f32 %v6397_v9, 0.0  ;;  %v8465_v9 = vrot.slane %v8085_v61, 7 }
0x1a4f   :  { %v4717_v30 = vrot.slane %v8263_v40, 7  ;;  %v4765_v33 = vrot.slane %v8263_v40, 1  ;;  %v4721_v7 = vsel %vm4155_vm2, %v4713_v21, %v4715_v18  ;;  %v8293_v53 = vsel %vm4196_vm8, %v4761_v56, %v4763_v32 }
0x1a50   :  { %v4718_v23 = vrot.slane %v8267_v20, 7  ;;  %v4766_v27 = vrot.slane %v8267_v20, 1  ;;  %v4722_v41 = vsel %vm4155_vm2, %v4714_v29, %v4716_v50  ;;  %v8289_v39 = vsel %vm4196_vm8, %v4762_v24, %v4764_v15 }
0x1a51   :  { %v4733_v10 = vsel %vm4155_vm2, %v4717_v30, %v8464_v62  ;;  %v4719_v21 = vsel %vm4155_vm2, %v4715_v18, %v4717_v30  ;;  %v6651_v30 = vld [vmem:[#allocation10 + $0x80] sm:$0xff]   ;;  %v4820_v25 = vpack.c.bf16 %v8289_v39, %v8255_v45  ;;  %v4819_v56 = vpack.c.bf16 %v8293_v53, %v8259_v26 }
0x1a52   :  { %v5692_v29 = vpack.c.bf16 %v8108_v48, %v4733_v10  ;;  %v4734_v52 = vsel %vm4155_vm2, %v4718_v23, %v8465_v9  ;;  %v4720_v62 = vsel %vm4155_vm2, %v4716_v50, %v4718_v23  ;;  %v4805_v4 = vpack.c.bf16 %v4719_v21, %v4721_v7  ;;  %v6652_v10 = vld [vmem:[#allocation10 + $0xc8] sm:$0xff]   ;;  %v6655_v7 = vld [vmem:[#allocation10 + $0x90] sm:$0xff]  }
0x1a53   :  { %v5688_v18 = vpack.c.bf16 %v8122_v43, %v4734_v52  ;;  %v4806_v24 = vpack.c.bf16 %v4720_v62, %v4722_v41  ;;  %v8309_v48 = vsel %vm4196_vm8, %v4764_v15, %v4766_v27  ;;  %v8466_v9 = vrot.slane %v8085_v61, 1 }
0x1a54   :  { %v8319_v52 = vsel %vm4196_vm8, %v4763_v32, %v4765_v33  ;;  %v8467_v41 = vrot.slane %v8082_v12, 1  ;;  %v8468_v32 = vpack.c.bf16 %v8174_v17, %v8160_v34  ;;  %v8469_v21 = vpack.c.bf16 %v8165_v36, %v8152_v22  ;;  %v6658_v34 = vld [vmem:[#allocation10 + $0xe0] sm:$0xff]   ;;  %v6661_v22 = vld [vmem:[#allocation10 + $0xa8] sm:$0xff]   ;;  %v6662_v36 = vld [vmem:[#allocation10 + $0xf0] sm:$0xff]  }
0x1a55   :  { %v8315_v23 = vsel %vm4196_vm8, %v4766_v27, %v8466_v9  ;;  %5689 = vmatprep.mubr.msk.bf16.mxu0 %vm7978_vm5, %v5688_v18  ;;  %v6656_v27 = vld [vmem:[#allocation10 + $0xd8] sm:$0xff]   ;;  %v6659_v17 = vld [vmem:[#allocation10 + $0xa0] sm:$0xff]   ;;  %v8470_v62 = vpack.c.bf16 %v8227_v8, %v8212_v59  ;;  %v6668_v8 = vld [vmem:[#allocation10 + $0x148] sm:$0xff]   ;;  %v8473_v9 = vpack.c.bf16 %v8142_v60, %v8133_v58 }
0x1a56   :  { %v8325_v43 = vsel %vm4196_vm8, %v4765_v33, %v8467_v41  ;;  %v5712_v50 = vpack.c.bf16 %v8315_v23, %v8309_v48  ;;  %5693 = vmatmul.mubr.msk.bf16.vlgmr.msra.gmra.mrb[68].mxu0 %vm7978_vm5, %v5692_v29  ;;  %v6654_v33 = vld [vmem:[#allocation10 + $0xd0] sm:$0xff]   ;;  %v6660_v29 = vld [vmem:[#allocation10 + $0xe8] sm:$0xff]   ;;  %v6664_v18 = vld [vmem:[#allocation10 + $0xf8] sm:$0xff]  }
0x1a57   :  { %v5716_v15 = vpack.c.bf16 %v8325_v43, %v8319_v52  ;;  %5254 = vmatprep.mubr.bf16.mxu0 %v8468_v32  ;;  %5943 = vmatpush3.bf16.msra.mxu0 %v6651_v30  ;;  %v8471_v30 = vpack.c.bf16 %v8092_v11, %v8085_v61  ;;  %v6666_v59 = vld [vmem:[#allocation10 + $0x140] sm:$0xff]   ;;  %v6670_v61 = vld [vmem:[#allocation10 + $0x150] sm:$0xff]   ;;  %v6672_v41 = vld [vmem:[#allocation10 + $0x158] sm:$0xff]   ;;  %v8474_v32 = vpack.c.bf16 %v8138_v49, %v8130_v35 }
0x1a58   :  { %5944 = vmatprep.subr.bf16.mxu0 %v6652_v10  ;;  %v6665_v10 = vld [vmem:[#allocation10 + $0xb8] sm:$0xff]   ;;  %v6671_v11 = vld [vmem:[#allocation10 + $0x110] sm:$0xff]   ;;  %v6674_v58 = vld [vmem:[#allocation10 + $0x160] sm:$0xff]   ;;  %v8477_v35 = vpack.c.bf16 %v8267_v20, %v8250_v54  ;;  %v8480_v54 = vpack.c.bf16 %v8146_v6, %v8114_v57  ;;  %v8481_v20 = vpack.c.bf16 %v8231_v14, %v8194_v2 }
0x1a59   :  { %v6675_v60 = vld [vmem:[#allocation10 + $0x120] sm:$0xff]   ;;  %v6677_v49 = vld [vmem:[#allocation10 + $0x128] sm:$0xff]  }
0x1a5b   :  { %5945 = vmatpush3.bf16.msra.mxu0 %v6653_v38  ;;  %v6676_v38 = vld [vmem:[#allocation10 + $0x168] sm:$0xff]  }
0x1a5c   :  { %5946 = vmatprep.subr.bf16.mxu0 %v6654_v33  ;;  %v8476_v33 = vpack.c.bf16 %v8202_v28, %v8182_v47  ;;  %v8479_v47 = vpack.c.bf16 %v8180_v42, %v8128_v16  ;;  %v6681_v28 = vld [vmem:[#allocation10 + $0x138] sm:$0xff]  }
0x1a5e   :  { %5255 = vmatmul.mubr.bf16.gmra.mrb[72].mxu0 %v8469_v21 }
0x1a5f   :  { %5697 = vmatprep.mubr.msk.bf16.mxu0 %vm8011_vm7, %v5696_v13  ;;  %5947 = vmatpush3.bf16.msra.mxu0 %v6655_v7  ;;  %v6663_v13 = vld [vmem:[#allocation10 + $0xb0] sm:$0xff]   ;;  %v6680_v7 = vld [vmem:[#allocation10 + $0x178] sm:$0xff]  }
0x1a60   :  { %5948 = vmatprep.subr.bf16.mxu0 %v6656_v27  ;;  %v8478_v27 = vpack.c.bf16 %v8263_v40, %v8244_v1  ;;  %v8482_v1 = vpack.c.bf16 %v8235_v19, %v8198_v55 }
0x1a63   :  { %5949 = vmatpush3.bf16.msra.mxu0 %v6657_v44  ;;  %v5637_v44 = vld [vmem:[%s8438_s8] ss:$0 sm:$0xff]  ;;  %s7105_s8 = smov [#allocation11]  }
0x1a64   :  { %5950 = vmatprep.subr.bf16.mxu0 %v6658_v34  ;;  %s5430_s18 = sshll.u32 %s7105_s8, 4  ;;  %s5431_s18 = int_to_ptr.vmem [resolvable:$true] %s5430_s18 }
0x1a65   :  { %s7056_s19 = scalar_lea.vmem %s5431_s18, 1024  ;;  %p7061_p13 = scmp.lt.s32.totalorder %s5431_s18, %s5431_s18 }
0x1a66   :  { %5701 = vmatmul.mubr.msk.bf16.gmra.mrb[76].mxu0 %vm8011_vm7, %v8470_v62  ;;  %p7057_p12 = scmp.ne.s32.totalorder %s5431_s18, %s7056_s19  ;;  %p7062_p0 = scmp.lt.s32.totalorder %s7056_s19, %s7056_s19 }
0x1a67   :  { %5270 = vmatprep.mubr.bf16.mxu0 %v4806_v24  ;;  %5951 = vmatpush3.bf16.msra.mxu0 %v6659_v17  ;;  %v8472_v24 = vpack.c.bf16 %v8088_v37, %v8082_v12  ;;  %v8475_v12 = vpack.c.bf16 %v8206_v63, %v8189_v0  ;;  %v6673_v37 = vld [vmem:[#allocation10 + $0x118] sm:$0xff]   ;;  %v6678_v0 = vld [vmem:[#allocation10 + $0x170] sm:$0xff]  }
0x1a68   :  { %5952 = vmatprep.subr.bf16.mxu0 %v6660_v29  ;;  %v6679_v63 = vld [vmem:[#allocation10 + $0x130] sm:$0xff]   ;;  %p7063_p1 = por %p7062_p0, %p7061_p13 }
0x1a6a   :  { %p7064_p2 = pnand %p7063_p1, %p7057_p12 }
0x1a6b   :  { %5953 = vmatpush3.bf16.msra.mxu0 %v6661_v22 }
0x1a6c   :  { %5954 = vmatprep.subr.bf16.mxu0 %v6662_v36 }
0x1a6e   :  { %5271 = vmatmul.mubr.bf16.gmra.mrb[80].mxu0 %v4805_v4  ;;  %v6669_v4 = vld [vmem:[#allocation10 + $0x108] sm:$0xff]  }
0x1a6f   :  { %5955 = vmatpush3.bf16.msra.mxu0 %v6663_v13  ;;  %5311 = vmatprep.mubr.bf16.mxu0 %v8471_v30 }
0x1a70   :  { %5956 = vmatprep.subr.bf16.mxu0 %v6664_v18 }
0x1a73   :  { %5957 = vmatpush3.bf16.msra.mxu0 %v6665_v10 }
0x1a74   :  { %5982 = vmatprep.subr.bf16.mxu0 %v6666_v59 }
0x1a76   :  { %5312 = vmatmul.mubr.bf16.vlgmr.msra.gmra.mrb[84].mxu0 %v8472_v24 }
0x1a77   :  { %5319 = vmatprep.mubr.bf16.mxu0 %v8473_v9  ;;  %5983 = vmatpush3.bf16.msra.mxu0 %v6667_v46 }
0x1a78   :  { %5984 = vmatprep.subr.bf16.mxu0 %v6668_v8 }
0x1a7b   :  { %5985 = vmatpush3.bf16.msra.mxu0 %v6669_v4 }
0x1a7c   :  { %5986 = vmatprep.subr.bf16.mxu0 %v6670_v61 }
0x1a7e   :  { %5320 = vmatmul.mubr.bf16.gmra.mrb[88].mxu0 %v8474_v32 }
0x1a7f   :  { %5327 = vmatprep.mubr.bf16.mxu0 %v8475_v12  ;;  %5987 = vmatpush3.bf16.msra.mxu0 %v6671_v11 }
0x1a80   :  { %5988 = vmatprep.subr.bf16.mxu0 %v6672_v41 }
0x1a83   :  { %5989 = vmatpush3.bf16.msra.mxu0 %v6673_v37 }
0x1a84   :  { %5990 = vmatprep.subr.bf16.mxu0 %v6674_v58 }
0x1a86   :  { %5328 = vmatmul.mubr.bf16.gmra.mrb[92].mxu0 %v8476_v33 }
0x1a87   :  { %5335 = vmatprep.mubr.bf16.mxu0 %v8477_v35  ;;  %5991 = vmatpush3.bf16.msra.mxu0 %v6675_v60 }
0x1a88   :  { %5992 = vmatprep.subr.bf16.mxu0 %v6676_v38 }
0x1a8b   :  { %5993 = vmatpush3.bf16.msra.mxu0 %v6677_v49 }
0x1a8c   :  { %5994 = vmatprep.subr.bf16.mxu0 %v6678_v0 }
0x1a8e   :  { %5336 = vmatmul.mubr.bf16.gmra.mrb[96].mxu0 %v8478_v27 }
0x1a8f   :  { %5995 = vmatpush3.bf16.msra.mxu0 %v6679_v63  ;;  %5376 = vmatprep.mubr.bf16.mxu0 %v8479_v47 }
0x1a90   :  { %5996 = vmatprep.subr.bf16.mxu0 %v6680_v7 }
0x1a93   :  { %5997 = vmatpush3.bf16.msra.mxu0 %v6681_v28 }
0x1a96   :  { %5377 = vmatmul.mubr.bf16.vlgmr.msra.gmra.mrb[100].mxu0 %v8480_v54 }
0x1a97   :  { %5705 = vmatprep.mubr.msk.bf16.mxu0 %vm8042_vm10, %v8481_v20 }
0x1a9e   :  { %5709 = vmatmul.mubr.msk.bf16.gmra.mrb[104].mxu0 %vm8042_vm10, %v8482_v1 }
0x1a9f   :  { %5392 = vmatprep.mubr.bf16.mxu0 %v4820_v25 }
0x1aa6   :  { %5393 = vmatmul.mubr.bf16.gmra.mrb[108].mxu0 %v4819_v56 }
0x1aa7   :  { %5713 = vmatprep.mubr.msk.bf16.mxu0 %vm8063_vm12, %v5712_v50 }
0x1aae   :  { %5717 = vmatmul.mubr.msk.bf16.gmra.mrb[112].mxu0 %vm8063_vm12, %v5716_v15 }
0x1b29   :  { %v5918_v51 = vpop.f32.mrb[68].mxu0 }
0x1b2a   :  { %v5919_v57 = vpop.f32.mrb[69].mxu0 }
0x1b2b   :  { %v5920_v16 = vadd.f32 %v5919_v57, %v5918_v51  ;;  %v5921_v25 = vpop.f32.mrb[70].mxu0 }
0x1b2c   :  { %v5922_v6 = vpop.f32.mrb[71].mxu0 }
0x1b2d   :  { %v5923_v14 = vadd.f32 %v5922_v6, %v5921_v25  ;;  %v5249_v29 = vadd.f32 %v5920_v16, %v5637_v44 }
0x1b2f   :  { %v5252_v13 = vadd.f32 %v5923_v14, %v5637_v44 }
0x1b31   :  { %v5924_v53 = vpop.f32.mrb[72].mxu0 }
0x1b32   :  { %v5925_v19 = vpop.f32.mrb[73].mxu0 }
0x1b33   :  { %v5926_v42 = vadd.f32 %v5925_v19, %v5924_v53  ;;  %v5927_v2 = vpop.f32.mrb[74].mxu0 }
0x1b34   :  { %v5928_v55 = vpop.f32.mrb[75].mxu0 }
0x1b35   :  { %v5929_v45 = vadd.f32 %v5928_v55, %v5927_v2  ;;  %v5257_v8 = vadd.f32 %v5926_v42, %v5637_v44 }
0x1b37   :  { %v5260_v61 = vadd.f32 %v5929_v45, %v5637_v44 }
0x1b39   :  { %v5930_v26 = vpop.f32.mrb[76].mxu0 }
0x1b3a   :  { %v5931_v40 = vpop.f32.mrb[77].mxu0 }
0x1b3b   :  { %v5932_v39 = vadd.f32 %v5931_v40, %v5930_v26  ;;  %v5933_v56 = vpop.f32.mrb[78].mxu0 }
0x1b3c   :  { %v5934_v48 = vpop.f32.mrb[79].mxu0 }
0x1b3d   :  { %v5935_v23 = vadd.f32 %v5934_v48, %v5933_v56  ;;  %v5265_v58 = vadd.f32 %v5932_v39, %v5637_v44 }
0x1b3f   :  { %v5268_v35 = vadd.f32 %v5935_v23, %v5637_v44 }
0x1b41   :  { %v5936_v3 = vpop.f32.mrb[80].mxu0 }
0x1b42   :  { %v5937_v52 = vpop.f32.mrb[81].mxu0 }
0x1b43   :  { %v5938_v43 = vadd.f32 %v5937_v52, %v5936_v3  ;;  %v5939_v50 = vpop.f32.mrb[82].mxu0 }
0x1b44   :  { %v5940_v15 = vpop.f32.mrb[83].mxu0 }
0x1b45   :  { %v5941_v21 = vadd.f32 %v5940_v15, %v5939_v50  ;;  %v5273_v47 = vadd.f32 %v5938_v43, %v5637_v44  ;;  %v8483_v43 = vld [vmem:[#allocation18_spill] sm:$0xff] }
0x1b47   :  { %v5276_v1 = vadd.f32 %v5941_v21, %v5637_v44  ;;  %v8484_v21 = vld [vmem:[#allocation17_spill] sm:$0xff] }
0x1b49   :  { %v5958_v34 = vpop.f32.mrb[84].mxu0 }
0x1b4a   :  { %v5959_v17 = vpop.f32.mrb[85].mxu0 }
0x1b4b   :  { %v5960_v62 = vadd.f32 %v5959_v17, %v5958_v34  ;;  %v5961_v22 = vpop.f32.mrb[86].mxu0 }
0x1b4c   :  { %v5962_v36 = vpop.f32.mrb[87].mxu0 }
0x1b4d   :  { %v5314_v18 = vadd.f32 %v5960_v62, %v5249_v29  ;;  %v5963_v30 = vadd.f32 %v5962_v36, %v5961_v22  ;;  %v8485_v36 = vld [vmem:[#allocation20_spill] sm:$0xff] }
0x1b4f   :  { %v5317_v10 = vadd.f32 %v5963_v30, %v5252_v13  ;;  %v8486_v30 = vld [vmem:[#allocation19_spill] sm:$0xff] }
0x1b51   :  { %v5964_v59 = vpop.f32.mrb[88].mxu0 }
0x1b52   :  { %v5965_v46 = vpop.f32.mrb[89].mxu0 }
0x1b53   :  { %v5966_v24 = vadd.f32 %v5965_v46, %v5964_v59  ;;  %v5967_v9 = vpop.f32.mrb[90].mxu0 }
0x1b54   :  { %v5968_v4 = vpop.f32.mrb[91].mxu0 }
0x1b55   :  { %v5322_v11 = vadd.f32 %v5966_v24, %v5257_v8  ;;  %v5969_v41 = vadd.f32 %v5968_v4, %v5967_v9 }
0x1b57   :  { %v5325_v32 = vadd.f32 %v5969_v41, %v5260_v61 }
0x1b59   :  { %v5970_v12 = vpop.f32.mrb[92].mxu0 }
0x1b5a   :  { %v5971_v37 = vpop.f32.mrb[93].mxu0 }
0x1b5b   :  { %v5972_v60 = vadd.f32 %v5971_v37, %v5970_v12  ;;  %v5973_v38 = vpop.f32.mrb[94].mxu0  ;;  %v8488_v12 = vld [vmem:[#allocation16_spill] sm:$0xff] }
0x1b5c   :  { %v5974_v33 = vpop.f32.mrb[95].mxu0 }
0x1b5d   :  { %v5330_v49 = vadd.f32 %v5972_v60, %v5265_v58  ;;  %v5975_v0 = vadd.f32 %v5974_v33, %v5973_v38 }
0x1b5f   :  { %v5333_v63 = vadd.f32 %v5975_v0, %v5268_v35 }
0x1b61   :  { %v5976_v7 = vpop.f32.mrb[96].mxu0 }
0x1b62   :  { %v5977_v27 = vpop.f32.mrb[97].mxu0 }
0x1b63   :  { %v5978_v28 = vadd.f32 %v5977_v27, %v5976_v7  ;;  %v5979_v54 = vpop.f32.mrb[98].mxu0 }
0x1b64   :  { %v5980_v20 = vpop.f32.mrb[99].mxu0 }
0x1b65   :  { %v5338_v51 = vadd.f32 %v5978_v28, %v5273_v47  ;;  %v5981_v57 = vadd.f32 %v5980_v20, %v5979_v54 }
0x1b67   :  { %v5341_v16 = vadd.f32 %v5981_v57, %v5276_v1 }
0x1b69   :  { %v5998_v25 = vpop.f32.mrb[100].mxu0 }
0x1b6a   :  { %v5999_v6 = vpop.f32.mrb[101].mxu0 }
0x1b6b   :  { %v6000_v14 = vadd.f32 %v5999_v6, %v5998_v25  ;;  %v6001_v53 = vpop.f32.mrb[102].mxu0 }
0x1b6c   :  { %v6002_v19 = vpop.f32.mrb[103].mxu0 }
0x1b6d   :  { %v5379_v42 = vadd.f32 %v6000_v14, %v5314_v18  ;;  %v6003_v2 = vadd.f32 %v6002_v19, %v6001_v53 }
0x1b6f   :  { %v5409_v55 = vadd.f32 %v5379_v42, %v7952_v5  ;;  %v5382_v45 = vadd.f32 %v6003_v2, %v5317_v10 }
0x1b71   :  { %5417 = vst [vmem:[#allocation11] sm:$0xff] %v5409_v55  ;;  %v5410_v26 = vadd.f32 %v5382_v45, %v7955_v31  ;;  %v6004_v40 = vpop.f32.mrb[104].mxu0 }
0x1b72   :  { %v6005_v39 = vpop.f32.mrb[105].mxu0 }
0x1b73   :  { %5418 = vst [vmem:[#allocation11 + $0x8] sm:$0xff] %v5410_v26  ;;  %v6006_v56 = vadd.f32 %v6005_v39, %v6004_v40  ;;  %v6007_v48 = vpop.f32.mrb[106].mxu0 }
0x1b74   :  { %v6008_v23 = vpop.f32.mrb[107].mxu0 }
0x1b75   :  { %v5387_v3 = vadd.f32 %v6006_v56, %v5322_v11  ;;  %v6009_v52 = vadd.f32 %v6008_v23, %v6007_v48  ;;  %v8487_v11 = vld [vmem:[#allocation21_spill] sm:$0xff] }
0x1b77   :  { %v5411_v50 = vadd.f32 %v5387_v3, %v8483_v43  ;;  %v5390_v15 = vadd.f32 %v6009_v52, %v5325_v32 }
0x1b79   :  { %5419 = vst [vmem:[#allocation11 + $0x10] sm:$0xff] %v5411_v50  ;;  %v5412_v44 = vadd.f32 %v5390_v15, %v8484_v21  ;;  %v6010_v34 = vpop.f32.mrb[108].mxu0 }
0x1b7a   :  { %v6011_v5 = vpop.f32.mrb[109].mxu0 }
0x1b7b   :  { %5420 = vst [vmem:[#allocation11 + $0x18] sm:$0xff] %v5412_v44  ;;  %v6012_v17 = vadd.f32 %v6011_v5, %v6010_v34  ;;  %v6013_v29 = vpop.f32.mrb[110].mxu0 }
0x1b7c   :  { %v6014_v31 = vpop.f32.mrb[111].mxu0 }
0x1b7d   :  { %v5395_v62 = vadd.f32 %v6012_v17, %v5330_v49  ;;  %v6015_v22 = vadd.f32 %v6014_v31, %v6013_v29 }
0x1b7f   :  { %v5413_v13 = vadd.f32 %v5395_v62, %v8485_v36  ;;  %v5398_v18 = vadd.f32 %v6015_v22, %v5333_v63 }
0x1b81   :  { %5421 = vst [vmem:[#allocation11 + $0x20] sm:$0xff] %v5413_v13  ;;  %v5414_v10 = vadd.f32 %v5398_v18, %v8486_v30  ;;  %v6016_v59 = vpop.f32.mrb[112].mxu0 }
0x1b82   :  { %v6017_v46 = vpop.f32.mrb[113].mxu0 }
0x1b83   :  { %5422 = vst [vmem:[#allocation11 + $0x28] sm:$0xff] %v5414_v10  ;;  %v6018_v8 = vadd.f32 %v6017_v46, %v6016_v59  ;;  %v6019_v24 = vpop.f32.mrb[114].mxu0 }
0x1b84   :  { %v6020_v9 = vpop.f32.mrb[115].mxu0 }
0x1b85   :  { %v5403_v4 = vadd.f32 %v6018_v8, %v5338_v51  ;;  %v6021_v61 = vadd.f32 %v6020_v9, %v6019_v24 }
0x1b87   :  { %v5415_v41 = vadd.f32 %v5403_v4, %v8487_v11  ;;  %v5406_v32 = vadd.f32 %v6021_v61, %v5341_v16 }
0x1b89   :  { %5423 = vst [vmem:[#allocation11 + $0x30] sm:$0xff] %v5415_v41  ;;  %v5416_v37 = vadd.f32 %v5406_v32, %v8488_v12 }
0x1b8b   :  { %5424 = vst [vmem:[#allocation11 + $0x38] sm:$0xff] %v5416_v37 }
0x1b8c   :  { %7067 = shalt.err (!%p7064_p2)
}
0x1b8d   :  { %s7068_s22 = scalar_lea.hbm %s8439_s9, 1024 }
0x1b8e   :  { %p7069_p3 = scmp.ne.s32.totalorder %s8439_s9, %s7068_s22  ;;  %p7072_p4 = scmp.lt.u32.totalorder %s7068_s22, %s8439_s9 }
0x1b90   :  { %p7074_p5 = pnand %p7072_p4, %p7069_p3 }
0x1b92   :  { %7077 = shalt.err (!%p7074_p5)
}
0x1b93   :  { %5436 = dma.vmem_to_hbm [thread:$0]  %s5431_s18, 1024, %s8439_s9, [#allocation4], %s7091_s10, %s7091_s10, %s7092_s14  }
0x1b94   :  { %7084 = dma.done.wait [#allocation4], 1024  }
0x1b95   :  { %7085 = vsyncadd [#allocation4], 4294966272 }
0x1b96   :  { %5440 = vsyncpa [#allocation3], 1 }
0x1b97   :  { %5441 = vsyncpa [#allocation6], 1 }
0x1b98   :  { %5442 = vsyncpa [#allocation9], 1 }
0x1b99   :  { %5443 = vsyncpa [#allocation4], 1 }

</bundles_post_ra>
